<compile_context>
chip_gen: v5e
topology: v5e:2x2
jax: 0.10.0
libtpu: 0.0.40
codegen_flags: <defaults>
</compile_context>

<pallas_src>
import jax
import jax.numpy as jnp
from jax.experimental import pallas as pl
from jax.experimental.pallas import tpu as pltpu

# ---- model hyperparameters (PyTorch defaults) -------------------------------
NUM_CHANNELS = 3
DILATION_DEPTH = 2
NUM_REPEAT = 2
KERNEL_SIZE = 2
DILATIONS = tuple([2 ** d for d in range(DILATION_DEPTH)] * NUM_REPEAT)  # (1, 2, 1, 2)
INTERNAL_CHANNELS = NUM_CHANNELS * 2
NUM_LAYERS = len(DILATIONS)


# ---- Pallas kernel -----------------------------------------------------------
def wavenet_kernel(x_ref, in_w_ref, in_b_ref, hw_ref, hb_ref, rw_ref, rb_ref,
                   mix_w_ref, mix_b_ref, o_ref):
    C, IC, K = NUM_CHANNELS, INTERNAL_CHANNELS, KERNEL_SIZE
    Bb, T = x_ref.shape
    x = x_ref[...]                                           # (Bb, T) f32
    t_idx = jax.lax.broadcasted_iota(jnp.int32, (Bb, T), 1)  # time index per lane

    # input_layer: CausalConv1d(1 -> C, k=1) == per-channel scalar scale + bias
    out = [in_w_ref[c] * x + in_b_ref[c] for c in range(C)]  # C x (Bb, T)

    acc = None  # fused linear_mix accumulator
    for i, d in enumerate(DILATIONS):
        xi = out
        # causal dilated shift: x_sh[c][:, t] = xi[c][:, t - d]  (zeros for t < d)
        head = t_idx < d
        x_sh = [jnp.where(head, 0.0, pltpu.roll(xi[c], shift=d, axis=1))
                for c in range(C)]

        # hidden CausalConv1d(C -> 2C, k=2, dilation=d) as scalar-broadcast FMAs,
        # split into tanh / sigmoid halves.
        gated = []
        for o in range(C):
            pre_t = None
            pre_s = None
            for c in range(C):
                kt = ((i * IC + o) * C + c) * K          # tanh-half weight, taps (0,1)
                ks = ((i * IC + C + o) * C + c) * K      # sigmoid-half weight
                term_t = hw_ref[kt] * x_sh[c] + hw_ref[kt + 1] * xi[c]
                term_s = hw_ref[ks] * x_sh[c] + hw_ref[ks + 1] * xi[c]
                pre_t = term_t if pre_t is None else pre_t + term_t
                pre_s = term_s if pre_s is None else pre_s + term_s
            pre_t = pre_t + hb_ref[i * IC + o]
            pre_s = pre_s + hb_ref[i * IC + C + o]
            gated.append(jnp.tanh(pre_t) * jax.nn.sigmoid(pre_s))

        # fused linear_mix (replaces skips list + concatenate + final reduce)
        for c in range(C):
            contrib = mix_w_ref[i * C + c] * gated[c]
            acc = contrib if acc is None else acc + contrib

        # residual CausalConv1d(C -> C, k=1) + skip connection
        new_out = []
        for o in range(C):
            r = xi[o] + rb_ref[i * C + o]
            for c in range(C):
                r = r + rw_ref[(i * C + o) * C + c] * gated[c]
            new_out.append(r)
        out = new_out

    o_ref[...] = (acc + mix_b_ref[0]).astype(o_ref.dtype)


# ---- wrapper ----------------------------------------------------------------
def _pack_params(params):
    """Flatten PyTorch-shaped weights to 1-D arrays for SMEM scalar reads."""
    in_w, in_b, hw, hb, rw, rb, mix_w, mix_b = params
    return (in_w.reshape(-1), in_b.reshape(-1),
            hw.reshape(-1), hb.reshape(-1),
            rw.reshape(-1), rb.reshape(-1),
            mix_w.reshape(-1), mix_b.reshape(-1))


def wavenet_forward(x, params):
    B, Cin, T = x.shape
    assert Cin == 1
    flat = _pack_params(params)

    # Pack 8 batch rows per grid step when possible (fills all 8 sublanes);
    # otherwise take the whole batch in one step (block == full dim is legal).
    block_b = 8 if B % 8 == 0 else B
    x2 = x.reshape(B, T)   # lane-dense 2-D slab: batch on sublanes, time on lanes

    smem = pl.BlockSpec(memory_space=pltpu.MemorySpace.SMEM)
    y2 = pl.pallas_call(
        wavenet_kernel,
        out_shape=jax.ShapeDtypeStruct((B, T), x.dtype),
        grid=(B // block_b,),
        in_specs=[pl.BlockSpec((block_b, T), lambda b: (b, 0))] + [smem] * 8,
        out_specs=pl.BlockSpec((block_b, T), lambda b: (b, 0)),
        compiler_params=pltpu.CompilerParams(
            dimension_semantics=("parallel",)),
    )(x2, *flat)
    return y2.reshape(B, 1, T)


# ---- deterministic parameter init (matches PyTorch layer shapes) ------------
def init_params(key):
    ks = jax.random.split(key, 8)
    scale = 0.3
    C, IC, K, L = NUM_CHANNELS, INTERNAL_CHANNELS, KERNEL_SIZE, NUM_LAYERS
    in_w = scale * jax.random.normal(ks[0], (C, 1, 1), jnp.float32)      # Conv1d(1, C, 1).weight
    in_b = scale * jax.random.normal(ks[1], (C,), jnp.float32)
    hw = scale * jax.random.normal(ks[2], (L, IC, C, K), jnp.float32)    # Conv1d(C, 2C, 2)
    hb = scale * jax.random.normal(ks[3], (L, IC), jnp.float32)
    rw = scale * jax.random.normal(ks[4], (L, C, C, 1), jnp.float32)     # Conv1d(C, C, 1)
    rb = scale * jax.random.normal(ks[5], (L, C), jnp.float32)
    mix_w = scale * jax.random.normal(ks[6], (1, C * L, 1), jnp.float32)  # Conv1d(C*L, 1, 1)
    mix_b = scale * jax.random.normal(ks[7], (1,), jnp.float32)
    return (in_w, in_b, hw, hb, rw, rb, mix_w, mix_b)


# ---- pure-JAX reference (mirrors the PyTorch forward) ------------------------
def wavenet_reference(x, params):
    in_w, in_b, hw, hb, rw, rb, mix_w, mix_b = params
    B, _, T = x.shape
    C = NUM_CHANNELS
    out = in_w[:, 0, 0][None, :, None] * x + in_b[None, :, None]          # (B, C, T)
    skips = []
    for i, d in enumerate(DILATIONS):
        xi = out
        x_sh = jnp.concatenate(
            [jnp.zeros((B, C, d), x.dtype), xi[:, :, : T - d]], axis=2)
        hidden = (jnp.einsum('oc,bct->bot', hw[i, :, :, 0], x_sh)
                  + jnp.einsum('oc,bct->bot', hw[i, :, :, 1], xi)
                  + hb[i][None, :, None])
        gated = jnp.tanh(hidden[:, :C]) * jax.nn.sigmoid(hidden[:, C:])
        skips.append(gated)
        out = (jnp.einsum('oc,bct->bot', rw[i, :, :, 0], gated)
               + rb[i][None, :, None] + xi)
    cat = jnp.concatenate(skips, axis=1)                                   # (B, C*L, T)
    return jnp.einsum('oc,bct->bot', mix_w[:, :, 0], cat) + mix_b[None, :, None]


if __name__ == "__main__":
    key = jax.random.PRNGKey(0)
    k_x, k_p = jax.random.split(key)

    B, T = 16, 256   # 2 parallel grid steps of 8 batch rows x 256 lane-dense samples
    x = jax.random.normal(k_x, (B, 1, T), jnp.float32)   # (batch, 1, time), NCW
    params = init_params(k_p)

    y = jax.block_until_ready(wavenet_forward(x, params))
    y_ref = wavenet_reference(x, params)

    assert y.shape == (B, 1, T)
    assert jnp.allclose(y, y_ref, rtol=1e-2, atol=1e-3), "mismatch vs reference"

    print("KERNEL_OK")
</pallas_src>

<mosaic_0001>
module attributes {stable_mosaic.version = 11 : i64} {
  func.func @wavenet_kernel(%arg0: i32, %arg1: memref<8x256xf32, #tpu.memory_space<vmem>>, %arg2: memref<3xf32, #tpu.memory_space<smem>>, %arg3: memref<3xf32, #tpu.memory_space<smem>>, %arg4: memref<144xf32, #tpu.memory_space<smem>>, %arg5: memref<24xf32, #tpu.memory_space<smem>>, %arg6: memref<36xf32, #tpu.memory_space<smem>>, %arg7: memref<12xf32, #tpu.memory_space<smem>>, %arg8: memref<12xf32, #tpu.memory_space<smem>>, %arg9: memref<1xf32, #tpu.memory_space<smem>>, %arg10: memref<8x256xf32, #tpu.memory_space<vmem>>) attributes {dimension_semantics = [#tpu.dimension_semantics<parallel>], iteration_bounds = array<i64: 2>, scalar_prefetch = 0 : i64, scratch_operands = 0 : i64, tpu.core_type = #tpu.core_type<tc>, window_params = [{transform_indices = @transform_0, window_bounds = array<i64: 8, 256>}, {transform_indices = @transform_1, window_bounds = array<i64: 3>}, {transform_indices = @transform_2, window_bounds = array<i64: 3>}, {transform_indices = @transform_3, window_bounds = array<i64: 144>}, {transform_indices = @transform_4, window_bounds = array<i64: 24>}, {transform_indices = @transform_5, window_bounds = array<i64: 36>}, {transform_indices = @transform_6, window_bounds = array<i64: 12>}, {transform_indices = @transform_7, window_bounds = array<i64: 12>}, {transform_indices = @transform_8, window_bounds = array<i64: 1>}, {transform_indices = @transform_9, window_bounds = array<i64: 8, 256>}]} {
    %c0 = arith.constant 0 : index
    %c0_0 = arith.constant 0 : index
    %0 = vector.load %arg1[%c0, %c0_0] : memref<8x256xf32, #tpu.memory_space<vmem>>, vector<8x256xf32>
    %1 = tpu.iota {dimensions = array<i32: 1>} : vector<8x256xi32>
    %c0_1 = arith.constant 0 : index
    %2 = memref.load %arg2[%c0_1] : memref<3xf32, #tpu.memory_space<smem>>
    %3 = vector.broadcast %2 : f32 to vector<8x256xf32>
    %4 = arith.mulf %3, %0 : vector<8x256xf32>
    %c0_2 = arith.constant 0 : index
    %5 = memref.load %arg3[%c0_2] : memref<3xf32, #tpu.memory_space<smem>>
    %6 = vector.broadcast %5 : f32 to vector<8x256xf32>
    %7 = arith.addf %4, %6 : vector<8x256xf32>
    %c1 = arith.constant 1 : index
    %8 = memref.load %arg2[%c1] : memref<3xf32, #tpu.memory_space<smem>>
    %9 = vector.broadcast %8 : f32 to vector<8x256xf32>
    %10 = arith.mulf %9, %0 : vector<8x256xf32>
    %c1_3 = arith.constant 1 : index
    %11 = memref.load %arg3[%c1_3] : memref<3xf32, #tpu.memory_space<smem>>
    %12 = vector.broadcast %11 : f32 to vector<8x256xf32>
    %13 = arith.addf %10, %12 : vector<8x256xf32>
    %c2 = arith.constant 2 : index
    %14 = memref.load %arg2[%c2] : memref<3xf32, #tpu.memory_space<smem>>
    %15 = vector.broadcast %14 : f32 to vector<8x256xf32>
    %16 = arith.mulf %15, %0 : vector<8x256xf32>
    %c2_4 = arith.constant 2 : index
    %17 = memref.load %arg3[%c2_4] : memref<3xf32, #tpu.memory_space<smem>>
    %18 = vector.broadcast %17 : f32 to vector<8x256xf32>
    %19 = arith.addf %16, %18 : vector<8x256xf32>
    %c1_i32 = arith.constant 1 : i32
    %20 = vector.broadcast %c1_i32 : i32 to vector<8x256xi32>
    %21 = arith.cmpi slt, %1, %20 : vector<8x256xi32>
    %c1_i32_5 = arith.constant 1 : i32
    %22 = tpu.dynamic_rotate %7 by %c1_i32_5 dim 1 : vector<8x256xf32>, i32 -> vector<8x256xf32>
    %cst = arith.constant 0.000000e+00 : f32
    %23 = vector.broadcast %cst : f32 to vector<8x256xf32>
    %24 = arith.select %21, %23, %22 : vector<8x256xi1>, vector<8x256xf32>
    %c1_i32_6 = arith.constant 1 : i32
    %25 = tpu.dynamic_rotate %13 by %c1_i32_6 dim 1 : vector<8x256xf32>, i32 -> vector<8x256xf32>
    %cst_7 = arith.constant 0.000000e+00 : f32
    %26 = vector.broadcast %cst_7 : f32 to vector<8x256xf32>
    %27 = arith.select %21, %26, %25 : vector<8x256xi1>, vector<8x256xf32>
    %c1_i32_8 = arith.constant 1 : i32
    %28 = tpu.dynamic_rotate %19 by %c1_i32_8 dim 1 : vector<8x256xf32>, i32 -> vector<8x256xf32>
    %cst_9 = arith.constant 0.000000e+00 : f32
    %29 = vector.broadcast %cst_9 : f32 to vector<8x256xf32>
    %30 = arith.select %21, %29, %28 : vector<8x256xi1>, vector<8x256xf32>
    %c0_10 = arith.constant 0 : index
    %31 = memref.load %arg4[%c0_10] : memref<144xf32, #tpu.memory_space<smem>>
    %32 = vector.broadcast %31 : f32 to vector<8x256xf32>
    %33 = arith.mulf %32, %24 : vector<8x256xf32>
    %c1_11 = arith.constant 1 : index
    %34 = memref.load %arg4[%c1_11] : memref<144xf32, #tpu.memory_space<smem>>
    %35 = vector.broadcast %34 : f32 to vector<8x256xf32>
    %36 = arith.mulf %35, %7 : vector<8x256xf32>
    %37 = arith.addf %33, %36 : vector<8x256xf32>
    %c18 = arith.constant 18 : index
    %38 = memref.load %arg4[%c18] : memref<144xf32, #tpu.memory_space<smem>>
    %39 = vector.broadcast %38 : f32 to vector<8x256xf32>
    %40 = arith.mulf %39, %24 : vector<8x256xf32>
    %c19 = arith.constant 19 : index
    %41 = memref.load %arg4[%c19] : memref<144xf32, #tpu.memory_space<smem>>
    %42 = vector.broadcast %41 : f32 to vector<8x256xf32>
    %43 = arith.mulf %42, %7 : vector<8x256xf32>
    %44 = arith.addf %40, %43 : vector<8x256xf32>
    %c2_12 = arith.constant 2 : index
    %45 = memref.load %arg4[%c2_12] : memref<144xf32, #tpu.memory_space<smem>>
    %46 = vector.broadcast %45 : f32 to vector<8x256xf32>
    %47 = arith.mulf %46, %27 : vector<8x256xf32>
    %c3 = arith.constant 3 : index
    %48 = memref.load %arg4[%c3] : memref<144xf32, #tpu.memory_space<smem>>
    %49 = vector.broadcast %48 : f32 to vector<8x256xf32>
    %50 = arith.mulf %49, %13 : vector<8x256xf32>
    %51 = arith.addf %47, %50 : vector<8x256xf32>
    %c20 = arith.constant 20 : index
    %52 = memref.load %arg4[%c20] : memref<144xf32, #tpu.memory_space<smem>>
    %53 = vector.broadcast %52 : f32 to vector<8x256xf32>
    %54 = arith.mulf %53, %27 : vector<8x256xf32>
    %c21 = arith.constant 21 : index
    %55 = memref.load %arg4[%c21] : memref<144xf32, #tpu.memory_space<smem>>
    %56 = vector.broadcast %55 : f32 to vector<8x256xf32>
    %57 = arith.mulf %56, %13 : vector<8x256xf32>
    %58 = arith.addf %54, %57 : vector<8x256xf32>
    %59 = arith.addf %37, %51 : vector<8x256xf32>
    %60 = arith.addf %44, %58 : vector<8x256xf32>
    %c4 = arith.constant 4 : index
    %61 = memref.load %arg4[%c4] : memref<144xf32, #tpu.memory_space<smem>>
    %62 = vector.broadcast %61 : f32 to vector<8x256xf32>
    %63 = arith.mulf %62, %30 : vector<8x256xf32>
    %c5 = arith.constant 5 : index
    %64 = memref.load %arg4[%c5] : memref<144xf32, #tpu.memory_space<smem>>
    %65 = vector.broadcast %64 : f32 to vector<8x256xf32>
    %66 = arith.mulf %65, %19 : vector<8x256xf32>
    %67 = arith.addf %63, %66 : vector<8x256xf32>
    %c22 = arith.constant 22 : index
    %68 = memref.load %arg4[%c22] : memref<144xf32, #tpu.memory_space<smem>>
    %69 = vector.broadcast %68 : f32 to vector<8x256xf32>
    %70 = arith.mulf %69, %30 : vector<8x256xf32>
    %c23 = arith.constant 23 : index
    %71 = memref.load %arg4[%c23] : memref<144xf32, #tpu.memory_space<smem>>
    %72 = vector.broadcast %71 : f32 to vector<8x256xf32>
    %73 = arith.mulf %72, %19 : vector<8x256xf32>
    %74 = arith.addf %70, %73 : vector<8x256xf32>
    %75 = arith.addf %59, %67 : vector<8x256xf32>
    %76 = arith.addf %60, %74 : vector<8x256xf32>
    %c0_13 = arith.constant 0 : index
    %77 = memref.load %arg5[%c0_13] : memref<24xf32, #tpu.memory_space<smem>>
    %78 = vector.broadcast %77 : f32 to vector<8x256xf32>
    %79 = arith.addf %75, %78 : vector<8x256xf32>
    %c3_14 = arith.constant 3 : index
    %80 = memref.load %arg5[%c3_14] : memref<24xf32, #tpu.memory_space<smem>>
    %81 = vector.broadcast %80 : f32 to vector<8x256xf32>
    %82 = arith.addf %76, %81 : vector<8x256xf32>
    %83 = math.tanh %79 : vector<8x256xf32>
    %84 = arith.negf %82 : vector<8x256xf32>
    %85 = math.exp %84 : vector<8x256xf32>
    %cst_15 = arith.constant 1.000000e+00 : f32
    %86 = vector.broadcast %cst_15 : f32 to vector<8x256xf32>
    %87 = arith.addf %86, %85 : vector<8x256xf32>
    %88 = arith.divf %86, %87 : vector<8x256xf32>
    %89 = arith.mulf %83, %88 : vector<8x256xf32>
    %c6 = arith.constant 6 : index
    %90 = memref.load %arg4[%c6] : memref<144xf32, #tpu.memory_space<smem>>
    %91 = vector.broadcast %90 : f32 to vector<8x256xf32>
    %92 = arith.mulf %91, %24 : vector<8x256xf32>
    %c7 = arith.constant 7 : index
    %93 = memref.load %arg4[%c7] : memref<144xf32, #tpu.memory_space<smem>>
    %94 = vector.broadcast %93 : f32 to vector<8x256xf32>
    %95 = arith.mulf %94, %7 : vector<8x256xf32>
    %96 = arith.addf %92, %95 : vector<8x256xf32>
    %c24 = arith.constant 24 : index
    %97 = memref.load %arg4[%c24] : memref<144xf32, #tpu.memory_space<smem>>
    %98 = vector.broadcast %97 : f32 to vector<8x256xf32>
    %99 = arith.mulf %98, %24 : vector<8x256xf32>
    %c25 = arith.constant 25 : index
    %100 = memref.load %arg4[%c25] : memref<144xf32, #tpu.memory_space<smem>>
    %101 = vector.broadcast %100 : f32 to vector<8x256xf32>
    %102 = arith.mulf %101, %7 : vector<8x256xf32>
    %103 = arith.addf %99, %102 : vector<8x256xf32>
    %c8 = arith.constant 8 : index
    %104 = memref.load %arg4[%c8] : memref<144xf32, #tpu.memory_space<smem>>
    %105 = vector.broadcast %104 : f32 to vector<8x256xf32>
    %106 = arith.mulf %105, %27 : vector<8x256xf32>
    %c9 = arith.constant 9 : index
    %107 = memref.load %arg4[%c9] : memref<144xf32, #tpu.memory_space<smem>>
    %108 = vector.broadcast %107 : f32 to vector<8x256xf32>
    %109 = arith.mulf %108, %13 : vector<8x256xf32>
    %110 = arith.addf %106, %109 : vector<8x256xf32>
    %c26 = arith.constant 26 : index
    %111 = memref.load %arg4[%c26] : memref<144xf32, #tpu.memory_space<smem>>
    %112 = vector.broadcast %111 : f32 to vector<8x256xf32>
    %113 = arith.mulf %112, %27 : vector<8x256xf32>
    %c27 = arith.constant 27 : index
    %114 = memref.load %arg4[%c27] : memref<144xf32, #tpu.memory_space<smem>>
    %115 = vector.broadcast %114 : f32 to vector<8x256xf32>
    %116 = arith.mulf %115, %13 : vector<8x256xf32>
    %117 = arith.addf %113, %116 : vector<8x256xf32>
    %118 = arith.addf %96, %110 : vector<8x256xf32>
    %119 = arith.addf %103, %117 : vector<8x256xf32>
    %c10 = arith.constant 10 : index
    %120 = memref.load %arg4[%c10] : memref<144xf32, #tpu.memory_space<smem>>
    %121 = vector.broadcast %120 : f32 to vector<8x256xf32>
    %122 = arith.mulf %121, %30 : vector<8x256xf32>
    %c11 = arith.constant 11 : index
    %123 = memref.load %arg4[%c11] : memref<144xf32, #tpu.memory_space<smem>>
    %124 = vector.broadcast %123 : f32 to vector<8x256xf32>
    %125 = arith.mulf %124, %19 : vector<8x256xf32>
    %126 = arith.addf %122, %125 : vector<8x256xf32>
    %c28 = arith.constant 28 : index
    %127 = memref.load %arg4[%c28] : memref<144xf32, #tpu.memory_space<smem>>
    %128 = vector.broadcast %127 : f32 to vector<8x256xf32>
    %129 = arith.mulf %128, %30 : vector<8x256xf32>
    %c29 = arith.constant 29 : index
    %130 = memref.load %arg4[%c29] : memref<144xf32, #tpu.memory_space<smem>>
    %131 = vector.broadcast %130 : f32 to vector<8x256xf32>
    %132 = arith.mulf %131, %19 : vector<8x256xf32>
    %133 = arith.addf %129, %132 : vector<8x256xf32>
    %134 = arith.addf %118, %126 : vector<8x256xf32>
    %135 = arith.addf %119, %133 : vector<8x256xf32>
    %c1_16 = arith.constant 1 : index
    %136 = memref.load %arg5[%c1_16] : memref<24xf32, #tpu.memory_space<smem>>
    %137 = vector.broadcast %136 : f32 to vector<8x256xf32>
    %138 = arith.addf %134, %137 : vector<8x256xf32>
    %c4_17 = arith.constant 4 : index
    %139 = memref.load %arg5[%c4_17] : memref<24xf32, #tpu.memory_space<smem>>
    %140 = vector.broadcast %139 : f32 to vector<8x256xf32>
    %141 = arith.addf %135, %140 : vector<8x256xf32>
    %142 = math.tanh %138 : vector<8x256xf32>
    %143 = arith.negf %141 : vector<8x256xf32>
    %144 = math.exp %143 : vector<8x256xf32>
    %cst_18 = arith.constant 1.000000e+00 : f32
    %145 = vector.broadcast %cst_18 : f32 to vector<8x256xf32>
    %146 = arith.addf %145, %144 : vector<8x256xf32>
    %147 = arith.divf %145, %146 : vector<8x256xf32>
    %148 = arith.mulf %142, %147 : vector<8x256xf32>
    %c12 = arith.constant 12 : index
    %149 = memref.load %arg4[%c12] : memref<144xf32, #tpu.memory_space<smem>>
    %150 = vector.broadcast %149 : f32 to vector<8x256xf32>
    %151 = arith.mulf %150, %24 : vector<8x256xf32>
    %c13 = arith.constant 13 : index
    %152 = memref.load %arg4[%c13] : memref<144xf32, #tpu.memory_space<smem>>
    %153 = vector.broadcast %152 : f32 to vector<8x256xf32>
    %154 = arith.mulf %153, %7 : vector<8x256xf32>
    %155 = arith.addf %151, %154 : vector<8x256xf32>
    %c30 = arith.constant 30 : index
    %156 = memref.load %arg4[%c30] : memref<144xf32, #tpu.memory_space<smem>>
    %157 = vector.broadcast %156 : f32 to vector<8x256xf32>
    %158 = arith.mulf %157, %24 : vector<8x256xf32>
    %c31 = arith.constant 31 : index
    %159 = memref.load %arg4[%c31] : memref<144xf32, #tpu.memory_space<smem>>
    %160 = vector.broadcast %159 : f32 to vector<8x256xf32>
    %161 = arith.mulf %160, %7 : vector<8x256xf32>
    %162 = arith.addf %158, %161 : vector<8x256xf32>
    %c14 = arith.constant 14 : index
    %163 = memref.load %arg4[%c14] : memref<144xf32, #tpu.memory_space<smem>>
    %164 = vector.broadcast %163 : f32 to vector<8x256xf32>
    %165 = arith.mulf %164, %27 : vector<8x256xf32>
    %c15 = arith.constant 15 : index
    %166 = memref.load %arg4[%c15] : memref<144xf32, #tpu.memory_space<smem>>
    %167 = vector.broadcast %166 : f32 to vector<8x256xf32>
    %168 = arith.mulf %167, %13 : vector<8x256xf32>
    %169 = arith.addf %165, %168 : vector<8x256xf32>
    %c32 = arith.constant 32 : index
    %170 = memref.load %arg4[%c32] : memref<144xf32, #tpu.memory_space<smem>>
    %171 = vector.broadcast %170 : f32 to vector<8x256xf32>
    %172 = arith.mulf %171, %27 : vector<8x256xf32>
    %c33 = arith.constant 33 : index
    %173 = memref.load %arg4[%c33] : memref<144xf32, #tpu.memory_space<smem>>
    %174 = vector.broadcast %173 : f32 to vector<8x256xf32>
    %175 = arith.mulf %174, %13 : vector<8x256xf32>
    %176 = arith.addf %172, %175 : vector<8x256xf32>
    %177 = arith.addf %155, %169 : vector<8x256xf32>
    %178 = arith.addf %162, %176 : vector<8x256xf32>
    %c16 = arith.constant 16 : index
    %179 = memref.load %arg4[%c16] : memref<144xf32, #tpu.memory_space<smem>>
    %180 = vector.broadcast %179 : f32 to vector<8x256xf32>
    %181 = arith.mulf %180, %30 : vector<8x256xf32>
    %c17 = arith.constant 17 : index
    %182 = memref.load %arg4[%c17] : memref<144xf32, #tpu.memory_space<smem>>
    %183 = vector.broadcast %182 : f32 to vector<8x256xf32>
    %184 = arith.mulf %183, %19 : vector<8x256xf32>
    %185 = arith.addf %181, %184 : vector<8x256xf32>
    %c34 = arith.constant 34 : index
    %186 = memref.load %arg4[%c34] : memref<144xf32, #tpu.memory_space<smem>>
    %187 = vector.broadcast %186 : f32 to vector<8x256xf32>
    %188 = arith.mulf %187, %30 : vector<8x256xf32>
    %c35 = arith.constant 35 : index
    %189 = memref.load %arg4[%c35] : memref<144xf32, #tpu.memory_space<smem>>
    %190 = vector.broadcast %189 : f32 to vector<8x256xf32>
    %191 = arith.mulf %190, %19 : vector<8x256xf32>
    %192 = arith.addf %188, %191 : vector<8x256xf32>
    %193 = arith.addf %177, %185 : vector<8x256xf32>
    %194 = arith.addf %178, %192 : vector<8x256xf32>
    %c2_19 = arith.constant 2 : index
    %195 = memref.load %arg5[%c2_19] : memref<24xf32, #tpu.memory_space<smem>>
    %196 = vector.broadcast %195 : f32 to vector<8x256xf32>
    %197 = arith.addf %193, %196 : vector<8x256xf32>
    %c5_20 = arith.constant 5 : index
    %198 = memref.load %arg5[%c5_20] : memref<24xf32, #tpu.memory_space<smem>>
    %199 = vector.broadcast %198 : f32 to vector<8x256xf32>
    %200 = arith.addf %194, %199 : vector<8x256xf32>
    %201 = math.tanh %197 : vector<8x256xf32>
    %202 = arith.negf %200 : vector<8x256xf32>
    %203 = math.exp %202 : vector<8x256xf32>
    %cst_21 = arith.constant 1.000000e+00 : f32
    %204 = vector.broadcast %cst_21 : f32 to vector<8x256xf32>
    %205 = arith.addf %204, %203 : vector<8x256xf32>
    %206 = arith.divf %204, %205 : vector<8x256xf32>
    %207 = arith.mulf %201, %206 : vector<8x256xf32>
    %c0_22 = arith.constant 0 : index
    %208 = memref.load %arg8[%c0_22] : memref<12xf32, #tpu.memory_space<smem>>
    %209 = vector.broadcast %208 : f32 to vector<8x256xf32>
    %210 = arith.mulf %209, %89 : vector<8x256xf32>
    %c1_23 = arith.constant 1 : index
    %211 = memref.load %arg8[%c1_23] : memref<12xf32, #tpu.memory_space<smem>>
    %212 = vector.broadcast %211 : f32 to vector<8x256xf32>
    %213 = arith.mulf %212, %148 : vector<8x256xf32>
    %214 = arith.addf %210, %213 : vector<8x256xf32>
    %c2_24 = arith.constant 2 : index
    %215 = memref.load %arg8[%c2_24] : memref<12xf32, #tpu.memory_space<smem>>
    %216 = vector.broadcast %215 : f32 to vector<8x256xf32>
    %217 = arith.mulf %216, %207 : vector<8x256xf32>
    %218 = arith.addf %214, %217 : vector<8x256xf32>
    %c0_25 = arith.constant 0 : index
    %219 = memref.load %arg7[%c0_25] : memref<12xf32, #tpu.memory_space<smem>>
    %220 = vector.broadcast %219 : f32 to vector<8x256xf32>
    %221 = arith.addf %7, %220 : vector<8x256xf32>
    %c0_26 = arith.constant 0 : index
    %222 = memref.load %arg6[%c0_26] : memref<36xf32, #tpu.memory_space<smem>>
    %223 = vector.broadcast %222 : f32 to vector<8x256xf32>
    %224 = arith.mulf %223, %89 : vector<8x256xf32>
    %225 = arith.addf %221, %224 : vector<8x256xf32>
    %c1_27 = arith.constant 1 : index
    %226 = memref.load %arg6[%c1_27] : memref<36xf32, #tpu.memory_space<smem>>
    %227 = vector.broadcast %226 : f32 to vector<8x256xf32>
    %228 = arith.mulf %227, %148 : vector<8x256xf32>
    %229 = arith.addf %225, %228 : vector<8x256xf32>
    %c2_28 = arith.constant 2 : index
    %230 = memref.load %arg6[%c2_28] : memref<36xf32, #tpu.memory_space<smem>>
    %231 = vector.broadcast %230 : f32 to vector<8x256xf32>
    %232 = arith.mulf %231, %207 : vector<8x256xf32>
    %233 = arith.addf %229, %232 : vector<8x256xf32>
    %c1_29 = arith.constant 1 : index
    %234 = memref.load %arg7[%c1_29] : memref<12xf32, #tpu.memory_space<smem>>
    %235 = vector.broadcast %234 : f32 to vector<8x256xf32>
    %236 = arith.addf %13, %235 : vector<8x256xf32>
    %c3_30 = arith.constant 3 : index
    %237 = memref.load %arg6[%c3_30] : memref<36xf32, #tpu.memory_space<smem>>
    %238 = vector.broadcast %237 : f32 to vector<8x256xf32>
    %239 = arith.mulf %238, %89 : vector<8x256xf32>
    %240 = arith.addf %236, %239 : vector<8x256xf32>
    %c4_31 = arith.constant 4 : index
    %241 = memref.load %arg6[%c4_31] : memref<36xf32, #tpu.memory_space<smem>>
    %242 = vector.broadcast %241 : f32 to vector<8x256xf32>
    %243 = arith.mulf %242, %148 : vector<8x256xf32>
    %244 = arith.addf %240, %243 : vector<8x256xf32>
    %c5_32 = arith.constant 5 : index
    %245 = memref.load %arg6[%c5_32] : memref<36xf32, #tpu.memory_space<smem>>
    %246 = vector.broadcast %245 : f32 to vector<8x256xf32>
    %247 = arith.mulf %246, %207 : vector<8x256xf32>
    %248 = arith.addf %244, %247 : vector<8x256xf32>
    %c2_33 = arith.constant 2 : index
    %249 = memref.load %arg7[%c2_33] : memref<12xf32, #tpu.memory_space<smem>>
    %250 = vector.broadcast %249 : f32 to vector<8x256xf32>
    %251 = arith.addf %19, %250 : vector<8x256xf32>
    %c6_34 = arith.constant 6 : index
    %252 = memref.load %arg6[%c6_34] : memref<36xf32, #tpu.memory_space<smem>>
    %253 = vector.broadcast %252 : f32 to vector<8x256xf32>
    %254 = arith.mulf %253, %89 : vector<8x256xf32>
    %255 = arith.addf %251, %254 : vector<8x256xf32>
    %c7_35 = arith.constant 7 : index
    %256 = memref.load %arg6[%c7_35] : memref<36xf32, #tpu.memory_space<smem>>
    %257 = vector.broadcast %256 : f32 to vector<8x256xf32>
    %258 = arith.mulf %257, %148 : vector<8x256xf32>
    %259 = arith.addf %255, %258 : vector<8x256xf32>
    %c8_36 = arith.constant 8 : index
    %260 = memref.load %arg6[%c8_36] : memref<36xf32, #tpu.memory_space<smem>>
    %261 = vector.broadcast %260 : f32 to vector<8x256xf32>
    %262 = arith.mulf %261, %207 : vector<8x256xf32>
    %263 = arith.addf %259, %262 : vector<8x256xf32>
    %c2_i32 = arith.constant 2 : i32
    %264 = vector.broadcast %c2_i32 : i32 to vector<8x256xi32>
    %265 = arith.cmpi slt, %1, %264 : vector<8x256xi32>
    %c2_i32_37 = arith.constant 2 : i32
    %266 = tpu.dynamic_rotate %233 by %c2_i32_37 dim 1 : vector<8x256xf32>, i32 -> vector<8x256xf32>
    %cst_38 = arith.constant 0.000000e+00 : f32
    %267 = vector.broadcast %cst_38 : f32 to vector<8x256xf32>
    %268 = arith.select %265, %267, %266 : vector<8x256xi1>, vector<8x256xf32>
    %c2_i32_39 = arith.constant 2 : i32
    %269 = tpu.dynamic_rotate %248 by %c2_i32_39 dim 1 : vector<8x256xf32>, i32 -> vector<8x256xf32>
    %cst_40 = arith.constant 0.000000e+00 : f32
    %270 = vector.broadcast %cst_40 : f32 to vector<8x256xf32>
    %271 = arith.select %265, %270, %269 : vector<8x256xi1>, vector<8x256xf32>
    %c2_i32_41 = arith.constant 2 : i32
    %272 = tpu.dynamic_rotate %263 by %c2_i32_41 dim 1 : vector<8x256xf32>, i32 -> vector<8x256xf32>
    %cst_42 = arith.constant 0.000000e+00 : f32
    %273 = vector.broadcast %cst_42 : f32 to vector<8x256xf32>
    %274 = arith.select %265, %273, %272 : vector<8x256xi1>, vector<8x256xf32>
    %c36 = arith.constant 36 : index
    %275 = memref.load %arg4[%c36] : memref<144xf32, #tpu.memory_space<smem>>
    %276 = vector.broadcast %275 : f32 to vector<8x256xf32>
    %277 = arith.mulf %276, %268 : vector<8x256xf32>
    %c37 = arith.constant 37 : index
    %278 = memref.load %arg4[%c37] : memref<144xf32, #tpu.memory_space<smem>>
    %279 = vector.broadcast %278 : f32 to vector<8x256xf32>
    %280 = arith.mulf %279, %233 : vector<8x256xf32>
    %281 = arith.addf %277, %280 : vector<8x256xf32>
    %c54 = arith.constant 54 : index
    %282 = memref.load %arg4[%c54] : memref<144xf32, #tpu.memory_space<smem>>
    %283 = vector.broadcast %282 : f32 to vector<8x256xf32>
    %284 = arith.mulf %283, %268 : vector<8x256xf32>
    %c55 = arith.constant 55 : index
    %285 = memref.load %arg4[%c55] : memref<144xf32, #tpu.memory_space<smem>>
    %286 = vector.broadcast %285 : f32 to vector<8x256xf32>
    %287 = arith.mulf %286, %233 : vector<8x256xf32>
    %288 = arith.addf %284, %287 : vector<8x256xf32>
    %c38 = arith.constant 38 : index
    %289 = memref.load %arg4[%c38] : memref<144xf32, #tpu.memory_space<smem>>
    %290 = vector.broadcast %289 : f32 to vector<8x256xf32>
    %291 = arith.mulf %290, %271 : vector<8x256xf32>
    %c39 = arith.constant 39 : index
    %292 = memref.load %arg4[%c39] : memref<144xf32, #tpu.memory_space<smem>>
    %293 = vector.broadcast %292 : f32 to vector<8x256xf32>
    %294 = arith.mulf %293, %248 : vector<8x256xf32>
    %295 = arith.addf %291, %294 : vector<8x256xf32>
    %c56 = arith.constant 56 : index
    %296 = memref.load %arg4[%c56] : memref<144xf32, #tpu.memory_space<smem>>
    %297 = vector.broadcast %296 : f32 to vector<8x256xf32>
    %298 = arith.mulf %297, %271 : vector<8x256xf32>
    %c57 = arith.constant 57 : index
    %299 = memref.load %arg4[%c57] : memref<144xf32, #tpu.memory_space<smem>>
    %300 = vector.broadcast %299 : f32 to vector<8x256xf32>
    %301 = arith.mulf %300, %248 : vector<8x256xf32>
    %302 = arith.addf %298, %301 : vector<8x256xf32>
    %303 = arith.addf %281, %295 : vector<8x256xf32>
    %304 = arith.addf %288, %302 : vector<8x256xf32>
    %c40 = arith.constant 40 : index
    %305 = memref.load %arg4[%c40] : memref<144xf32, #tpu.memory_space<smem>>
    %306 = vector.broadcast %305 : f32 to vector<8x256xf32>
    %307 = arith.mulf %306, %274 : vector<8x256xf32>
    %c41 = arith.constant 41 : index
    %308 = memref.load %arg4[%c41] : memref<144xf32, #tpu.memory_space<smem>>
    %309 = vector.broadcast %308 : f32 to vector<8x256xf32>
    %310 = arith.mulf %309, %263 : vector<8x256xf32>
    %311 = arith.addf %307, %310 : vector<8x256xf32>
    %c58 = arith.constant 58 : index
    %312 = memref.load %arg4[%c58] : memref<144xf32, #tpu.memory_space<smem>>
    %313 = vector.broadcast %312 : f32 to vector<8x256xf32>
    %314 = arith.mulf %313, %274 : vector<8x256xf32>
    %c59 = arith.constant 59 : index
    %315 = memref.load %arg4[%c59] : memref<144xf32, #tpu.memory_space<smem>>
    %316 = vector.broadcast %315 : f32 to vector<8x256xf32>
    %317 = arith.mulf %316, %263 : vector<8x256xf32>
    %318 = arith.addf %314, %317 : vector<8x256xf32>
    %319 = arith.addf %303, %311 : vector<8x256xf32>
    %320 = arith.addf %304, %318 : vector<8x256xf32>
    %c6_43 = arith.constant 6 : index
    %321 = memref.load %arg5[%c6_43] : memref<24xf32, #tpu.memory_space<smem>>
    %322 = vector.broadcast %321 : f32 to vector<8x256xf32>
    %323 = arith.addf %319, %322 : vector<8x256xf32>
    %c9_44 = arith.constant 9 : index
    %324 = memref.load %arg5[%c9_44] : memref<24xf32, #tpu.memory_space<smem>>
    %325 = vector.broadcast %324 : f32 to vector<8x256xf32>
    %326 = arith.addf %320, %325 : vector<8x256xf32>
    %327 = math.tanh %323 : vector<8x256xf32>
    %328 = arith.negf %326 : vector<8x256xf32>
    %329 = math.exp %328 : vector<8x256xf32>
    %cst_45 = arith.constant 1.000000e+00 : f32
    %330 = vector.broadcast %cst_45 : f32 to vector<8x256xf32>
    %331 = arith.addf %330, %329 : vector<8x256xf32>
    %332 = arith.divf %330, %331 : vector<8x256xf32>
    %333 = arith.mulf %327, %332 : vector<8x256xf32>
    %c42 = arith.constant 42 : index
    %334 = memref.load %arg4[%c42] : memref<144xf32, #tpu.memory_space<smem>>
    %335 = vector.broadcast %334 : f32 to vector<8x256xf32>
    %336 = arith.mulf %335, %268 : vector<8x256xf32>
    %c43 = arith.constant 43 : index
    %337 = memref.load %arg4[%c43] : memref<144xf32, #tpu.memory_space<smem>>
    %338 = vector.broadcast %337 : f32 to vector<8x256xf32>
    %339 = arith.mulf %338, %233 : vector<8x256xf32>
    %340 = arith.addf %336, %339 : vector<8x256xf32>
    %c60 = arith.constant 60 : index
    %341 = memref.load %arg4[%c60] : memref<144xf32, #tpu.memory_space<smem>>
    %342 = vector.broadcast %341 : f32 to vector<8x256xf32>
    %343 = arith.mulf %342, %268 : vector<8x256xf32>
    %c61 = arith.constant 61 : index
    %344 = memref.load %arg4[%c61] : memref<144xf32, #tpu.memory_space<smem>>
    %345 = vector.broadcast %344 : f32 to vector<8x256xf32>
    %346 = arith.mulf %345, %233 : vector<8x256xf32>
    %347 = arith.addf %343, %346 : vector<8x256xf32>
    %c44 = arith.constant 44 : index
    %348 = memref.load %arg4[%c44] : memref<144xf32, #tpu.memory_space<smem>>
    %349 = vector.broadcast %348 : f32 to vector<8x256xf32>
    %350 = arith.mulf %349, %271 : vector<8x256xf32>
    %c45 = arith.constant 45 : index
    %351 = memref.load %arg4[%c45] : memref<144xf32, #tpu.memory_space<smem>>
    %352 = vector.broadcast %351 : f32 to vector<8x256xf32>
    %353 = arith.mulf %352, %248 : vector<8x256xf32>
    %354 = arith.addf %350, %353 : vector<8x256xf32>
    %c62 = arith.constant 62 : index
    %355 = memref.load %arg4[%c62] : memref<144xf32, #tpu.memory_space<smem>>
    %356 = vector.broadcast %355 : f32 to vector<8x256xf32>
    %357 = arith.mulf %356, %271 : vector<8x256xf32>
    %c63 = arith.constant 63 : index
    %358 = memref.load %arg4[%c63] : memref<144xf32, #tpu.memory_space<smem>>
    %359 = vector.broadcast %358 : f32 to vector<8x256xf32>
    %360 = arith.mulf %359, %248 : vector<8x256xf32>
    %361 = arith.addf %357, %360 : vector<8x256xf32>
    %362 = arith.addf %340, %354 : vector<8x256xf32>
    %363 = arith.addf %347, %361 : vector<8x256xf32>
    %c46 = arith.constant 46 : index
    %364 = memref.load %arg4[%c46] : memref<144xf32, #tpu.memory_space<smem>>
    %365 = vector.broadcast %364 : f32 to vector<8x256xf32>
    %366 = arith.mulf %365, %274 : vector<8x256xf32>
    %c47 = arith.constant 47 : index
    %367 = memref.load %arg4[%c47] : memref<144xf32, #tpu.memory_space<smem>>
    %368 = vector.broadcast %367 : f32 to vector<8x256xf32>
    %369 = arith.mulf %368, %263 : vector<8x256xf32>
    %370 = arith.addf %366, %369 : vector<8x256xf32>
    %c64 = arith.constant 64 : index
    %371 = memref.load %arg4[%c64] : memref<144xf32, #tpu.memory_space<smem>>
    %372 = vector.broadcast %371 : f32 to vector<8x256xf32>
    %373 = arith.mulf %372, %274 : vector<8x256xf32>
    %c65 = arith.constant 65 : index
    %374 = memref.load %arg4[%c65] : memref<144xf32, #tpu.memory_space<smem>>
    %375 = vector.broadcast %374 : f32 to vector<8x256xf32>
    %376 = arith.mulf %375, %263 : vector<8x256xf32>
    %377 = arith.addf %373, %376 : vector<8x256xf32>
    %378 = arith.addf %362, %370 : vector<8x256xf32>
    %379 = arith.addf %363, %377 : vector<8x256xf32>
    %c7_46 = arith.constant 7 : index
    %380 = memref.load %arg5[%c7_46] : memref<24xf32, #tpu.memory_space<smem>>
    %381 = vector.broadcast %380 : f32 to vector<8x256xf32>
    %382 = arith.addf %378, %381 : vector<8x256xf32>
    %c10_47 = arith.constant 10 : index
    %383 = memref.load %arg5[%c10_47] : memref<24xf32, #tpu.memory_space<smem>>
    %384 = vector.broadcast %383 : f32 to vector<8x256xf32>
    %385 = arith.addf %379, %384 : vector<8x256xf32>
    %386 = math.tanh %382 : vector<8x256xf32>
    %387 = arith.negf %385 : vector<8x256xf32>
    %388 = math.exp %387 : vector<8x256xf32>
    %cst_48 = arith.constant 1.000000e+00 : f32
    %389 = vector.broadcast %cst_48 : f32 to vector<8x256xf32>
    %390 = arith.addf %389, %388 : vector<8x256xf32>
    %391 = arith.divf %389, %390 : vector<8x256xf32>
    %392 = arith.mulf %386, %391 : vector<8x256xf32>
    %c48 = arith.constant 48 : index
    %393 = memref.load %arg4[%c48] : memref<144xf32, #tpu.memory_space<smem>>
    %394 = vector.broadcast %393 : f32 to vector<8x256xf32>
    %395 = arith.mulf %394, %268 : vector<8x256xf32>
    %c49 = arith.constant 49 : index
    %396 = memref.load %arg4[%c49] : memref<144xf32, #tpu.memory_space<smem>>
    %397 = vector.broadcast %396 : f32 to vector<8x256xf32>
    %398 = arith.mulf %397, %233 : vector<8x256xf32>
    %399 = arith.addf %395, %398 : vector<8x256xf32>
    %c66 = arith.constant 66 : index
    %400 = memref.load %arg4[%c66] : memref<144xf32, #tpu.memory_space<smem>>
    %401 = vector.broadcast %400 : f32 to vector<8x256xf32>
    %402 = arith.mulf %401, %268 : vector<8x256xf32>
    %c67 = arith.constant 67 : index
    %403 = memref.load %arg4[%c67] : memref<144xf32, #tpu.memory_space<smem>>
    %404 = vector.broadcast %403 : f32 to vector<8x256xf32>
    %405 = arith.mulf %404, %233 : vector<8x256xf32>
    %406 = arith.addf %402, %405 : vector<8x256xf32>
    %c50 = arith.constant 50 : index
    %407 = memref.load %arg4[%c50] : memref<144xf32, #tpu.memory_space<smem>>
    %408 = vector.broadcast %407 : f32 to vector<8x256xf32>
    %409 = arith.mulf %408, %271 : vector<8x256xf32>
    %c51 = arith.constant 51 : index
    %410 = memref.load %arg4[%c51] : memref<144xf32, #tpu.memory_space<smem>>
    %411 = vector.broadcast %410 : f32 to vector<8x256xf32>
    %412 = arith.mulf %411, %248 : vector<8x256xf32>
    %413 = arith.addf %409, %412 : vector<8x256xf32>
    %c68 = arith.constant 68 : index
    %414 = memref.load %arg4[%c68] : memref<144xf32, #tpu.memory_space<smem>>
    %415 = vector.broadcast %414 : f32 to vector<8x256xf32>
    %416 = arith.mulf %415, %271 : vector<8x256xf32>
    %c69 = arith.constant 69 : index
    %417 = memref.load %arg4[%c69] : memref<144xf32, #tpu.memory_space<smem>>
    %418 = vector.broadcast %417 : f32 to vector<8x256xf32>
    %419 = arith.mulf %418, %248 : vector<8x256xf32>
    %420 = arith.addf %416, %419 : vector<8x256xf32>
    %421 = arith.addf %399, %413 : vector<8x256xf32>
    %422 = arith.addf %406, %420 : vector<8x256xf32>
    %c52 = arith.constant 52 : index
    %423 = memref.load %arg4[%c52] : memref<144xf32, #tpu.memory_space<smem>>
    %424 = vector.broadcast %423 : f32 to vector<8x256xf32>
    %425 = arith.mulf %424, %274 : vector<8x256xf32>
    %c53 = arith.constant 53 : index
    %426 = memref.load %arg4[%c53] : memref<144xf32, #tpu.memory_space<smem>>
    %427 = vector.broadcast %426 : f32 to vector<8x256xf32>
    %428 = arith.mulf %427, %263 : vector<8x256xf32>
    %429 = arith.addf %425, %428 : vector<8x256xf32>
    %c70 = arith.constant 70 : index
    %430 = memref.load %arg4[%c70] : memref<144xf32, #tpu.memory_space<smem>>
    %431 = vector.broadcast %430 : f32 to vector<8x256xf32>
    %432 = arith.mulf %431, %274 : vector<8x256xf32>
    %c71 = arith.constant 71 : index
    %433 = memref.load %arg4[%c71] : memref<144xf32, #tpu.memory_space<smem>>
    %434 = vector.broadcast %433 : f32 to vector<8x256xf32>
    %435 = arith.mulf %434, %263 : vector<8x256xf32>
    %436 = arith.addf %432, %435 : vector<8x256xf32>
    %437 = arith.addf %421, %429 : vector<8x256xf32>
    %438 = arith.addf %422, %436 : vector<8x256xf32>
    %c8_49 = arith.constant 8 : index
    %439 = memref.load %arg5[%c8_49] : memref<24xf32, #tpu.memory_space<smem>>
    %440 = vector.broadcast %439 : f32 to vector<8x256xf32>
    %441 = arith.addf %437, %440 : vector<8x256xf32>
    %c11_50 = arith.constant 11 : index
    %442 = memref.load %arg5[%c11_50] : memref<24xf32, #tpu.memory_space<smem>>
    %443 = vector.broadcast %442 : f32 to vector<8x256xf32>
    %444 = arith.addf %438, %443 : vector<8x256xf32>
    %445 = math.tanh %441 : vector<8x256xf32>
    %446 = arith.negf %444 : vector<8x256xf32>
    %447 = math.exp %446 : vector<8x256xf32>
    %cst_51 = arith.constant 1.000000e+00 : f32
    %448 = vector.broadcast %cst_51 : f32 to vector<8x256xf32>
    %449 = arith.addf %448, %447 : vector<8x256xf32>
    %450 = arith.divf %448, %449 : vector<8x256xf32>
    %451 = arith.mulf %445, %450 : vector<8x256xf32>
    %c3_52 = arith.constant 3 : index
    %452 = memref.load %arg8[%c3_52] : memref<12xf32, #tpu.memory_space<smem>>
    %453 = vector.broadcast %452 : f32 to vector<8x256xf32>
    %454 = arith.mulf %453, %333 : vector<8x256xf32>
    %455 = arith.addf %218, %454 : vector<8x256xf32>
    %c4_53 = arith.constant 4 : index
    %456 = memref.load %arg8[%c4_53] : memref<12xf32, #tpu.memory_space<smem>>
    %457 = vector.broadcast %456 : f32 to vector<8x256xf32>
    %458 = arith.mulf %457, %392 : vector<8x256xf32>
    %459 = arith.addf %455, %458 : vector<8x256xf32>
    %c5_54 = arith.constant 5 : index
    %460 = memref.load %arg8[%c5_54] : memref<12xf32, #tpu.memory_space<smem>>
    %461 = vector.broadcast %460 : f32 to vector<8x256xf32>
    %462 = arith.mulf %461, %451 : vector<8x256xf32>
    %463 = arith.addf %459, %462 : vector<8x256xf32>
    %c3_55 = arith.constant 3 : index
    %464 = memref.load %arg7[%c3_55] : memref<12xf32, #tpu.memory_space<smem>>
    %465 = vector.broadcast %464 : f32 to vector<8x256xf32>
    %466 = arith.addf %233, %465 : vector<8x256xf32>
    %c9_56 = arith.constant 9 : index
    %467 = memref.load %arg6[%c9_56] : memref<36xf32, #tpu.memory_space<smem>>
    %468 = vector.broadcast %467 : f32 to vector<8x256xf32>
    %469 = arith.mulf %468, %333 : vector<8x256xf32>
    %470 = arith.addf %466, %469 : vector<8x256xf32>
    %c10_57 = arith.constant 10 : index
    %471 = memref.load %arg6[%c10_57] : memref<36xf32, #tpu.memory_space<smem>>
    %472 = vector.broadcast %471 : f32 to vector<8x256xf32>
    %473 = arith.mulf %472, %392 : vector<8x256xf32>
    %474 = arith.addf %470, %473 : vector<8x256xf32>
    %c11_58 = arith.constant 11 : index
    %475 = memref.load %arg6[%c11_58] : memref<36xf32, #tpu.memory_space<smem>>
    %476 = vector.broadcast %475 : f32 to vector<8x256xf32>
    %477 = arith.mulf %476, %451 : vector<8x256xf32>
    %478 = arith.addf %474, %477 : vector<8x256xf32>
    %c4_59 = arith.constant 4 : index
    %479 = memref.load %arg7[%c4_59] : memref<12xf32, #tpu.memory_space<smem>>
    %480 = vector.broadcast %479 : f32 to vector<8x256xf32>
    %481 = arith.addf %248, %480 : vector<8x256xf32>
    %c12_60 = arith.constant 12 : index
    %482 = memref.load %arg6[%c12_60] : memref<36xf32, #tpu.memory_space<smem>>
    %483 = vector.broadcast %482 : f32 to vector<8x256xf32>
    %484 = arith.mulf %483, %333 : vector<8x256xf32>
    %485 = arith.addf %481, %484 : vector<8x256xf32>
    %c13_61 = arith.constant 13 : index
    %486 = memref.load %arg6[%c13_61] : memref<36xf32, #tpu.memory_space<smem>>
    %487 = vector.broadcast %486 : f32 to vector<8x256xf32>
    %488 = arith.mulf %487, %392 : vector<8x256xf32>
    %489 = arith.addf %485, %488 : vector<8x256xf32>
    %c14_62 = arith.constant 14 : index
    %490 = memref.load %arg6[%c14_62] : memref<36xf32, #tpu.memory_space<smem>>
    %491 = vector.broadcast %490 : f32 to vector<8x256xf32>
    %492 = arith.mulf %491, %451 : vector<8x256xf32>
    %493 = arith.addf %489, %492 : vector<8x256xf32>
    %c5_63 = arith.constant 5 : index
    %494 = memref.load %arg7[%c5_63] : memref<12xf32, #tpu.memory_space<smem>>
    %495 = vector.broadcast %494 : f32 to vector<8x256xf32>
    %496 = arith.addf %263, %495 : vector<8x256xf32>
    %c15_64 = arith.constant 15 : index
    %497 = memref.load %arg6[%c15_64] : memref<36xf32, #tpu.memory_space<smem>>
    %498 = vector.broadcast %497 : f32 to vector<8x256xf32>
    %499 = arith.mulf %498, %333 : vector<8x256xf32>
    %500 = arith.addf %496, %499 : vector<8x256xf32>
    %c16_65 = arith.constant 16 : index
    %501 = memref.load %arg6[%c16_65] : memref<36xf32, #tpu.memory_space<smem>>
    %502 = vector.broadcast %501 : f32 to vector<8x256xf32>
    %503 = arith.mulf %502, %392 : vector<8x256xf32>
    %504 = arith.addf %500, %503 : vector<8x256xf32>
    %c17_66 = arith.constant 17 : index
    %505 = memref.load %arg6[%c17_66] : memref<36xf32, #tpu.memory_space<smem>>
    %506 = vector.broadcast %505 : f32 to vector<8x256xf32>
    %507 = arith.mulf %506, %451 : vector<8x256xf32>
    %508 = arith.addf %504, %507 : vector<8x256xf32>
    %c1_i32_67 = arith.constant 1 : i32
    %509 = vector.broadcast %c1_i32_67 : i32 to vector<8x256xi32>
    %510 = arith.cmpi slt, %1, %509 : vector<8x256xi32>
    %c1_i32_68 = arith.constant 1 : i32
    %511 = tpu.dynamic_rotate %478 by %c1_i32_68 dim 1 : vector<8x256xf32>, i32 -> vector<8x256xf32>
    %cst_69 = arith.constant 0.000000e+00 : f32
    %512 = vector.broadcast %cst_69 : f32 to vector<8x256xf32>
    %513 = arith.select %510, %512, %511 : vector<8x256xi1>, vector<8x256xf32>
    %c1_i32_70 = arith.constant 1 : i32
    %514 = tpu.dynamic_rotate %493 by %c1_i32_70 dim 1 : vector<8x256xf32>, i32 -> vector<8x256xf32>
    %cst_71 = arith.constant 0.000000e+00 : f32
    %515 = vector.broadcast %cst_71 : f32 to vector<8x256xf32>
    %516 = arith.select %510, %515, %514 : vector<8x256xi1>, vector<8x256xf32>
    %c1_i32_72 = arith.constant 1 : i32
    %517 = tpu.dynamic_rotate %508 by %c1_i32_72 dim 1 : vector<8x256xf32>, i32 -> vector<8x256xf32>
    %cst_73 = arith.constant 0.000000e+00 : f32
    %518 = vector.broadcast %cst_73 : f32 to vector<8x256xf32>
    %519 = arith.select %510, %518, %517 : vector<8x256xi1>, vector<8x256xf32>
    %c72 = arith.constant 72 : index
    %520 = memref.load %arg4[%c72] : memref<144xf32, #tpu.memory_space<smem>>
    %521 = vector.broadcast %520 : f32 to vector<8x256xf32>
    %522 = arith.mulf %521, %513 : vector<8x256xf32>
    %c73 = arith.constant 73 : index
    %523 = memref.load %arg4[%c73] : memref<144xf32, #tpu.memory_space<smem>>
    %524 = vector.broadcast %523 : f32 to vector<8x256xf32>
    %525 = arith.mulf %524, %478 : vector<8x256xf32>
    %526 = arith.addf %522, %525 : vector<8x256xf32>
    %c90 = arith.constant 90 : index
    %527 = memref.load %arg4[%c90] : memref<144xf32, #tpu.memory_space<smem>>
    %528 = vector.broadcast %527 : f32 to vector<8x256xf32>
    %529 = arith.mulf %528, %513 : vector<8x256xf32>
    %c91 = arith.constant 91 : index
    %530 = memref.load %arg4[%c91] : memref<144xf32, #tpu.memory_space<smem>>
    %531 = vector.broadcast %530 : f32 to vector<8x256xf32>
    %532 = arith.mulf %531, %478 : vector<8x256xf32>
    %533 = arith.addf %529, %532 : vector<8x256xf32>
    %c74 = arith.constant 74 : index
    %534 = memref.load %arg4[%c74] : memref<144xf32, #tpu.memory_space<smem>>
    %535 = vector.broadcast %534 : f32 to vector<8x256xf32>
    %536 = arith.mulf %535, %516 : vector<8x256xf32>
    %c75 = arith.constant 75 : index
    %537 = memref.load %arg4[%c75] : memref<144xf32, #tpu.memory_space<smem>>
    %538 = vector.broadcast %537 : f32 to vector<8x256xf32>
    %539 = arith.mulf %538, %493 : vector<8x256xf32>
    %540 = arith.addf %536, %539 : vector<8x256xf32>
    %c92 = arith.constant 92 : index
    %541 = memref.load %arg4[%c92] : memref<144xf32, #tpu.memory_space<smem>>
    %542 = vector.broadcast %541 : f32 to vector<8x256xf32>
    %543 = arith.mulf %542, %516 : vector<8x256xf32>
    %c93 = arith.constant 93 : index
    %544 = memref.load %arg4[%c93] : memref<144xf32, #tpu.memory_space<smem>>
    %545 = vector.broadcast %544 : f32 to vector<8x256xf32>
    %546 = arith.mulf %545, %493 : vector<8x256xf32>
    %547 = arith.addf %543, %546 : vector<8x256xf32>
    %548 = arith.addf %526, %540 : vector<8x256xf32>
    %549 = arith.addf %533, %547 : vector<8x256xf32>
    %c76 = arith.constant 76 : index
    %550 = memref.load %arg4[%c76] : memref<144xf32, #tpu.memory_space<smem>>
    %551 = vector.broadcast %550 : f32 to vector<8x256xf32>
    %552 = arith.mulf %551, %519 : vector<8x256xf32>
    %c77 = arith.constant 77 : index
    %553 = memref.load %arg4[%c77] : memref<144xf32, #tpu.memory_space<smem>>
    %554 = vector.broadcast %553 : f32 to vector<8x256xf32>
    %555 = arith.mulf %554, %508 : vector<8x256xf32>
    %556 = arith.addf %552, %555 : vector<8x256xf32>
    %c94 = arith.constant 94 : index
    %557 = memref.load %arg4[%c94] : memref<144xf32, #tpu.memory_space<smem>>
    %558 = vector.broadcast %557 : f32 to vector<8x256xf32>
    %559 = arith.mulf %558, %519 : vector<8x256xf32>
    %c95 = arith.constant 95 : index
    %560 = memref.load %arg4[%c95] : memref<144xf32, #tpu.memory_space<smem>>
    %561 = vector.broadcast %560 : f32 to vector<8x256xf32>
    %562 = arith.mulf %561, %508 : vector<8x256xf32>
    %563 = arith.addf %559, %562 : vector<8x256xf32>
    %564 = arith.addf %548, %556 : vector<8x256xf32>
    %565 = arith.addf %549, %563 : vector<8x256xf32>
    %c12_74 = arith.constant 12 : index
    %566 = memref.load %arg5[%c12_74] : memref<24xf32, #tpu.memory_space<smem>>
    %567 = vector.broadcast %566 : f32 to vector<8x256xf32>
    %568 = arith.addf %564, %567 : vector<8x256xf32>
    %c15_75 = arith.constant 15 : index
    %569 = memref.load %arg5[%c15_75] : memref<24xf32, #tpu.memory_space<smem>>
    %570 = vector.broadcast %569 : f32 to vector<8x256xf32>
    %571 = arith.addf %565, %570 : vector<8x256xf32>
    %572 = math.tanh %568 : vector<8x256xf32>
    %573 = arith.negf %571 : vector<8x256xf32>
    %574 = math.exp %573 : vector<8x256xf32>
    %cst_76 = arith.constant 1.000000e+00 : f32
    %575 = vector.broadcast %cst_76 : f32 to vector<8x256xf32>
    %576 = arith.addf %575, %574 : vector<8x256xf32>
    %577 = arith.divf %575, %576 : vector<8x256xf32>
    %578 = arith.mulf %572, %577 : vector<8x256xf32>
    %c78 = arith.constant 78 : index
    %579 = memref.load %arg4[%c78] : memref<144xf32, #tpu.memory_space<smem>>
    %580 = vector.broadcast %579 : f32 to vector<8x256xf32>
    %581 = arith.mulf %580, %513 : vector<8x256xf32>
    %c79 = arith.constant 79 : index
    %582 = memref.load %arg4[%c79] : memref<144xf32, #tpu.memory_space<smem>>
    %583 = vector.broadcast %582 : f32 to vector<8x256xf32>
    %584 = arith.mulf %583, %478 : vector<8x256xf32>
    %585 = arith.addf %581, %584 : vector<8x256xf32>
    %c96 = arith.constant 96 : index
    %586 = memref.load %arg4[%c96] : memref<144xf32, #tpu.memory_space<smem>>
    %587 = vector.broadcast %586 : f32 to vector<8x256xf32>
    %588 = arith.mulf %587, %513 : vector<8x256xf32>
    %c97 = arith.constant 97 : index
    %589 = memref.load %arg4[%c97] : memref<144xf32, #tpu.memory_space<smem>>
    %590 = vector.broadcast %589 : f32 to vector<8x256xf32>
    %591 = arith.mulf %590, %478 : vector<8x256xf32>
    %592 = arith.addf %588, %591 : vector<8x256xf32>
    %c80 = arith.constant 80 : index
    %593 = memref.load %arg4[%c80] : memref<144xf32, #tpu.memory_space<smem>>
    %594 = vector.broadcast %593 : f32 to vector<8x256xf32>
    %595 = arith.mulf %594, %516 : vector<8x256xf32>
    %c81 = arith.constant 81 : index
    %596 = memref.load %arg4[%c81] : memref<144xf32, #tpu.memory_space<smem>>
    %597 = vector.broadcast %596 : f32 to vector<8x256xf32>
    %598 = arith.mulf %597, %493 : vector<8x256xf32>
    %599 = arith.addf %595, %598 : vector<8x256xf32>
    %c98 = arith.constant 98 : index
    %600 = memref.load %arg4[%c98] : memref<144xf32, #tpu.memory_space<smem>>
    %601 = vector.broadcast %600 : f32 to vector<8x256xf32>
    %602 = arith.mulf %601, %516 : vector<8x256xf32>
    %c99 = arith.constant 99 : index
    %603 = memref.load %arg4[%c99] : memref<144xf32, #tpu.memory_space<smem>>
    %604 = vector.broadcast %603 : f32 to vector<8x256xf32>
    %605 = arith.mulf %604, %493 : vector<8x256xf32>
    %606 = arith.addf %602, %605 : vector<8x256xf32>
    %607 = arith.addf %585, %599 : vector<8x256xf32>
    %608 = arith.addf %592, %606 : vector<8x256xf32>
    %c82 = arith.constant 82 : index
    %609 = memref.load %arg4[%c82] : memref<144xf32, #tpu.memory_space<smem>>
    %610 = vector.broadcast %609 : f32 to vector<8x256xf32>
    %611 = arith.mulf %610, %519 : vector<8x256xf32>
    %c83 = arith.constant 83 : index
    %612 = memref.load %arg4[%c83] : memref<144xf32, #tpu.memory_space<smem>>
    %613 = vector.broadcast %612 : f32 to vector<8x256xf32>
    %614 = arith.mulf %613, %508 : vector<8x256xf32>
    %615 = arith.addf %611, %614 : vector<8x256xf32>
    %c100 = arith.constant 100 : index
    %616 = memref.load %arg4[%c100] : memref<144xf32, #tpu.memory_space<smem>>
    %617 = vector.broadcast %616 : f32 to vector<8x256xf32>
    %618 = arith.mulf %617, %519 : vector<8x256xf32>
    %c101 = arith.constant 101 : index
    %619 = memref.load %arg4[%c101] : memref<144xf32, #tpu.memory_space<smem>>
    %620 = vector.broadcast %619 : f32 to vector<8x256xf32>
    %621 = arith.mulf %620, %508 : vector<8x256xf32>
    %622 = arith.addf %618, %621 : vector<8x256xf32>
    %623 = arith.addf %607, %615 : vector<8x256xf32>
    %624 = arith.addf %608, %622 : vector<8x256xf32>
    %c13_77 = arith.constant 13 : index
    %625 = memref.load %arg5[%c13_77] : memref<24xf32, #tpu.memory_space<smem>>
    %626 = vector.broadcast %625 : f32 to vector<8x256xf32>
    %627 = arith.addf %623, %626 : vector<8x256xf32>
    %c16_78 = arith.constant 16 : index
    %628 = memref.load %arg5[%c16_78] : memref<24xf32, #tpu.memory_space<smem>>
    %629 = vector.broadcast %628 : f32 to vector<8x256xf32>
    %630 = arith.addf %624, %629 : vector<8x256xf32>
    %631 = math.tanh %627 : vector<8x256xf32>
    %632 = arith.negf %630 : vector<8x256xf32>
    %633 = math.exp %632 : vector<8x256xf32>
    %cst_79 = arith.constant 1.000000e+00 : f32
    %634 = vector.broadcast %cst_79 : f32 to vector<8x256xf32>
    %635 = arith.addf %634, %633 : vector<8x256xf32>
    %636 = arith.divf %634, %635 : vector<8x256xf32>
    %637 = arith.mulf %631, %636 : vector<8x256xf32>
    %c84 = arith.constant 84 : index
    %638 = memref.load %arg4[%c84] : memref<144xf32, #tpu.memory_space<smem>>
    %639 = vector.broadcast %638 : f32 to vector<8x256xf32>
    %640 = arith.mulf %639, %513 : vector<8x256xf32>
    %c85 = arith.constant 85 : index
    %641 = memref.load %arg4[%c85] : memref<144xf32, #tpu.memory_space<smem>>
    %642 = vector.broadcast %641 : f32 to vector<8x256xf32>
    %643 = arith.mulf %642, %478 : vector<8x256xf32>
    %644 = arith.addf %640, %643 : vector<8x256xf32>
    %c102 = arith.constant 102 : index
    %645 = memref.load %arg4[%c102] : memref<144xf32, #tpu.memory_space<smem>>
    %646 = vector.broadcast %645 : f32 to vector<8x256xf32>
    %647 = arith.mulf %646, %513 : vector<8x256xf32>
    %c103 = arith.constant 103 : index
    %648 = memref.load %arg4[%c103] : memref<144xf32, #tpu.memory_space<smem>>
    %649 = vector.broadcast %648 : f32 to vector<8x256xf32>
    %650 = arith.mulf %649, %478 : vector<8x256xf32>
    %651 = arith.addf %647, %650 : vector<8x256xf32>
    %c86 = arith.constant 86 : index
    %652 = memref.load %arg4[%c86] : memref<144xf32, #tpu.memory_space<smem>>
    %653 = vector.broadcast %652 : f32 to vector<8x256xf32>
    %654 = arith.mulf %653, %516 : vector<8x256xf32>
    %c87 = arith.constant 87 : index
    %655 = memref.load %arg4[%c87] : memref<144xf32, #tpu.memory_space<smem>>
    %656 = vector.broadcast %655 : f32 to vector<8x256xf32>
    %657 = arith.mulf %656, %493 : vector<8x256xf32>
    %658 = arith.addf %654, %657 : vector<8x256xf32>
    %c104 = arith.constant 104 : index
    %659 = memref.load %arg4[%c104] : memref<144xf32, #tpu.memory_space<smem>>
    %660 = vector.broadcast %659 : f32 to vector<8x256xf32>
    %661 = arith.mulf %660, %516 : vector<8x256xf32>
    %c105 = arith.constant 105 : index
    %662 = memref.load %arg4[%c105] : memref<144xf32, #tpu.memory_space<smem>>
    %663 = vector.broadcast %662 : f32 to vector<8x256xf32>
    %664 = arith.mulf %663, %493 : vector<8x256xf32>
    %665 = arith.addf %661, %664 : vector<8x256xf32>
    %666 = arith.addf %644, %658 : vector<8x256xf32>
    %667 = arith.addf %651, %665 : vector<8x256xf32>
    %c88 = arith.constant 88 : index
    %668 = memref.load %arg4[%c88] : memref<144xf32, #tpu.memory_space<smem>>
    %669 = vector.broadcast %668 : f32 to vector<8x256xf32>
    %670 = arith.mulf %669, %519 : vector<8x256xf32>
    %c89 = arith.constant 89 : index
    %671 = memref.load %arg4[%c89] : memref<144xf32, #tpu.memory_space<smem>>
    %672 = vector.broadcast %671 : f32 to vector<8x256xf32>
    %673 = arith.mulf %672, %508 : vector<8x256xf32>
    %674 = arith.addf %670, %673 : vector<8x256xf32>
    %c106 = arith.constant 106 : index
    %675 = memref.load %arg4[%c106] : memref<144xf32, #tpu.memory_space<smem>>
    %676 = vector.broadcast %675 : f32 to vector<8x256xf32>
    %677 = arith.mulf %676, %519 : vector<8x256xf32>
    %c107 = arith.constant 107 : index
    %678 = memref.load %arg4[%c107] : memref<144xf32, #tpu.memory_space<smem>>
    %679 = vector.broadcast %678 : f32 to vector<8x256xf32>
    %680 = arith.mulf %679, %508 : vector<8x256xf32>
    %681 = arith.addf %677, %680 : vector<8x256xf32>
    %682 = arith.addf %666, %674 : vector<8x256xf32>
    %683 = arith.addf %667, %681 : vector<8x256xf32>
    %c14_80 = arith.constant 14 : index
    %684 = memref.load %arg5[%c14_80] : memref<24xf32, #tpu.memory_space<smem>>
    %685 = vector.broadcast %684 : f32 to vector<8x256xf32>
    %686 = arith.addf %682, %685 : vector<8x256xf32>
    %c17_81 = arith.constant 17 : index
    %687 = memref.load %arg5[%c17_81] : memref<24xf32, #tpu.memory_space<smem>>
    %688 = vector.broadcast %687 : f32 to vector<8x256xf32>
    %689 = arith.addf %683, %688 : vector<8x256xf32>
    %690 = math.tanh %686 : vector<8x256xf32>
    %691 = arith.negf %689 : vector<8x256xf32>
    %692 = math.exp %691 : vector<8x256xf32>
    %cst_82 = arith.constant 1.000000e+00 : f32
    %693 = vector.broadcast %cst_82 : f32 to vector<8x256xf32>
    %694 = arith.addf %693, %692 : vector<8x256xf32>
    %695 = arith.divf %693, %694 : vector<8x256xf32>
    %696 = arith.mulf %690, %695 : vector<8x256xf32>
    %c6_83 = arith.constant 6 : index
    %697 = memref.load %arg8[%c6_83] : memref<12xf32, #tpu.memory_space<smem>>
    %698 = vector.broadcast %697 : f32 to vector<8x256xf32>
    %699 = arith.mulf %698, %578 : vector<8x256xf32>
    %700 = arith.addf %463, %699 : vector<8x256xf32>
    %c7_84 = arith.constant 7 : index
    %701 = memref.load %arg8[%c7_84] : memref<12xf32, #tpu.memory_space<smem>>
    %702 = vector.broadcast %701 : f32 to vector<8x256xf32>
    %703 = arith.mulf %702, %637 : vector<8x256xf32>
    %704 = arith.addf %700, %703 : vector<8x256xf32>
    %c8_85 = arith.constant 8 : index
    %705 = memref.load %arg8[%c8_85] : memref<12xf32, #tpu.memory_space<smem>>
    %706 = vector.broadcast %705 : f32 to vector<8x256xf32>
    %707 = arith.mulf %706, %696 : vector<8x256xf32>
    %708 = arith.addf %704, %707 : vector<8x256xf32>
    %c6_86 = arith.constant 6 : index
    %709 = memref.load %arg7[%c6_86] : memref<12xf32, #tpu.memory_space<smem>>
    %710 = vector.broadcast %709 : f32 to vector<8x256xf32>
    %711 = arith.addf %478, %710 : vector<8x256xf32>
    %c18_87 = arith.constant 18 : index
    %712 = memref.load %arg6[%c18_87] : memref<36xf32, #tpu.memory_space<smem>>
    %713 = vector.broadcast %712 : f32 to vector<8x256xf32>
    %714 = arith.mulf %713, %578 : vector<8x256xf32>
    %715 = arith.addf %711, %714 : vector<8x256xf32>
    %c19_88 = arith.constant 19 : index
    %716 = memref.load %arg6[%c19_88] : memref<36xf32, #tpu.memory_space<smem>>
    %717 = vector.broadcast %716 : f32 to vector<8x256xf32>
    %718 = arith.mulf %717, %637 : vector<8x256xf32>
    %719 = arith.addf %715, %718 : vector<8x256xf32>
    %c20_89 = arith.constant 20 : index
    %720 = memref.load %arg6[%c20_89] : memref<36xf32, #tpu.memory_space<smem>>
    %721 = vector.broadcast %720 : f32 to vector<8x256xf32>
    %722 = arith.mulf %721, %696 : vector<8x256xf32>
    %723 = arith.addf %719, %722 : vector<8x256xf32>
    %c7_90 = arith.constant 7 : index
    %724 = memref.load %arg7[%c7_90] : memref<12xf32, #tpu.memory_space<smem>>
    %725 = vector.broadcast %724 : f32 to vector<8x256xf32>
    %726 = arith.addf %493, %725 : vector<8x256xf32>
    %c21_91 = arith.constant 21 : index
    %727 = memref.load %arg6[%c21_91] : memref<36xf32, #tpu.memory_space<smem>>
    %728 = vector.broadcast %727 : f32 to vector<8x256xf32>
    %729 = arith.mulf %728, %578 : vector<8x256xf32>
    %730 = arith.addf %726, %729 : vector<8x256xf32>
    %c22_92 = arith.constant 22 : index
    %731 = memref.load %arg6[%c22_92] : memref<36xf32, #tpu.memory_space<smem>>
    %732 = vector.broadcast %731 : f32 to vector<8x256xf32>
    %733 = arith.mulf %732, %637 : vector<8x256xf32>
    %734 = arith.addf %730, %733 : vector<8x256xf32>
    %c23_93 = arith.constant 23 : index
    %735 = memref.load %arg6[%c23_93] : memref<36xf32, #tpu.memory_space<smem>>
    %736 = vector.broadcast %735 : f32 to vector<8x256xf32>
    %737 = arith.mulf %736, %696 : vector<8x256xf32>
    %738 = arith.addf %734, %737 : vector<8x256xf32>
    %c8_94 = arith.constant 8 : index
    %739 = memref.load %arg7[%c8_94] : memref<12xf32, #tpu.memory_space<smem>>
    %740 = vector.broadcast %739 : f32 to vector<8x256xf32>
    %741 = arith.addf %508, %740 : vector<8x256xf32>
    %c24_95 = arith.constant 24 : index
    %742 = memref.load %arg6[%c24_95] : memref<36xf32, #tpu.memory_space<smem>>
    %743 = vector.broadcast %742 : f32 to vector<8x256xf32>
    %744 = arith.mulf %743, %578 : vector<8x256xf32>
    %745 = arith.addf %741, %744 : vector<8x256xf32>
    %c25_96 = arith.constant 25 : index
    %746 = memref.load %arg6[%c25_96] : memref<36xf32, #tpu.memory_space<smem>>
    %747 = vector.broadcast %746 : f32 to vector<8x256xf32>
    %748 = arith.mulf %747, %637 : vector<8x256xf32>
    %749 = arith.addf %745, %748 : vector<8x256xf32>
    %c26_97 = arith.constant 26 : index
    %750 = memref.load %arg6[%c26_97] : memref<36xf32, #tpu.memory_space<smem>>
    %751 = vector.broadcast %750 : f32 to vector<8x256xf32>
    %752 = arith.mulf %751, %696 : vector<8x256xf32>
    %753 = arith.addf %749, %752 : vector<8x256xf32>
    %c2_i32_98 = arith.constant 2 : i32
    %754 = vector.broadcast %c2_i32_98 : i32 to vector<8x256xi32>
    %755 = arith.cmpi slt, %1, %754 : vector<8x256xi32>
    %c2_i32_99 = arith.constant 2 : i32
    %756 = tpu.dynamic_rotate %723 by %c2_i32_99 dim 1 : vector<8x256xf32>, i32 -> vector<8x256xf32>
    %cst_100 = arith.constant 0.000000e+00 : f32
    %757 = vector.broadcast %cst_100 : f32 to vector<8x256xf32>
    %758 = arith.select %755, %757, %756 : vector<8x256xi1>, vector<8x256xf32>
    %c2_i32_101 = arith.constant 2 : i32
    %759 = tpu.dynamic_rotate %738 by %c2_i32_101 dim 1 : vector<8x256xf32>, i32 -> vector<8x256xf32>
    %cst_102 = arith.constant 0.000000e+00 : f32
    %760 = vector.broadcast %cst_102 : f32 to vector<8x256xf32>
    %761 = arith.select %755, %760, %759 : vector<8x256xi1>, vector<8x256xf32>
    %c2_i32_103 = arith.constant 2 : i32
    %762 = tpu.dynamic_rotate %753 by %c2_i32_103 dim 1 : vector<8x256xf32>, i32 -> vector<8x256xf32>
    %cst_104 = arith.constant 0.000000e+00 : f32
    %763 = vector.broadcast %cst_104 : f32 to vector<8x256xf32>
    %764 = arith.select %755, %763, %762 : vector<8x256xi1>, vector<8x256xf32>
    %c108 = arith.constant 108 : index
    %765 = memref.load %arg4[%c108] : memref<144xf32, #tpu.memory_space<smem>>
    %766 = vector.broadcast %765 : f32 to vector<8x256xf32>
    %767 = arith.mulf %766, %758 : vector<8x256xf32>
    %c109 = arith.constant 109 : index
    %768 = memref.load %arg4[%c109] : memref<144xf32, #tpu.memory_space<smem>>
    %769 = vector.broadcast %768 : f32 to vector<8x256xf32>
    %770 = arith.mulf %769, %723 : vector<8x256xf32>
    %771 = arith.addf %767, %770 : vector<8x256xf32>
    %c126 = arith.constant 126 : index
    %772 = memref.load %arg4[%c126] : memref<144xf32, #tpu.memory_space<smem>>
    %773 = vector.broadcast %772 : f32 to vector<8x256xf32>
    %774 = arith.mulf %773, %758 : vector<8x256xf32>
    %c127 = arith.constant 127 : index
    %775 = memref.load %arg4[%c127] : memref<144xf32, #tpu.memory_space<smem>>
    %776 = vector.broadcast %775 : f32 to vector<8x256xf32>
    %777 = arith.mulf %776, %723 : vector<8x256xf32>
    %778 = arith.addf %774, %777 : vector<8x256xf32>
    %c110 = arith.constant 110 : index
    %779 = memref.load %arg4[%c110] : memref<144xf32, #tpu.memory_space<smem>>
    %780 = vector.broadcast %779 : f32 to vector<8x256xf32>
    %781 = arith.mulf %780, %761 : vector<8x256xf32>
    %c111 = arith.constant 111 : index
    %782 = memref.load %arg4[%c111] : memref<144xf32, #tpu.memory_space<smem>>
    %783 = vector.broadcast %782 : f32 to vector<8x256xf32>
    %784 = arith.mulf %783, %738 : vector<8x256xf32>
    %785 = arith.addf %781, %784 : vector<8x256xf32>
    %c128 = arith.constant 128 : index
    %786 = memref.load %arg4[%c128] : memref<144xf32, #tpu.memory_space<smem>>
    %787 = vector.broadcast %786 : f32 to vector<8x256xf32>
    %788 = arith.mulf %787, %761 : vector<8x256xf32>
    %c129 = arith.constant 129 : index
    %789 = memref.load %arg4[%c129] : memref<144xf32, #tpu.memory_space<smem>>
    %790 = vector.broadcast %789 : f32 to vector<8x256xf32>
    %791 = arith.mulf %790, %738 : vector<8x256xf32>
    %792 = arith.addf %788, %791 : vector<8x256xf32>
    %793 = arith.addf %771, %785 : vector<8x256xf32>
    %794 = arith.addf %778, %792 : vector<8x256xf32>
    %c112 = arith.constant 112 : index
    %795 = memref.load %arg4[%c112] : memref<144xf32, #tpu.memory_space<smem>>
    %796 = vector.broadcast %795 : f32 to vector<8x256xf32>
    %797 = arith.mulf %796, %764 : vector<8x256xf32>
    %c113 = arith.constant 113 : index
    %798 = memref.load %arg4[%c113] : memref<144xf32, #tpu.memory_space<smem>>
    %799 = vector.broadcast %798 : f32 to vector<8x256xf32>
    %800 = arith.mulf %799, %753 : vector<8x256xf32>
    %801 = arith.addf %797, %800 : vector<8x256xf32>
    %c130 = arith.constant 130 : index
    %802 = memref.load %arg4[%c130] : memref<144xf32, #tpu.memory_space<smem>>
    %803 = vector.broadcast %802 : f32 to vector<8x256xf32>
    %804 = arith.mulf %803, %764 : vector<8x256xf32>
    %c131 = arith.constant 131 : index
    %805 = memref.load %arg4[%c131] : memref<144xf32, #tpu.memory_space<smem>>
    %806 = vector.broadcast %805 : f32 to vector<8x256xf32>
    %807 = arith.mulf %806, %753 : vector<8x256xf32>
    %808 = arith.addf %804, %807 : vector<8x256xf32>
    %809 = arith.addf %793, %801 : vector<8x256xf32>
    %810 = arith.addf %794, %808 : vector<8x256xf32>
    %c18_105 = arith.constant 18 : index
    %811 = memref.load %arg5[%c18_105] : memref<24xf32, #tpu.memory_space<smem>>
    %812 = vector.broadcast %811 : f32 to vector<8x256xf32>
    %813 = arith.addf %809, %812 : vector<8x256xf32>
    %c21_106 = arith.constant 21 : index
    %814 = memref.load %arg5[%c21_106] : memref<24xf32, #tpu.memory_space<smem>>
    %815 = vector.broadcast %814 : f32 to vector<8x256xf32>
    %816 = arith.addf %810, %815 : vector<8x256xf32>
    %817 = math.tanh %813 : vector<8x256xf32>
    %818 = arith.negf %816 : vector<8x256xf32>
    %819 = math.exp %818 : vector<8x256xf32>
    %cst_107 = arith.constant 1.000000e+00 : f32
    %820 = vector.broadcast %cst_107 : f32 to vector<8x256xf32>
    %821 = arith.addf %820, %819 : vector<8x256xf32>
    %822 = arith.divf %820, %821 : vector<8x256xf32>
    %823 = arith.mulf %817, %822 : vector<8x256xf32>
    %c114 = arith.constant 114 : index
    %824 = memref.load %arg4[%c114] : memref<144xf32, #tpu.memory_space<smem>>
    %825 = vector.broadcast %824 : f32 to vector<8x256xf32>
    %826 = arith.mulf %825, %758 : vector<8x256xf32>
    %c115 = arith.constant 115 : index
    %827 = memref.load %arg4[%c115] : memref<144xf32, #tpu.memory_space<smem>>
    %828 = vector.broadcast %827 : f32 to vector<8x256xf32>
    %829 = arith.mulf %828, %723 : vector<8x256xf32>
    %830 = arith.addf %826, %829 : vector<8x256xf32>
    %c132 = arith.constant 132 : index
    %831 = memref.load %arg4[%c132] : memref<144xf32, #tpu.memory_space<smem>>
    %832 = vector.broadcast %831 : f32 to vector<8x256xf32>
    %833 = arith.mulf %832, %758 : vector<8x256xf32>
    %c133 = arith.constant 133 : index
    %834 = memref.load %arg4[%c133] : memref<144xf32, #tpu.memory_space<smem>>
    %835 = vector.broadcast %834 : f32 to vector<8x256xf32>
    %836 = arith.mulf %835, %723 : vector<8x256xf32>
    %837 = arith.addf %833, %836 : vector<8x256xf32>
    %c116 = arith.constant 116 : index
    %838 = memref.load %arg4[%c116] : memref<144xf32, #tpu.memory_space<smem>>
    %839 = vector.broadcast %838 : f32 to vector<8x256xf32>
    %840 = arith.mulf %839, %761 : vector<8x256xf32>
    %c117 = arith.constant 117 : index
    %841 = memref.load %arg4[%c117] : memref<144xf32, #tpu.memory_space<smem>>
    %842 = vector.broadcast %841 : f32 to vector<8x256xf32>
    %843 = arith.mulf %842, %738 : vector<8x256xf32>
    %844 = arith.addf %840, %843 : vector<8x256xf32>
    %c134 = arith.constant 134 : index
    %845 = memref.load %arg4[%c134] : memref<144xf32, #tpu.memory_space<smem>>
    %846 = vector.broadcast %845 : f32 to vector<8x256xf32>
    %847 = arith.mulf %846, %761 : vector<8x256xf32>
    %c135 = arith.constant 135 : index
    %848 = memref.load %arg4[%c135] : memref<144xf32, #tpu.memory_space<smem>>
    %849 = vector.broadcast %848 : f32 to vector<8x256xf32>
    %850 = arith.mulf %849, %738 : vector<8x256xf32>
    %851 = arith.addf %847, %850 : vector<8x256xf32>
    %852 = arith.addf %830, %844 : vector<8x256xf32>
    %853 = arith.addf %837, %851 : vector<8x256xf32>
    %c118 = arith.constant 118 : index
    %854 = memref.load %arg4[%c118] : memref<144xf32, #tpu.memory_space<smem>>
    %855 = vector.broadcast %854 : f32 to vector<8x256xf32>
    %856 = arith.mulf %855, %764 : vector<8x256xf32>
    %c119 = arith.constant 119 : index
    %857 = memref.load %arg4[%c119] : memref<144xf32, #tpu.memory_space<smem>>
    %858 = vector.broadcast %857 : f32 to vector<8x256xf32>
    %859 = arith.mulf %858, %753 : vector<8x256xf32>
    %860 = arith.addf %856, %859 : vector<8x256xf32>
    %c136 = arith.constant 136 : index
    %861 = memref.load %arg4[%c136] : memref<144xf32, #tpu.memory_space<smem>>
    %862 = vector.broadcast %861 : f32 to vector<8x256xf32>
    %863 = arith.mulf %862, %764 : vector<8x256xf32>
    %c137 = arith.constant 137 : index
    %864 = memref.load %arg4[%c137] : memref<144xf32, #tpu.memory_space<smem>>
    %865 = vector.broadcast %864 : f32 to vector<8x256xf32>
    %866 = arith.mulf %865, %753 : vector<8x256xf32>
    %867 = arith.addf %863, %866 : vector<8x256xf32>
    %868 = arith.addf %852, %860 : vector<8x256xf32>
    %869 = arith.addf %853, %867 : vector<8x256xf32>
    %c19_108 = arith.constant 19 : index
    %870 = memref.load %arg5[%c19_108] : memref<24xf32, #tpu.memory_space<smem>>
    %871 = vector.broadcast %870 : f32 to vector<8x256xf32>
    %872 = arith.addf %868, %871 : vector<8x256xf32>
    %c22_109 = arith.constant 22 : index
    %873 = memref.load %arg5[%c22_109] : memref<24xf32, #tpu.memory_space<smem>>
    %874 = vector.broadcast %873 : f32 to vector<8x256xf32>
    %875 = arith.addf %869, %874 : vector<8x256xf32>
    %876 = math.tanh %872 : vector<8x256xf32>
    %877 = arith.negf %875 : vector<8x256xf32>
    %878 = math.exp %877 : vector<8x256xf32>
    %cst_110 = arith.constant 1.000000e+00 : f32
    %879 = vector.broadcast %cst_110 : f32 to vector<8x256xf32>
    %880 = arith.addf %879, %878 : vector<8x256xf32>
    %881 = arith.divf %879, %880 : vector<8x256xf32>
    %882 = arith.mulf %876, %881 : vector<8x256xf32>
    %c120 = arith.constant 120 : index
    %883 = memref.load %arg4[%c120] : memref<144xf32, #tpu.memory_space<smem>>
    %884 = vector.broadcast %883 : f32 to vector<8x256xf32>
    %885 = arith.mulf %884, %758 : vector<8x256xf32>
    %c121 = arith.constant 121 : index
    %886 = memref.load %arg4[%c121] : memref<144xf32, #tpu.memory_space<smem>>
    %887 = vector.broadcast %886 : f32 to vector<8x256xf32>
    %888 = arith.mulf %887, %723 : vector<8x256xf32>
    %889 = arith.addf %885, %888 : vector<8x256xf32>
    %c138 = arith.constant 138 : index
    %890 = memref.load %arg4[%c138] : memref<144xf32, #tpu.memory_space<smem>>
    %891 = vector.broadcast %890 : f32 to vector<8x256xf32>
    %892 = arith.mulf %891, %758 : vector<8x256xf32>
    %c139 = arith.constant 139 : index
    %893 = memref.load %arg4[%c139] : memref<144xf32, #tpu.memory_space<smem>>
    %894 = vector.broadcast %893 : f32 to vector<8x256xf32>
    %895 = arith.mulf %894, %723 : vector<8x256xf32>
    %896 = arith.addf %892, %895 : vector<8x256xf32>
    %c122 = arith.constant 122 : index
    %897 = memref.load %arg4[%c122] : memref<144xf32, #tpu.memory_space<smem>>
    %898 = vector.broadcast %897 : f32 to vector<8x256xf32>
    %899 = arith.mulf %898, %761 : vector<8x256xf32>
    %c123 = arith.constant 123 : index
    %900 = memref.load %arg4[%c123] : memref<144xf32, #tpu.memory_space<smem>>
    %901 = vector.broadcast %900 : f32 to vector<8x256xf32>
    %902 = arith.mulf %901, %738 : vector<8x256xf32>
    %903 = arith.addf %899, %902 : vector<8x256xf32>
    %c140 = arith.constant 140 : index
    %904 = memref.load %arg4[%c140] : memref<144xf32, #tpu.memory_space<smem>>
    %905 = vector.broadcast %904 : f32 to vector<8x256xf32>
    %906 = arith.mulf %905, %761 : vector<8x256xf32>
    %c141 = arith.constant 141 : index
    %907 = memref.load %arg4[%c141] : memref<144xf32, #tpu.memory_space<smem>>
    %908 = vector.broadcast %907 : f32 to vector<8x256xf32>
    %909 = arith.mulf %908, %738 : vector<8x256xf32>
    %910 = arith.addf %906, %909 : vector<8x256xf32>
    %911 = arith.addf %889, %903 : vector<8x256xf32>
    %912 = arith.addf %896, %910 : vector<8x256xf32>
    %c124 = arith.constant 124 : index
    %913 = memref.load %arg4[%c124] : memref<144xf32, #tpu.memory_space<smem>>
    %914 = vector.broadcast %913 : f32 to vector<8x256xf32>
    %915 = arith.mulf %914, %764 : vector<8x256xf32>
    %c125 = arith.constant 125 : index
    %916 = memref.load %arg4[%c125] : memref<144xf32, #tpu.memory_space<smem>>
    %917 = vector.broadcast %916 : f32 to vector<8x256xf32>
    %918 = arith.mulf %917, %753 : vector<8x256xf32>
    %919 = arith.addf %915, %918 : vector<8x256xf32>
    %c142 = arith.constant 142 : index
    %920 = memref.load %arg4[%c142] : memref<144xf32, #tpu.memory_space<smem>>
    %921 = vector.broadcast %920 : f32 to vector<8x256xf32>
    %922 = arith.mulf %921, %764 : vector<8x256xf32>
    %c143 = arith.constant 143 : index
    %923 = memref.load %arg4[%c143] : memref<144xf32, #tpu.memory_space<smem>>
    %924 = vector.broadcast %923 : f32 to vector<8x256xf32>
    %925 = arith.mulf %924, %753 : vector<8x256xf32>
    %926 = arith.addf %922, %925 : vector<8x256xf32>
    %927 = arith.addf %911, %919 : vector<8x256xf32>
    %928 = arith.addf %912, %926 : vector<8x256xf32>
    %c20_111 = arith.constant 20 : index
    %929 = memref.load %arg5[%c20_111] : memref<24xf32, #tpu.memory_space<smem>>
    %930 = vector.broadcast %929 : f32 to vector<8x256xf32>
    %931 = arith.addf %927, %930 : vector<8x256xf32>
    %c23_112 = arith.constant 23 : index
    %932 = memref.load %arg5[%c23_112] : memref<24xf32, #tpu.memory_space<smem>>
    %933 = vector.broadcast %932 : f32 to vector<8x256xf32>
    %934 = arith.addf %928, %933 : vector<8x256xf32>
    %935 = math.tanh %931 : vector<8x256xf32>
    %936 = arith.negf %934 : vector<8x256xf32>
    %937 = math.exp %936 : vector<8x256xf32>
    %cst_113 = arith.constant 1.000000e+00 : f32
    %938 = vector.broadcast %cst_113 : f32 to vector<8x256xf32>
    %939 = arith.addf %938, %937 : vector<8x256xf32>
    %940 = arith.divf %938, %939 : vector<8x256xf32>
    %941 = arith.mulf %935, %940 : vector<8x256xf32>
    %c9_114 = arith.constant 9 : index
    %942 = memref.load %arg8[%c9_114] : memref<12xf32, #tpu.memory_space<smem>>
    %943 = vector.broadcast %942 : f32 to vector<8x256xf32>
    %944 = arith.mulf %943, %823 : vector<8x256xf32>
    %945 = arith.addf %708, %944 : vector<8x256xf32>
    %c10_115 = arith.constant 10 : index
    %946 = memref.load %arg8[%c10_115] : memref<12xf32, #tpu.memory_space<smem>>
    %947 = vector.broadcast %946 : f32 to vector<8x256xf32>
    %948 = arith.mulf %947, %882 : vector<8x256xf32>
    %949 = arith.addf %945, %948 : vector<8x256xf32>
    %c11_116 = arith.constant 11 : index
    %950 = memref.load %arg8[%c11_116] : memref<12xf32, #tpu.memory_space<smem>>
    %951 = vector.broadcast %950 : f32 to vector<8x256xf32>
    %952 = arith.mulf %951, %941 : vector<8x256xf32>
    %953 = arith.addf %949, %952 : vector<8x256xf32>
    %c0_117 = arith.constant 0 : index
    %954 = memref.load %arg9[%c0_117] : memref<1xf32, #tpu.memory_space<smem>>
    %955 = vector.broadcast %954 : f32 to vector<8x256xf32>
    %956 = arith.addf %953, %955 : vector<8x256xf32>
    %c0_118 = arith.constant 0 : index
    %c0_119 = arith.constant 0 : index
    %957 = vector.load %arg10[%c0_118, %c0_119] : memref<8x256xf32, #tpu.memory_space<vmem>>, vector<8x256xf32>
    tpu.vector_store %arg10[%c0_118, %c0_119], %956 {strides = array<i32>} : memref<8x256xf32, #tpu.memory_space<vmem>>, vector<8x256xf32>,
    return
  }
  func.func @transform_0(%arg0: i32) -> (i32, i32) {
    %c0_i32 = arith.constant 0 : i32
    %c0_i32_0 = arith.constant 0 : i32
    return %arg0, %c0_i32 : i32, i32
  }
  func.func @transform_1(%arg0: i32) -> i32 {
    %c0_i32 = arith.constant 0 : i32
    %c0_i32_0 = arith.constant 0 : i32
    return %c0_i32 : i32
  }
  func.func @transform_2(%arg0: i32) -> i32 {
    %c0_i32 = arith.constant 0 : i32
    %c0_i32_0 = arith.constant 0 : i32
    return %c0_i32 : i32
  }
  func.func @transform_3(%arg0: i32) -> i32 {
    %c0_i32 = arith.constant 0 : i32
    %c0_i32_0 = arith.constant 0 : i32
    return %c0_i32 : i32
  }
  func.func @transform_4(%arg0: i32) -> i32 {
    %c0_i32 = arith.constant 0 : i32
    %c0_i32_0 = arith.constant 0 : i32
    return %c0_i32 : i32
  }
  func.func @transform_5(%arg0: i32) -> i32 {
    %c0_i32 = arith.constant 0 : i32
    %c0_i32_0 = arith.constant 0 : i32
    return %c0_i32 : i32
  }
  func.func @transform_6(%arg0: i32) -> i32 {
    %c0_i32 = arith.constant 0 : i32
    %c0_i32_0 = arith.constant 0 : i32
    return %c0_i32 : i32
  }
  func.func @transform_7(%arg0: i32) -> i32 {
    %c0_i32 = arith.constant 0 : i32
    %c0_i32_0 = arith.constant 0 : i32
    return %c0_i32 : i32
  }
  func.func @transform_8(%arg0: i32) -> i32 {
    %c0_i32 = arith.constant 0 : i32
    %c0_i32_0 = arith.constant 0 : i32
    return %c0_i32 : i32
  }
  func.func @transform_9(%arg0: i32) -> (i32, i32) {
    %c0_i32 = arith.constant 0 : i32
    %c0_i32_0 = arith.constant 0 : i32
    return %arg0, %c0_i32 : i32, i32
  }
}

</mosaic_0001>

<bundles_post_ra>
// kernel: tpu_custom_call.1
= control target key start
LH: loop header
LB: loop body
LE: loop exit
PB: predicated region body
PF: predicated region fallthrough
CT: control target
= control target key end

     0   :  { %s5778_s0 = inlined_call_operand.hbm [shape: f32[16,256], index: 0, kind: input, shape index: {}]   ;;  %s5779_s1 = inlined_call_operand.vmem [shape: f32[3], index: 1, kind: input, shape index: {}]   ;;  %s5780_s2 = inlined_call_operand.hbm [shape: f32[3], index: 2, kind: input, shape index: {}]   ;;  %s5781_s3 = inlined_call_operand.vmem [shape: f32[144], index: 3, kind: input, shape index: {}]   ;;  %s5782_s4 = inlined_call_operand.vmem [shape: f32[24], index: 4, kind: input, shape index: {}]   ;;  %s5783_s5 = inlined_call_operand.vmem [shape: f32[36], index: 5, kind: input, shape index: {}]   ;;  %s5784_s6 = inlined_call_operand.vmem [shape: f32[12], index: 6, kind: input, shape index: {}]   ;;  %s5785_s7 = inlined_call_operand.vmem [shape: f32[12], index: 7, kind: input, shape index: {}]   ;;  %s5786_s8 = inlined_call_operand.<no memory space> [shape: f32[1], index: 8, kind: input, shape index: {}]   ;;  %s5787_s9 = inlined_call_operand.hbm [shape: f32[16,256], index: 9, kind: output, shape index: {}]  }
   0x1   :  { %5825 = sst [smem:[#allocation50_spill]] %s5778_s0 }
   0x2   :  { %5826 = sst [smem:[#allocation51_spill]] %s5779_s1 }
   0x3   :  { %5827 = sst [smem:[#allocation52_spill]] %s5780_s2 }
   0x4   :  { %5828 = sst [smem:[#allocation53_spill]] %s5781_s3 }
   0x5   :  { %5829 = sst [smem:[#allocation54_spill]] %s5782_s4 }
   0x6   :  { %5830 = sst [smem:[#allocation55_spill]] %s5783_s5 }
   0x7   :  { %5831 = sst [smem:[#allocation56_spill]] %s5784_s6 }
   0x8   :  { %5832 = sst [smem:[#allocation57_spill]] %s5785_s7 }
   0x9   :  { %5833 = sst [smem:[#allocation58_spill]] %s5787_s9 }
   0xa   :  { %14 = sst [smem:[#allocation2]] %s5786_s8 }
   0xb   :  { %15 = vsyncpa [#allocation4], 0 }
   0xc   :  { %17 = vsyncpa [#allocation4 + $0x1], 0 }
   0xd   :  { %18 = vsyncpa [#allocation7], 0 }
   0xe   :  { %19 = vsyncpa [#allocation6], 0 }
   0xf   :  { %20 = vsyncpa [#allocation11], 0 }
  0x10   :  { %21 = vsyncpa [#allocation14], 0 }
  0x11   :  { %22 = vsyncpa [#allocation17], 0 }
  0x12   :  { %23 = vsyncpa [#allocation5], 0 }
  0x13   :  { %25 = vsyncpa [#allocation5 + $0x1], 0  ;;  %s3237_s11 = smov 0   ;;  %s3239_s12 = smov 0  }
  0x14   :  { %s3241_s13 = smov 0   ;;  %s3243_s14 = smov 0  }
  0x15 LB: > { %5834 = sst [smem:[#allocation26_spill]] %s3161_s11  ;;  %s3261_s17 = sadd.s32 4294967295, %s3173_s14   ;;  %s3173_s14 = sphi %s3243_s14, %s6077_s14   ;;  %s3169_s13 = sphi %s3241_s13, %s6080_s13   ;;  %s3165_s12 = sphi %s3239_s12, %s6079_s12   ;;  %s3161_s11 = sphi %s3237_s11, %s6078_s11  }
  0x16   : > { %5835 = sst [smem:[#allocation27_spill]] %s3165_s12  ;;  %p2421_p0 = scmp.ge.s32.totalorder %s3173_s14, 1 }
  0x17   : > { %5836 = sst [smem:[#allocation28_spill]] %s3169_s13  ;;  %p52_p1 = scmp.eq.s32.totalorder %s3261_s17, 0 }
  0x18   : > { %5837 = sst [smem:[#allocation29_spill]] %s3173_s14  ;;  %p256_p2 = scmp.lt.s32.totalorder %s3173_s14, 3 }
  0x19   : > { %s5838_s3 = sld [smem:[#allocation53_spill]]  ;;  %s3175_s29 = smov [#allocation10]  }
  0x1a   : > { %p3266_p3 = pnand %p2421_p0, %p256_p2  ;;  %s5840_s5 = sld [smem:[#allocation55_spill]] }
  0x1b   : > { %s5841_s1 = sld [smem:[#allocation51_spill]]  ;;  %s3176_s30 = smov [#allocation13]  }
  0x1c   : > { %p2721_p5 = pneg %p3266_p3  ;;  %s5843_s2 = sld [smem:[#allocation52_spill]] }
  0x1d   : > { %s3177_s10 = smov [#allocation8]   ;;  %s3178_s8 = smov [#allocation9]  }
  0x1e   : > { %p3281_p6 = pnand %p2721_p5, %p52_p1  ;;  %s5844_s4 = sld [smem:[#allocation54_spill]] }
  0x1f   : > { %s288_s16 = sshll.u32 %s5838_s3, 4  ;;  %s5845_s6 = sld [smem:[#allocation56_spill]]  ;;  %s289_s16 = int_to_ptr.vmem [resolvable:$true] %s288_s16 }
  0x20   : > { %s308_s21 = sshll.u32 %s5840_s5, 4  ;;  %s3179_s23 = smov [#allocation12]   ;;  %s309_s21 = int_to_ptr.vmem [resolvable:$true] %s308_s21 }
  0x21   : > { %s268_s24 = sshll.u32 %s5841_s1, 4  ;;  %s5846_s7 = sld [smem:[#allocation57_spill]]  ;;  %s269_s24 = int_to_ptr.vmem [resolvable:$true] %s268_s24 }
  0x22   : > { %s278_s28 = sshll.u32 %s5843_s2, 4  ;;  %p45_p7 = scmp.ne.s32.totalorder %s3169_s13, %s3165_s12  ;;  %s279_s28 = int_to_ptr.hbm [resolvable:$true] %s278_s28 }
  0x23   : > { %2730 = dma.vmem_to_smem (!%p3281_p6), %s289_s16, 32, %s3175_s29, [#allocation11]  }
  0x24   : > { %2736 = dma.vmem_to_smem (!%p3281_p6), %s309_s21, 16, %s3176_s30, [#allocation14]  }
  0x25   : > { %2724 = dma.vmem_to_smem (!%p3281_p6), %s269_s24, 16, %s3177_s10, [#allocation7]  }
  0x26   : > { %2727 = dma.hbm_to_smem (!%p3281_p6), %s279_s28, 16, %s3178_s8, [#allocation6]  }
  0x27   : > { %s298_s20 = sshll.u32 %s5844_s4, 4  ;;  %s318_s22 = sshll.u32 %s5845_s6, 4  ;;  %s299_s20 = int_to_ptr.vmem [resolvable:$true] %s298_s20  ;;  %s319_s22 = int_to_ptr.vmem [resolvable:$true] %s318_s22 }
  0x28   : > { %2733 = dma.vmem_to_smem (!%p3281_p6), %s299_s20, 16, %s3179_s23, [#allocation11]  }
  0x29   : > { %s3180_s24 = smov [#allocation15]   ;;  %s328_s28 = sshll.u32 %s5846_s7, 4  ;;  %s329_s28 = int_to_ptr.vmem [resolvable:$true] %s328_s28 }
  0x2a   : > { %2739 = dma.vmem_to_smem (!%p3281_p6), %s319_s22, 16, %s3180_s24, [#allocation14]  }
  0x2b   : > { %s3181_s29 = smov [#allocation16]   ;;  %s2420_s30 = sadd.s32 4294967294, %s3173_s14  }
  0x2c   : > { %2742 = dma.vmem_to_smem (!%p3281_p6), %s329_s28, 16, %s3181_s29, [#allocation17]  }
  0x2d   : > { %s3313_s10 = sadd.s32 1, %s3173_s14   ;;  %s38_s8 = sadd.s32 1, %s3169_s13 }
  0x2e   : > { %5847 = sst [smem:[#allocation30_spill]] %s3313_s10  ;;  %s35_s15 = ssub.s32 %s3173_s14, %s3313_s10 }
  0x2f   : > { %p36_p8 = scmp.eq.s32.totalorder %s35_s15, 0  ;;  %p46_p9 = scmp.eq.s32.totalorder %s3173_s14, 0 }
  0x30   : > { %p51_p10 = scmp.ne.s32.totalorder %s3165_s12, %s3161_s11  ;;  %p243_p11 = scmp.eq.s32.totalorder %s3261_s17, 1 }
  0x31   : > { %s3325_s19 = scalar_select %p36_p8, %s3169_s13, %s38_s8  }
  0x32   : > { %p3329_p12 = por %p52_p1, %p51_p10  ;;  %p3333_p13 = por %p243_p11, %p45_p7 }
  0x33   : > { %5848 = sst [smem:[#allocation31_spill]] %s3325_s19  ;;  %p249_p0 = scmp.eq.s32.totalorder %s2420_s30, 1 }
  0x34   : > { %s5850_s20 = scalar_select %p3333_p13, 1, 0 }
  0x35   : > { %p47_p2 = por %p46_p9, %p45_p7  ;;  %s342_s16 = sand.u32 1, %s3169_s13  }
  0x36   : > { %5851 = sst [smem:[#allocation32_spill]] %s5850_s20  ;;  %p3338_p5 = por %p249_p0, %p51_p10 }
  0x37   : > { %p2758_p6 = scmp.lt.s32.totalorder %s3173_s14, 2  ;;  %s2430_s22 = sshll.u32 %s342_s16, 4 }
  0x38   : > { %s5852_s21 = scalar_select %p3338_p5, 1, 0 }
  0x39   : > { %s2687_s23 = sshll.u32 %s3173_s14, 4  ;;  %s5854_s0 = sld [smem:[#allocation50_spill]] }
  0x3a   : > { %5853 = sst [smem:[#allocation33_spill]] %s5852_s21  ;;  %s346_s29 = scalar_lea.vmem [#allocation3], %s2430_s22 }
  0x3b   : > { %s355_s8 = sshll.u32 %s346_s29, 4  ;;  %p3347_p8 = pnand %p2758_p6, %p47_p2  ;;  %s356_s8 = int_to_ptr.vmem [resolvable:$true] %s355_s8 }
  0x3c   : > { %s343_s15 = scalar_lea.sflag [#allocation4], %s342_s16 }
  0x3d   : > { %p3061_p9 = pneg %p3347_p8 }
  0x3f   : > { %s351_s27 = scalar_lea.hbm %s5854_s0, %s2687_s23  ;;  %s3064_s22 = scalar_lea.hbm %s5854_s0, 32 }
  0x40   : > { %s353_s28 = sshll.u32 %s351_s27, 4  ;;  %s354_s28 = int_to_ptr.hbm [resolvable:$true] %s353_s28 }
  0x41   : > { %s3057_s1 = sshra.s32 %s354_s28, 4  ;;  %s3058_s1 = int_to_ptr.hbm [resolvable:$true] %s3057_s1 }
  0x42   : > { %s3059_s2 = scalar_lea.hbm %s3058_s1, 16  ;;  %p3065_p0 = scmp.lt.s32.totalorder %s3058_s1, %s5854_s0 }
  0x43   : > { %p3060_p7 = scmp.ne.s32.totalorder %s3058_s1, %s3059_s2  ;;  %p3066_p2 = scmp.lt.s32.totalorder %s3064_s22, %s3059_s2 }
  0x45   : > { %p3062_p10 = pnand %p3061_p9, %p3060_p7  ;;  %p3067_p6 = por %p3066_p2, %p3065_p0 }
  0x47   : > { %p3063_p11 = pneg %p3062_p10 }
  0x49   : > { %p3068_p4 = pnand %p3067_p6, %p3063_p11 }
  0x4b   : > { %3071 = shalt.err (!%p3068_p4)
}
  0x4c   : > { %2746 = dma.hbm_to_vmem [thread:$0]  (!%p3347_p8), %s354_s28, 256, %s356_s8, %s343_s15  }
  0x4d   : > { %364 = sbr.rel (%p3266_p3) target bundleno = 888 (0x378), region = 56 }
  0x52   : > { %s3364_s16 = sand.u32 1, %s3165_s12  }
  0x53   : > { %s5788_s29 = sshll.u32 %s3364_s16, 4  ;;  %s367_s23 = scalar_lea.sflag [#allocation4], %s3364_s16 }
  0x54   : > { %s370_s1 = scalar_lea.vmem [#allocation3], %s5788_s29 }
  0x55   : > { %3132 = dma.done.wait (%p3329_p12), %s367_s23, 256  }
  0x56   : > { %3134 = vsyncadd (%p3329_p12), %s367_s23, 4294967040 }
  0x57   : > { %3136 = dma.done.wait (%p52_p1), [#allocation7], 16  }
  0x58   : > { %3138 = vsyncadd (%p52_p1), [#allocation7], 4294967280 }
  0x59   : > { %3140 = dma.done.wait (%p52_p1), [#allocation6], 16  }
  0x5a   : > { %3142 = vsyncadd (%p52_p1), [#allocation6], 4294967280 }
  0x5b   : > { %3144 = dma.done.wait (%p52_p1), [#allocation11], 48  }
  0x5c   : > { %3146 = vsyncadd (%p52_p1), [#allocation11], 4294967248 }
  0x5d   : > { %3148 = dma.done.wait (%p52_p1), [#allocation14], 32  }
  0x5e   : > { %3150 = vsyncadd (%p52_p1), [#allocation14], 4294967264 }
  0x5f   : > { %3152 = dma.done.wait (%p52_p1), [#allocation17], 16  }
  0x60   : > { %3154 = vsyncadd (%p52_p1), [#allocation17], 4294967280 }
  0x61   : > { %411 = sfence }
  0x62   : > { %s2443_s2 = sld [smem:[#allocation8 + $0x1]]  ;;  %v442_v0 = vld [vmem:[%s370_s1] sm:$0xff]  ;;  %v443_v5 = vld [vmem:[%s370_s1 + $0x8] sm:$0xff]  ;;  %s5789_s15 = smov 1   ;;  %v444_v20 = vlaneseq }
  0x63   : > { %s2444_s18 = sld [smem:[#allocation9 + $0x1]] }
  0x64   : > { %s447_s25 = sld [smem:[#allocation8]]  ;;  %v3470_v21 = vand.u32 127, %v444_v20 }
  0x65   : > { %s451_s28 = sld [smem:[#allocation9]] }
  0x66   : > { %s2445_s8 = sld [smem:[#allocation8 + $0x2]]  ;;  %5860 = vst [vmem:[#allocation38_spill] sm:$0xff] %v3470_v21  ;;  %vm471_vm0 = vcmp.lt.s32.totalorder %v3470_v21, 1 }
  0x67   : > { %s2446_s30 = sld [smem:[#allocation9 + $0x2]] }
  0x68   : > { %v456_v1 = vstv %s2443_s2  ;;  %s3418_s24 = sld [smem:[#allocation10 + $0x4]] }
  0x69   : > { %v457_v2 = vmul.f32 %v456_v1, %v442_v0  ;;  %v460_v3 = vstv %s2444_s18  ;;  %v458_v11 = vmul.f32 %v456_v1, %v443_v5  ;;  %s3420_s22 = sld [smem:[#allocation10 + $0x5]] }
  0x6a   : > { %v448_v4 = vstv %s447_s25  ;;  %s3422_s26 = sld [smem:[#allocation10 + $0x16]] }
  0x6b   : > { %v3394_v6 = vadd.f32 %v460_v3, %v457_v2  ;;  %v449_v7 = vmul.f32 %v448_v4, %v442_v0  ;;  %v452_v8 = vstv %s451_s28  ;;  %v450_v14 = vmul.f32 %v448_v4, %v443_v5  ;;  %s3424_s27 = sld [smem:[#allocation10 + $0x17]] }
  0x6c   : > { %v464_v9 = vstv %s2445_s8  ;;  %v3404_v16 = vadd.f32 %v460_v3, %v458_v11  ;;  %s3426_s23 = sld [smem:[#allocation10 + $0xa]] }
  0x6d   : > { %5856 = vst [vmem:[#allocation34_spill] sm:$0xff] %v3394_v6  ;;  %481 = vrot.lane.b32.xlu1 %v3394_v6, %s5789_s15  ;;  %v3398_v10 = vadd.f32 %v452_v8, %v449_v7  ;;  %v465_v12 = vmul.f32 %v464_v9, %v442_v0  ;;  %v468_v13 = vstv %s2446_s30  ;;  %v466_v17 = vmul.f32 %v464_v9, %v443_v5  ;;  %s3428_s1 = sld [smem:[#allocation10 + $0xb]] }
  0x6e   : > { %5858 = vst [vmem:[#allocation36_spill] sm:$0xff] %v3404_v16  ;;  %v3408_v18 = vadd.f32 %v452_v8, %v450_v14  ;;  %s3430_s2 = sld [smem:[#allocation10 + $0x1c]]  ;;  %v542_v26 = vstv %s3418_s24 }
  0x6f   : > { %473 = vrot.lane.b32.xlu0 %v3398_v10, %s5789_s15  ;;  %v3402_v15 = vadd.f32 %v468_v13, %v465_v12  ;;  %v3412_v19 = vadd.f32 %v468_v13, %v466_v17  ;;  %s3432_s18 = sld [smem:[#allocation10 + $0x1d]]  ;;  %v546_v22 = vstv %s3420_s22 }
  0x70   : > { %5859 = vst [vmem:[#allocation37_spill] sm:$0xff] %v3408_v18  ;;  %s3434_s25 = sld [smem:[#allocation10 + $0x10]]  ;;  %v552_v28 = vstv %s3422_s26 }
  0x71   : > { %5857 = vst [vmem:[#allocation35_spill] sm:$0xff] %v3402_v15  ;;  %489 = vrot.lane.b32.xlu2 %v3402_v15, %s5789_s15  ;;  %s3436_s28 = sld [smem:[#allocation10 + $0x11]]  ;;  %v556_v24 = vstv %s3424_s27  ;;  %v3485_v27 = vmul.f32 %v546_v22, %v3412_v19  ;;  %v3512_v39 = vmul.f32 %v546_v22, %v3402_v15 }
  0x72   : > { %s3438_s8 = sld [smem:[#allocation10 + $0x22]]  ;;  %v3493_v30 = vmul.f32 %v556_v24, %v3412_v19  ;;  %v660_v31 = vstv %s3426_s23  ;;  %v3521_v42 = vmul.f32 %v556_v24, %v3402_v15 }
  0x73   : > { %s3440_s30 = sld [smem:[#allocation10 + $0x23]]  ;;  %v664_v25 = vstv %s3428_s1 }
  0x74   : > { %s3442_s29 = sld [smem:[#allocation10 + $0x2]]  ;;  %v3500_v33 = vmul.f32 %v664_v25, %v3412_v19  ;;  %v670_v34 = vstv %s3430_s2  ;;  %v3524_v43 = vmul.f32 %v664_v25, %v3402_v15  ;;  %s5811_s2 = smov 2  }
  0x75   : > { %483 = vrot.lane.b32.xlu1 %v3404_v16, %s5789_s15  ;;  %s3446_s0 = sld [smem:[#allocation10 + $0x14]]  ;;  %v674_v29 = vstv %s3432_s18 }
  0x76   : > { %s3448_s3 = sld [smem:[#allocation10 + $0x15]]  ;;  %v5803_v35 = vstv %s3434_s25  ;;  %v3508_v37 = vmul.f32 %v674_v29, %v3412_v19  ;;  %v3530_v45 = vmul.f32 %v674_v29, %v3402_v15 }
  0x77   : > { %475 = vrot.lane.b32.xlu0 %v3408_v18, %s5789_s15  ;;  %s3450_s4 = sld [smem:[#allocation10 + $0x8]]  ;;  %v5801_v36 = vstv %s3436_s28 }
  0x78   : > { %s3452_s5 = sld [smem:[#allocation10 + $0x9]]  ;;  %v788_v38 = vstv %s3438_s8  ;;  %v3535_v46 = vmul.f32 %v5801_v36, %v3402_v15 }
  0x79   : > { %491 = vrot.lane.b32.xlu2 %v3412_v19, %s5789_s15  ;;  %s3444_s15 = sld [smem:[#allocation10 + $0x3]]  ;;  %v792_v32 = vstv %s3440_s30 }
  0x7a   : > { %s3454_s6 = sld [smem:[#allocation10 + $0x1a]]  ;;  %v3518_v41 = vmul.f32 %v792_v32, %v3412_v19  ;;  %5861 = vst [vmem:[#allocation39_spill] sm:$0xff] %v3535_v46  ;;  %v3542_v49 = vmul.f32 %v792_v32, %v3402_v15 }
  0x7b   : > { %s3456_s7 = sld [smem:[#allocation10 + $0x1b]] }
  0x7c   : > { %s3458_s19 = sld [smem:[#allocation10 + $0xe]]  ;;  %v532_v44 = vstv %s3448_s3 }
  0x7d   : > { %s3460_s13 = sld [smem:[#allocation10 + $0xf]]  ;;  %v3553_v54 = vmul.f32 %v532_v44, %v3404_v16  ;;  %v3583_v4 = vmul.f32 %v532_v44, %v3394_v6 }
  0x7e   : > { %s3462_s12 = sld [smem:[#allocation10 + $0x20]]  ;;  %v640_v47 = vstv %s3452_s5 }
  0x7f   : > { %s3464_s10 = sld [smem:[#allocation10 + $0x21]]  ;;  %v522_v40 = vstv %s3444_s15  ;;  %v3560_v58 = vmul.f32 %v640_v47, %v3404_v16  ;;  %v3586_v5 = vmul.f32 %v640_v47, %v3394_v6 }
  0x80   : > { %s3466_s14 = sld [smem:[#allocation10]]  ;;  %v3546_v51 = vmul.f32 %v522_v40, %v3404_v16  ;;  %v3574_v0 = vmul.f32 %v522_v40, %v3394_v6 }
  0x81   : > { %s3468_s21 = sld [smem:[#allocation10 + $0x1]]  ;;  %v650_v48 = vstv %s3456_s7 }
  0x82   : > { %s3473_s11 = sld [smem:[#allocation10 + $0x12]]  ;;  %v3564_v60 = vmul.f32 %v650_v48, %v3404_v16  ;;  %v3595_v9 = vmul.f32 %v650_v48, %v3394_v6 }
  0x83   : > { %s3478_s20 = sld [smem:[#allocation10 + $0x13]]  ;;  %v758_v52 = vstv %s3460_s13 }
  0x84   : > { %s3481_s9 = sld [smem:[#allocation12]]  ;;  %v3570_v62 = vmul.f32 %v758_v52, %v3404_v16  ;;  %v3598_v11 = vmul.f32 %v758_v52, %v3394_v6 }
  0x85   : > { %s3489_s22 = sld [smem:[#allocation12 + $0x3]]  ;;  %v768_v56 = vstv %s3464_s10 }
  0x86   : > { %s3497_s27 = sld [smem:[#allocation10 + $0x6]]  ;;  %v3580_v3 = vmul.f32 %v768_v56, %v3404_v16  ;;  %v3615_v25 = vmul.f32 %v768_v56, %v3394_v6  ;;  %v5870_v6 = vstv %s3466_s14 }
  0x87   : > { %s3505_s1 = sld [smem:[#allocation10 + $0x7]]  ;;  %v502_v1 = vstv %s3468_s21 }
  0x88   : > { %s3515_s18 = sld [smem:[#allocation10 + $0x18]]  ;;  %v3605_v17 = vmul.f32 %v502_v1, %v3408_v18 }
  0x89   : > { %s3527_s30 = sld [smem:[#allocation10 + $0x19]]  ;;  %v512_v7 = vstv %s3478_s20 }
  0x8a   : > { %s3539_s15 = sld [smem:[#allocation12 + $0x1]]  ;;  %v3618_v29 = vmul.f32 %v512_v7, %v3408_v18 }
  0x8b   : > { %s3549_s3 = sld [smem:[#allocation12 + $0x4]] }
  0x8c   : > { %s3557_s5 = sld [smem:[#allocation10 + $0xd]] }
  0x8d   : > { %s3567_s7 = sld [smem:[#allocation10 + $0x1f]]  ;;  %v620_v12 = vstv %s3505_s1 }
  0x8e   : > { %s3577_s13 = sld [smem:[#allocation10 + $0xc]]  ;;  %v3625_v47 = vmul.f32 %v620_v12, %v3408_v18 }
  0x8f   : > { %s3589_s10 = sld [smem:[#allocation10 + $0x1e]]  ;;  %v630_v22 = vstv %s3527_s30 }
  0x90   : > { %s3601_s21 = sld [smem:[#allocation12 + $0x5]]  ;;  %v3630_v52 = vmul.f32 %v630_v22, %v3408_v18  ;;  %v631_v55 = vmul.f32 %v630_v22, %v3398_v10  ;;  %v5869_v22 = vstv %s3450_s4 }
  0x91   : > { %s3890_s14 = sld [smem:[#allocation15]] }
  0x92   : > { %s3909_s20 = sld [smem:[#allocation15 + $0x2]] }
  0x93   : > { %v5802_v61 = vstv %s3567_s7  ;;  %s3927_s24 = sld [smem:[#allocation13 + $0x5]] }
  0x94   : > { %s4026_s26 = sld [smem:[#allocation13 + $0x7]] }
  0x95   : > { %s4062_s23 = sld [smem:[#allocation13 + $0x8]] }
  0x96   : > { %s2494_s8 = sld [smem:[#allocation16 + $0x2]] }
  0x97   : > { %s4119_s1 = sld [smem:[#allocation10 + $0x2b]] }
  0x98   : > { %s4123_s30 = sld [smem:[#allocation10 + $0x31]] }
  0xcb   : > { %v3475_v23 = vpop.permute.xlu2 %489 }
  0xd3   : > { %v492_v57 = vpop.permute.xlu2 %491 }
  0xd4   : > { %v494_v8 = vsel %vm471_vm0, %v492_v57, %v3475_v23  ;;  %v3612_v24 = vsel %vm471_vm0, %v3475_v23, %v492_v57  ;;  %v626_v23 = vstv %s3515_s18  ;;  %v738_v57 = vstv %s3557_s5  ;;  %s4121_s18 = sld [smem:[#allocation10 + $0x3d]] }
  0xd5   : > { %5862 = vst [vmem:[#allocation40_spill] sm:$0xff] %v3612_v24  ;;  %v495_v40 = vsel %vm471_vm0, 0.0, %v494_v8  ;;  %v544_v36 = vmul.f32 %v542_v26, %v3612_v24  ;;  %v554_v8 = vmul.f32 %v552_v28, %v3612_v24  ;;  %v672_v20 = vmul.f32 %v670_v34, %v3612_v24  ;;  %s4129_s5 = sld [smem:[#allocation10 + $0x3b]] }
  0xd6   : > { %v543_v63 = vmul.f32 %v542_v26, %v495_v40  ;;  %v553_v48 = vmul.f32 %v552_v28, %v495_v40  ;;  %v661_v32 = vmul.f32 %v660_v31, %v495_v40  ;;  %v671_v56 = vmul.f32 %v670_v34, %v495_v40 }
  0xd7   : > { %v3655_v59 = vmul.f32 %v738_v57, %v3408_v18  ;;  %v3667_v34 = vmul.f32 %v5802_v61, %v3408_v18  ;;  %v3671_v50 = vadd.f32 %v3485_v27, %v544_v36  ;;  %v560_v44 = vadd.f32 %v3493_v30, %v554_v8 }
  0xd8   : > { %v3677_v53 = vmul.f32 %v660_v31, %v3612_v24  ;;  %v559_v61 = vadd.f32 %v3521_v42, %v553_v48  ;;  %v3686_v27 = vadd.f32 %v3524_v43, %v661_v32  ;;  %v677_v30 = vadd.f32 %v3530_v45, %v671_v56 }
  0xd9   : > { %v678_v36 = vadd.f32 %v3508_v37, %v672_v20  ;;  %v3692_v31 = vmul.f32 %v5803_v35, %v495_v40  ;;  %v3696_v8 = vmul.f32 %v788_v38, %v495_v40  ;;  %v3704_v43 = vmul.f32 %v788_v38, %v3612_v24 }
  0xda   : > { %v503_v37 = vmul.f32 %v502_v1, %v3398_v10  ;;  %v513_v20 = vmul.f32 %v512_v7, %v3398_v10  ;;  %v5866_v48 = vstv %s3442_s29  ;;  %v5867_v56 = vstv %s3454_s6  ;;  %s3820_s6 = sld [smem:[#allocation13 + $0x1]] }
  0xdb   : > { %5863 = vst [vmem:[#allocation41_spill] sm:$0xff] %v3692_v31  ;;  %v5868_v38 = vmov %v5867_v56  ;;  %v3726_v7 = vmul.f32 %v738_v57, %v3398_v10  ;;  %s3913_s29 = sld [smem:[#allocation13 + $0x2]] }
  0xdf   : > { %v482_v2 = vpop.permute.xlu1 %481 }
  0xe1   : > { %v474_v13 = vpop.permute.xlu0 %473 }
  0xe7   : > { %v484_v14 = vpop.permute.xlu1 %483 }
  0xe8   : > { %v3660_v26 = vsel %vm471_vm0, %v482_v2, %v484_v14  ;;  %v486_v28 = vsel %vm471_vm0, %v484_v14, %v482_v2  ;;  %v3682_v14 = vadd.f32 %v3512_v39, %v543_v63  ;;  %v5864_v39 = vstv %s3446_s0  ;;  %s3806_s0 = sld [smem:[#allocation12 + $0x2]] }
  0xe9   : > { %v487_v2 = vsel %vm471_vm0, 0.0, %v486_v28  ;;  %v530_v63 = vmul.f32 %v5864_v39, %v3660_v26  ;;  %v476_v42 = vpop.permute.xlu0 %475  ;;  %v5865_v32 = vmov %v5864_v39  ;;  %v621_v39 = vmul.f32 %v620_v12, %v3398_v10 }
  0xea   : > { %v529_v45 = vmul.f32 %v5865_v32, %v487_v2  ;;  %v519_v40 = vmul.f32 %v5866_v48, %v487_v2  ;;  %v647_v28 = vmul.f32 %v5867_v56, %v487_v2  ;;  %v648_v35 = vmul.f32 %v5868_v38, %v3660_v26 }
  0xeb   : > { %v3721_v32 = vsel %vm471_vm0, %v474_v13, %v476_v42  ;;  %v478_v1 = vsel %vm471_vm0, %v476_v42, %v474_v13  ;;  %v520_v56 = vmul.f32 %v5866_v48, %v3660_v26  ;;  %v536_v12 = vadd.f32 %v3553_v54, %v530_v63 }
  0xec   : > { %v637_v15 = vmul.f32 %v5869_v22, %v487_v2  ;;  %v479_v38 = vsel %vm471_vm0, 0.0, %v478_v1  ;;  %v535_v16 = vadd.f32 %v3583_v4, %v529_v45  ;;  %v5871_v13 = vmov %v5870_v6 }
  0xed   : > { %v499_v18 = vmul.f32 %v5870_v6, %v479_v38  ;;  %v500_v57 = vmul.f32 %v5871_v13, %v3721_v32  ;;  %v5872_v42 = vstv %s3473_s11  ;;  %v525_v48 = vadd.f32 %v3574_v0, %v519_v40  ;;  %s3827_s11 = sld [smem:[#allocation13 + $0x4]] }
  0xee   : > { %v509_v46 = vmul.f32 %v5872_v42, %v479_v38  ;;  %v653_v31 = vadd.f32 %v3595_v9, %v647_v28  ;;  %v5873_v54 = vmov %v5872_v42  ;;  %v627_v22 = vmul.f32 %v626_v23, %v479_v38 }
  0xef   : > { %v510_v63 = vmul.f32 %v5873_v54, %v3721_v32  ;;  %v654_v1 = vadd.f32 %v3564_v60, %v648_v35  ;;  %v505_v4 = vadd.f32 %v503_v37, %v499_v18  ;;  %v628_v6 = vmul.f32 %v626_v23, %v3721_v32 }
  0xf0   : > { %v515_v45 = vadd.f32 %v513_v20, %v509_v46  ;;  %v5874_v13 = vstv %s3450_s4  ;;  %v5875_v0 = vstv %s3497_s27  ;;  %v633_v40 = vadd.f32 %v631_v55, %v627_v22  ;;  %s3815_s4 = sld [smem:[#allocation13]] }
  0xf1   : > { %v638_v21 = vmul.f32 %v5874_v13, %v3660_v26  ;;  %v516_v42 = vadd.f32 %v3618_v29, %v510_v63  ;;  %v617_v9 = vmul.f32 %v5875_v0, %v479_v38  ;;  %v526_v28 = vadd.f32 %v3546_v51, %v520_v56  ;;  %s4117_s27 = sld [smem:[#allocation10 + $0x37]] }
  0xf2   : > { %v506_v54 = vadd.f32 %v3605_v17, %v500_v57  ;;  %v539_v24 = vadd.f32 %v535_v16, %v515_v45  ;;  %v634_v18 = vadd.f32 %v3630_v52, %v628_v6  ;;  %v643_v35 = vadd.f32 %v3586_v5, %v637_v15 }
  0xf3   : > { %v540_v46 = vadd.f32 %v536_v12, %v516_v42  ;;  %v657_v60 = vadd.f32 %v653_v31, %v633_v40  ;;  %v5876_v29 = vstv %s3567_s7  ;;  %v5877_v37 = vstv %s3462_s12  ;;  %s3841_s12 = sld [smem:[#allocation13 + $0x6]] }
  0xf4   : > { %v749_v23 = vmul.f32 %v5876_v29, %v3398_v10  ;;  %v765_v55 = vmul.f32 %v5877_v37, %v487_v2  ;;  %v537_v51 = vadd.f32 %v525_v48, %v505_v4  ;;  %v563_v20 = vadd.f32 %v559_v61, %v539_v24  ;;  %s4131_s7 = sld [smem:[#allocation10 + $0x2f]] }
  0xf5   : > { %v658_v17 = vadd.f32 %v654_v1, %v634_v18  ;;  %v564_v16 = vadd.f32 %v560_v44, %v540_v46  ;;  %v5878_v52 = vmov %v5875_v0  ;;  %v623_v15 = vadd.f32 %v621_v39, %v617_v9 }
  0xf6   : > { %v618_v56 = vmul.f32 %v5878_v52, %v3721_v32  ;;  %v681_v5 = vadd.f32 %v677_v30, %v657_v60  ;;  %v644_v31 = vadd.f32 %v3560_v58, %v638_v21  ;;  %v538_v12 = vadd.f32 %v526_v28, %v506_v54 }
  0xf7   : > { %v5879_v57 = vstv %s3489_s22  ;;  %v682_v22 = vadd.f32 %v678_v36, %v658_v17  ;;  %v5880_v45 = vstv %s3458_s19  ;;  %v5881_v61 = vmov %v5877_v37  ;;  %s3900_s19 = sld [smem:[#allocation15 + $0x1]] }
  0xf8   : > { %v571_v63 = vadd.f32 %v5879_v57, %v563_v20  ;;  %v755_v6 = vmul.f32 %v5880_v45, %v487_v2  ;;  %v766_v24 = vmul.f32 %v5881_v61, %v3660_v26  ;;  %v5882_v48 = vmov %v5879_v57  ;;  %v5894_v57 = vld [vmem:[#allocation40_spill] sm:$0xff]  ;;  %s4115_s22 = sld [smem:[#allocation10 + $0x25]] }
  0xf9   : > { %v572_v44 = vadd.f32 %v5882_v48, %v564_v16  ;;  %v5883_v1 = vstv %s3549_s3  ;;  %v771_v30 = vadd.f32 %v3615_v25, %v765_v55  ;;  %v561_v21 = vadd.f32 %v3682_v14, %v537_v51  ;;  %s4127_s3 = sld [smem:[#allocation10 + $0x29]] }
  0xfa   : > { %v689_v4 = vadd.f32 %v5883_v1, %v681_v5  ;;  %v2459_v58 = vmul.f32 -1.442695, %v571_v63  ;;  %v5884_v39 = vmov %v5883_v1  ;;  %v624_v2 = vadd.f32 %v3625_v47, %v618_v56 }
  0xfb   : > { %v690_v36 = vadd.f32 %v5884_v39, %v682_v22  ;;  %v2460_v13 = vmul.f32 -1.442695, %v572_v44  ;;  %v655_v42 = vadd.f32 %v643_v35, %v623_v15  ;;  %v5885_v0 = vstv %s3577_s13  ;;  %s4133_s13 = sld [smem:[#allocation10 + $0x41]] }
  0xfc   : > { %v735_v9 = vmul.f32 %v5885_v0, %v479_v38  ;;  %v562_v40 = vadd.f32 %v3671_v50, %v538_v12  ;;  %2808 = vpow2.f32 %v2459_v58  ;;  %v2475_v28 = vmul.f32 -1.442695, %v689_v4 }
  0xfd   : > { %v5886_v25 = vstv %s3589_s10  ;;  %v772_v14 = vadd.f32 %v3580_v3, %v766_v24  ;;  %2810 = vpow2.f32 %v2460_v13  ;;  %v2476_v18 = vmul.f32 -1.442695, %v690_v36  ;;  %s4135_s10 = sld [smem:[#allocation10 + $0x35]] }
  0xfe   : > { %v745_v54 = vmul.f32 %v5886_v25, %v479_v38  ;;  %v5887_v46 = vmov %v5886_v25  ;;  %v5888_v29 = vmov %v5880_v45  ;;  %v5889_v35 = vstv %s3481_s9  ;;  %s3823_s9 = sld [smem:[#allocation13 + $0x3]]  ;;  %v5896_v45 = vld [vmem:[#allocation41_spill] sm:$0xff] }
  0xff   : > { %v746_v60 = vmul.f32 %v5887_v46, %v3721_v32  ;;  %v756_v47 = vmul.f32 %v5888_v29, %v3660_v26  ;;  %v567_v37 = vadd.f32 %v5889_v35, %v561_v21  ;;  %v5890_v55 = vmov %v5885_v0 }
 0x100   : > { %v736_v50 = vmul.f32 %v5890_v55, %v3721_v32  ;;  %v751_v51 = vadd.f32 %v749_v23, %v745_v54  ;;  %v761_v20 = vadd.f32 %v3598_v11, %v755_v6  ;;  %v656_v17 = vadd.f32 %v644_v31, %v624_v2  ;;  %v5897_v6 = vld [vmem:[#allocation39_spill] sm:$0xff] }
 0x101   : > { %v741_v38 = vadd.f32 %v3726_v7, %v735_v9  ;;  %v752_v3 = vadd.f32 %v3667_v34, %v746_v60  ;;  %v5891_v16 = vmov %v5889_v35  ;;  %v679_v56 = vadd.f32 %v3686_v27, %v655_v42 }
 0x102   : > { %v568_v52 = vadd.f32 %v5891_v16, %v562_v40  ;;  %2812 = vpow2.f32 %v2475_v28  ;;  %v775_v26 = vadd.f32 %v771_v30, %v751_v51  ;;  %v795_v15 = vadd.f32 %v3542_v49, %v3696_v8  ;;  %v2809_v7 = vpop.eup %2808 }
 0x103   : > { %v796_v32 = vadd.f32 %v3518_v41, %v3704_v43  ;;  %2814 = vpow2.f32 %v2476_v18  ;;  %v776_v11 = vadd.f32 %v772_v14, %v752_v3  ;;  %v668_v34 = vadd.f32 %v3500_v33, %v3677_v53  ;;  %v2811_v8 = vpop.eup %2810 }
 0x104   : > { %v762_v27 = vadd.f32 %v3570_v62, %v756_v47  ;;  %2816 = vtanh.f32 %v567_v37  ;;  %v742_v49 = vadd.f32 %v3655_v59, %v736_v50  ;;  %v3825_v41 = vadd.f32 1.0, %v2809_v7 }
 0x105   : > { %v773_v43 = vadd.f32 %v761_v20, %v741_v38  ;;  %v799_v23 = vadd.f32 %v795_v15, %v775_v26  ;;  %v800_v5 = vadd.f32 %v796_v32, %v776_v11  ;;  %2818 = vtanh.f32 %v568_v52 }
 0x106   : > { %v3829_v33 = vadd.f32 1.0, %v2811_v8  ;;  %v680_v53 = vadd.f32 %v668_v34, %v656_v17  ;;  %v5892_v62 = vstv %s3539_s15  ;;  %v5893_v59 = vstv %s3436_s28  ;;  %s2493_s28 = sld [smem:[#allocation16 + $0x1]] }
 0x107   : > { %v685_v31 = vadd.f32 %v5892_v62, %v679_v56  ;;  %v784_v12 = vmul.f32 %v5893_v59, %v3412_v19  ;;  %v5895_v63 = vstv %s3434_s25  ;;  %v785_v61 = vadd.f32 %v5897_v6, %v5896_v45  ;;  %s851_s25 = sld [smem:[#allocation16]] }
 0x108   : > { %v780_v22 = vmul.f32 %v5895_v63, %v5894_v57  ;;  %2820 = vrcp.f32 %v3825_v41  ;;  %v2813_v24 = vpop.eup %2812  ;;  %v774_v48 = vadd.f32 %v762_v27, %v742_v49  ;;  %v5898_v30 = vstv %s3601_s21  ;;  %s4125_s15 = sld [smem:[#allocation10 + $0x43]] }
 0x109   : > { %2822 = vrcp.f32 %v3829_v33  ;;  %v2815_v44 = vpop.eup %2814  ;;  %v3845_v1 = vadd.f32 1.0, %v2813_v24  ;;  %v797_v4 = vadd.f32 %v785_v61, %v773_v43  ;;  %v807_v21 = vadd.f32 %v5898_v30, %v799_v23  ;;  %s4137_s21 = sld [smem:[#allocation10 + $0x47]] }
 0x10a   : > { %v5899_v58 = vmov %v5898_v30  ;;  %v3851_v36 = vpop.eup %2816  ;;  %v802_v13 = vstv %s3806_s0  ;;  %v5900_v2 = vmov %v5892_v62  ;;  %2824 = vtanh.f32 %v685_v31  ;;  %s4139_s0 = sld [smem:[#allocation10 + $0x27]] }
 0x10b   : > { %v808_v39 = vadd.f32 %v5899_v58, %v800_v5  ;;  %v686_v42 = vadd.f32 %v5900_v2, %v680_v53  ;;  %v3856_v0 = vadd.f32 1.0, %v2815_v44  ;;  %v786_v9 = vadd.f32 %v784_v12, %v780_v22  ;;  %v3859_v40 = vpop.eup %2818 }
 0x10c   : > { %2826 = vrcp.f32 %v3845_v1  ;;  %v872_v28 = vstv %s3815_s4  ;;  %v878_v25 = vstv %s3820_s6  ;;  %v803_v18 = vadd.f32 %v802_v13, %v797_v4  ;;  %s4141_s4 = sld [smem:[#allocation10 + $0x39]] }
 0x10d   : > { %2828 = vrcp.f32 %v3856_v0  ;;  %v798_v14 = vadd.f32 %v786_v9, %v774_v48  ;;  %v2491_v46 = vmul.f32 -1.442695, %v807_v21  ;;  %v2492_v60 = vmul.f32 -1.442695, %v808_v39  ;;  %s4143_s6 = sld [smem:[#allocation10 + $0x2d]] }
 0x10e   : > { %v3864_v54 = vpop.eup %2820  ;;  %v894_v47 = vstv %s3823_s9  ;;  %v900_v35 = vstv %s3827_s11  ;;  %2830 = vtanh.f32 %v686_v42  ;;  %v916_v55 = vstv %s3841_s12  ;;  %s4145_s9 = sld [smem:[#allocation10 + $0x3f]] }
 0x10f   : > { %v3866_v29 = vpop.eup %2822  ;;  %v584_v37 = vmul.f32 %v3864_v54, %v3825_v41  ;;  %v592_v50 = vand.u32 2147483647, %v3825_v41  ;;  %2832 = vpow2.f32 %v2491_v46  ;;  %v594_v38 = vand.u32 2147483648, %v3825_v41  ;;  %s4147_s11 = sld [smem:[#allocation10 + $0x33]] }
 0x110   : > { %v599_v51 = vmul.f32 %v3866_v29, %v3829_v33  ;;  %v3876_v20 = vpop.eup %2824  ;;  %v607_v3 = vand.u32 2147483647, %v3829_v33  ;;  %2834 = vpow2.f32 %v2492_v60  ;;  %v609_v56 = vand.u32 2147483648, %v3829_v33  ;;  %s4149_s12 = sld [smem:[#allocation10 + $0x45]] }
 0x111   : > { %v585_v17 = vsub.f32 1.0, %v584_v37  ;;  %v804_v26 = vadd.f32 %v802_v13, %v798_v14  ;;  %2836 = vtanh.f32 %v803_v18  ;;  %vm588_vm1 = vweird.f32 %v3825_v41 }
 0x112   : > { %v3880_v16 = vpop.eup %2826  ;;  %v600_v52 = vsub.f32 1.0, %v599_v51  ;;  %vm603_vm2 = vweird.f32 %v3829_v33  ;;  %vm589_vm3 = vweird.f32 %v3864_v54  ;;  %vm3893_vm4 = vcmp.eq.f32.partialorder %v592_v50, 8.507059e+37  ;;  %v5917_v51 = vld [vmem:[#allocation37_spill] sm:$0xff] }
 0x113   : > { %v3883_v15 = vpop.eup %2828  ;;  %v586_v32 = vmul.f32 %v3864_v54, %v585_v17  ;;  %v702_v11 = vmul.f32 %v3880_v16, %v3845_v1  ;;  %v595_v43 = vor.u32 1.1754944e-38, %v594_v38  ;;  %vm3905_vm5 = vcmp.eq.f32.partialorder %v607_v3, 8.507059e+37  ;;  %vm3919_vm7 = vmor %vm588_vm1, %vm589_vm3 }
 0x114   : > { %v601_v34 = vmul.f32 %v3866_v29, %v600_v52  ;;  %v717_v27 = vmul.f32 %v3883_v15, %v3856_v0  ;;  %v3902_v49 = vpop.eup %2830  ;;  %vm604_vm6 = vweird.f32 %v3866_v29  ;;  %v610_v31 = vor.u32 1.1754944e-38, %v609_v56 }
 0x115   : > { %v587_v8 = vadd.f32 %v3864_v54, %v586_v32  ;;  %v703_v5 = vsub.f32 1.0, %v702_v11  ;;  %v2833_v53 = vpop.eup %2832  ;;  %v710_v22 = vand.u32 2147483647, %v3845_v1  ;;  %2838 = vtanh.f32 %v804_v26  ;;  %vm3942_vm8 = vmor %vm603_vm2, %vm604_vm6 }
 0x116   : > { %v602_v62 = vadd.f32 %v3866_v29, %v601_v34  ;;  %v718_v59 = vsub.f32 1.0, %v717_v27  ;;  %v2835_v12 = vpop.eup %2834  ;;  %v3925_v45 = vadd.f32 1.0, %v2833_v53  ;;  %v712_v41 = vand.u32 2147483648, %v3845_v1 }
 0x117   : > { %v704_v63 = vmul.f32 %v3880_v16, %v703_v5  ;;  %v3929_v6 = vpop.eup %2836  ;;  %v591_v61 = vsel %vm3919_vm7, %v3864_v54, %v587_v8  ;;  %v3936_v48 = vadd.f32 1.0, %v2835_v12  ;;  %vm707_vm9 = vweird.f32 %v3880_v16 }
 0x118   : > { %v719_v24 = vmul.f32 %v3883_v15, %v718_v59  ;;  %v725_v30 = vand.u32 2147483647, %v3856_v0  ;;  %2840 = vrcp.f32 %v3925_v45  ;;  %v606_v21 = vsel %vm3942_vm8, %v3866_v29, %v602_v62 }
 0x119   : > { %v705_v4 = vadd.f32 %v3880_v16, %v704_v63  ;;  %vm722_vm10 = vweird.f32 %v3883_v15  ;;  %v727_v33 = vand.u32 2147483648, %v3856_v0  ;;  %v596_v39 = vsel %vm3893_vm4, %v595_v43, %v591_v61 }
 0x11a   : > { %v720_v58 = vadd.f32 %v3883_v15, %v719_v24  ;;  %vm706_vm11 = vweird.f32 %v3845_v1  ;;  %2842 = vrcp.f32 %v3936_v48  ;;  %v868_v13 = vstv %s3890_s14  ;;  %s4151_s14 = sld [smem:[#allocation15 + $0x3]] }
 0x11b   : > { %vm3961_vm12 = vmor %vm706_vm11, %vm707_vm9  ;;  %vm3965_vm13 = vcmp.eq.f32.partialorder %v710_v22, 8.507059e+37  ;;  %v713_v9 = vor.u32 1.1754944e-38, %v712_v41  ;;  %vm721_vm14 = vweird.f32 %v3856_v0  ;;  %v890_v54 = vstv %s3900_s19  ;;  %v3971_v14 = vpop.eup %2838  ;;  %s4153_s19 = sld [smem:[#allocation15 + $0x4]] }
 0x11c   : > { %v611_v1 = vsel %vm3905_vm5, %v610_v31, %v606_v21  ;;  %v709_v18 = vsel %vm3961_vm12, %v3880_v16, %v705_v4  ;;  %vm3978_vm15 = vmor %vm721_vm14, %vm722_vm10  ;;  %vm3982_vm1 = vcmp.eq.f32.partialorder %v725_v30, 8.507059e+37  ;;  %v912_v29 = vstv %s3909_s20  ;;  %v5918_v16 = vld [vmem:[#allocation34_spill] sm:$0xff]  ;;  %s4155_s20 = sld [smem:[#allocation15 + $0x5]] }
 0x11d   : > { %v3988_v0 = vmul.f32 %v3851_v36, %v596_v39  ;;  %v724_v37 = vsel %vm3978_vm15, %v3883_v15, %v720_v58  ;;  %v728_v50 = vor.u32 1.1754944e-38, %v727_v33  ;;  %v870_v17 = vadd.f32 %v868_v13, %v5917_v51 }
 0x11e   : > { %v2841_v38 = vpop.eup %2840  ;;  %v884_v3 = vstv %s3913_s29  ;;  %v891_v52 = vadd.f32 %v890_v54, %v5918_v16  ;;  %v906_v56 = vstv %s3927_s24  ;;  %v869_v26 = vadd.f32 %v868_v13, %v3398_v10  ;;  %v5919_v10 = vld [vmem:[#allocation36_spill] sm:$0xff]  ;;  %s4157_s29 = sld [smem:[#allocation10 + $0x24]] }
 0x11f   : > { %v3999_v32 = vmul.f32 %v3859_v40, %v611_v1  ;;  %v714_v36 = vsel %vm3965_vm13, %v713_v9, %v709_v18  ;;  %v820_v15 = vmul.f32 %v2841_v38, %v3925_v45  ;;  %v914_v11 = vadd.f32 %v912_v29, %v3412_v19  ;;  %v5924_v18 = vld [vmem:[#allocation35_spill] sm:$0xff]  ;;  %s4159_s24 = sld [smem:[#allocation10 + $0x36]] }
 0x120   : > { %v2843_v7 = vpop.eup %2842  ;;  %v729_v34 = vsel %vm3982_vm1, %v728_v50, %v724_v37  ;;  %vm824_vm2 = vweird.f32 %v3925_v45  ;;  %v828_v27 = vand.u32 2147483647, %v3925_v45  ;;  %v892_v8 = vadd.f32 %v890_v54, %v5919_v10 }
 0x121   : > { %v821_v40 = vsub.f32 1.0, %v820_v15  ;;  %v835_v43 = vmul.f32 %v2843_v7, %v3936_v48  ;;  %v873_v23 = vmul.f32 %v872_v28, %v3988_v0  ;;  %v895_v19 = vmul.f32 %v894_v47, %v3988_v0 }
 0x122   : > { %v4018_v5 = vmul.f32 %v3876_v20, %v714_v36  ;;  %v830_v53 = vand.u32 2147483648, %v3925_v45  ;;  %v843_v62 = vand.u32 2147483647, %v3936_v48  ;;  %v845_v31 = vand.u32 2147483648, %v3936_v48 }
 0x123   : > { %v822_v59 = vmul.f32 %v2841_v38, %v821_v40  ;;  %vm825_vm3 = vweird.f32 %v2841_v38  ;;  %v836_v12 = vsub.f32 1.0, %v835_v43  ;;  %v874_v57 = vmul.f32 %v872_v28, %v3999_v32 }
 0x124   : > { %v4029_v63 = vmul.f32 %v3902_v49, %v729_v34  ;;  %vm4031_vm4 = vcmp.eq.f32.partialorder %v828_v27, 8.507059e+37  ;;  %vm839_vm5 = vweird.f32 %v3936_v48  ;;  %vm840_vm6 = vweird.f32 %v2843_v7  ;;  %vm826_vm7 = vmor %vm824_vm2, %vm825_vm3 }
 0x125   : > { %v823_v22 = vadd.f32 %v2841_v38, %v822_v59  ;;  %v837_v61 = vmul.f32 %v2843_v7, %v836_v12  ;;  %v897_v41 = vadd.f32 %v895_v19, %v891_v52  ;;  %v875_v28 = vadd.f32 %v873_v23, %v869_v26  ;;  %vm841_vm9 = vmor %vm839_vm5, %vm840_vm6 }
 0x126   : > { %v831_v24 = vor.u32 1.1754944e-38, %v830_v53  ;;  %vm4038_vm8 = vcmp.eq.f32.partialorder %v843_v62, 8.507059e+37  ;;  %v846_v44 = vor.u32 1.1754944e-38, %v845_v31  ;;  %v879_v4 = vmul.f32 %v878_v25, %v4018_v5 }
 0x127   : > { %v827_v30 = vsel %vm826_vm7, %v2841_v38, %v823_v22  ;;  %v838_v21 = vadd.f32 %v2843_v7, %v837_v61  ;;  %v901_v58 = vmul.f32 %v900_v35, %v4018_v5  ;;  %v876_v33 = vadd.f32 %v874_v57, %v870_v17 }
 0x128   : > { %v832_v45 = vsel %vm4031_vm4, %v831_v24, %v827_v30  ;;  %v880_v39 = vmul.f32 %v878_v25, %v4029_v63  ;;  %v896_v13 = vmul.f32 %v894_v47, %v3999_v32  ;;  %v918_v2 = vmul.f32 %v916_v55, %v3999_v32 }
 0x129   : > { %v842_v42 = vsel %vm841_vm9, %v2843_v7, %v838_v21  ;;  %v849_v9 = vmul.f32 %v3929_v6, %v832_v45  ;;  %v903_v54 = vadd.f32 %v901_v58, %v897_v41  ;;  %v881_v1 = vadd.f32 %v879_v4, %v875_v28 }
 0x12a   : > { %v847_v48 = vsel %vm4038_vm8, %v846_v44, %v842_v42  ;;  %v917_v25 = vmul.f32 %v916_v55, %v3988_v0  ;;  %v913_v46 = vadd.f32 %v912_v29, %v5924_v18  ;;  %v882_v60 = vadd.f32 %v880_v39, %v876_v33 }
 0x12b   : > { %v850_v47 = vmul.f32 %v3971_v14, %v847_v48  ;;  %v907_v37 = vmul.f32 %v906_v56, %v849_v9  ;;  %v885_v50 = vmul.f32 %v884_v3, %v849_v9  ;;  %v922_v51 = vstv %s4026_s26  ;;  %s4161_s26 = sld [smem:[#allocation10 + $0x2a]] }
 0x12c   : > { %v920_v6 = vadd.f32 %v918_v2, %v914_v11  ;;  %v898_v52 = vadd.f32 %v896_v13, %v892_v8  ;;  %v902_v55 = vmul.f32 %v900_v35, %v4029_v63  ;;  %v924_v29 = vmul.f32 %v922_v51, %v4029_v63 }
 0x12d   : > { %v886_v17 = vmul.f32 %v884_v3, %v850_v47  ;;  %v4075_v38 = vadd.f32 %v907_v37, %v903_v54  ;;  %v4077_v16 = vadd.f32 %v885_v50, %v881_v1  ;;  %v919_v3 = vadd.f32 %v917_v25, %v913_v46 }
 0x12e   : > { %v928_v26 = vstv %s4062_s23  ;;  %v923_v36 = vmul.f32 %v922_v51, %v4018_v5  ;;  %v926_v15 = vadd.f32 %v924_v29, %v920_v6  ;;  %v904_v35 = vadd.f32 %v902_v55, %v898_v52  ;;  %s4163_s23 = sld [smem:[#allocation10 + $0x3c]] }
 0x12f   : > { %5925 = vst [vmem:[#allocation40_spill] sm:$0xff] %v4075_v38  ;;  %v4083_v14 = vadd.f32 %v886_v17, %v882_v60  ;;  %943 = vrot.lane.b32.xlu2 %v4075_v38, %s5811_s2  ;;  %935 = vrot.lane.b32.xlu0 %v4077_v16, %s5811_s2  ;;  %v930_v7 = vmul.f32 %v928_v26, %v850_v47  ;;  %v856_v43 = vstv %s2493_s28  ;;  %v862_v23 = vstv %s2494_s8  ;;  %s4167_s28 = sld [smem:[#allocation10 + $0x42]] }
 0x130   : > { %5926 = vst [vmem:[#allocation41_spill] sm:$0xff] %v4077_v16  ;;  %v925_v11 = vadd.f32 %v923_v36, %v919_v3  ;;  %v908_v34 = vmul.f32 %v906_v56, %v850_v47  ;;  %v929_v27 = vmul.f32 %v928_v26, %v849_v9  ;;  %v852_v56 = vstv %s851_s25  ;;  %s4165_s25 = sld [smem:[#allocation10 + $0x30]] }
 0x131   : > { %5927 = vst [vmem:[#allocation39_spill] sm:$0xff] %v4083_v14  ;;  %937 = vrot.lane.b32.xlu1 %v4083_v14, %s5811_s2  ;;  %v4095_v10 = vadd.f32 %v930_v7, %v926_v15  ;;  %v854_v19 = vmul.f32 %v852_v56, %v3999_v32  ;;  %v858_v53 = vmul.f32 %v856_v43, %v4029_v63  ;;  %s4170_s8 = sld [smem:[#allocation10 + $0x28]]  ;;  %v974_v32 = vstv %s4117_s27 }
 0x132   : > { %v4097_v8 = vadd.f32 %v908_v34, %v904_v35  ;;  %v4099_v40 = vadd.f32 %v929_v27, %v925_v11  ;;  %v853_v62 = vmul.f32 %v852_v56, %v3988_v0  ;;  %v857_v31 = vmul.f32 %v856_v43, %v4018_v5  ;;  %s4184_s27 = sld [smem:[#allocation10 + $0x40]] }
 0x133   : > { %5928 = vst [vmem:[#allocation37_spill] sm:$0xff] %v4095_v10  ;;  %v860_v59 = vadd.f32 %v858_v53, %v854_v19  ;;  %v864_v12 = vmul.f32 %v862_v23, %v850_v47  ;;  %v863_v20 = vmul.f32 %v862_v23, %v849_v9  ;;  %v964_v0 = vstv %s4115_s22  ;;  %s4181_s22 = sld [smem:[#allocation10 + $0x2e]] }
 0x134   : > { %5929 = vst [vmem:[#allocation34_spill] sm:$0xff] %v4097_v8  ;;  %v859_v57 = vadd.f32 %v857_v31, %v853_v62  ;;  %v1082_v5 = vstv %s4119_s1  ;;  %v1092_v63 = vstv %s4121_s18  ;;  %v1200_v41 = vstv %s4123_s30  ;;  %s4190_s1 = sld [smem:[#allocation10 + $0x34]] }
 0x135   : > { %5930 = vst [vmem:[#allocation36_spill] sm:$0xff] %v4099_v40  ;;  %v4111_v22 = vadd.f32 %v864_v12, %v860_v59  ;;  %v1210_v28 = vstv %s4125_s15  ;;  %v1008_v24 = vstv %s4127_s3  ;;  %v1018_v49 = vstv %s4129_s5  ;;  %s4196_s18 = sld [smem:[#allocation10 + $0x46]] }
 0x136   : > { %v4113_v61 = vadd.f32 %v863_v20, %v859_v57  ;;  %v1126_v44 = vstv %s4131_s7  ;;  %v1136_v4 = vstv %s4133_s13  ;;  %v1244_v30 = vstv %s4135_s10  ;;  %s4214_s30 = sld [smem:[#allocation10 + $0x26]]  ;;  %v5937_v57 = vld [vmem:[#allocation38_spill] sm:$0xff] }
 0x137   : > { %953 = vrot.lane.b32.xlu2 %v4095_v10, %s5811_s2  ;;  %945 = vrot.lane.b32.xlu0 %v4097_v8, %s5811_s2  ;;  %5931 = vst [vmem:[#allocation35_spill] sm:$0xff] %v4111_v22  ;;  %v1254_v21 = vstv %s4137_s21  ;;  %v984_v58 = vstv %s4139_s0  ;;  %v4203_v1 = vmul.f32 %v964_v0, %v4077_v16  ;;  %v4206_v48 = vmul.f32 %v974_v32, %v4077_v16  ;;  %s4228_s15 = sld [smem:[#allocation10 + $0x38]] }
 0x138   : > { %5932 = vst [vmem:[#allocation42_spill] sm:$0xff] %v4113_v61  ;;  %v994_v33 = vstv %s4141_s4  ;;  %v1102_v45 = vstv %s4143_s6  ;;  %v1112_v39 = vstv %s4145_s9  ;;  %v1220_v13 = vstv %s4147_s11  ;;  %s4242_s3 = sld [smem:[#allocation12 + $0x6]] }
 0x139   : > { %951 = vrot.lane.b32.xlu1 %v4099_v40, %s5811_s2  ;;  %s4176_s2 = sld [smem:[#allocation10 + $0x3a]]  ;;  %v1230_v2 = vstv %s4149_s12  ;;  %v4209_v25 = vmul.f32 %v1082_v5, %v4077_v16  ;;  %v4212_v18 = vmul.f32 %v1092_v63, %v4077_v16  ;;  %v4217_v46 = vmul.f32 %v964_v0, %v4083_v14 }
 0x13a   : > { %v4220_v47 = vmul.f32 %v974_v32, %v4083_v14  ;;  %v4223_v60 = vmul.f32 %v1082_v5, %v4083_v14  ;;  %v4226_v37 = vmul.f32 %v1092_v63, %v4083_v14  ;;  %v4231_v50 = vmul.f32 %v1200_v41, %v4083_v14  ;;  %s4256_s5 = sld [smem:[#allocation12 + $0x9]] }
 0x13b   : > { %v4234_v51 = vmul.f32 %v1210_v28, %v4083_v14  ;;  %v4237_v6 = vmul.f32 %v1200_v41, %v4077_v16  ;;  %v4240_v17 = vmul.f32 %v1210_v28, %v4077_v16  ;;  %v4245_v52 = vmul.f32 %v1008_v24, %v4095_v10  ;;  %s4270_s7 = sld [smem:[#allocation10 + $0x2c]] }
 0x13c   : > { %v4248_v55 = vmul.f32 %v1018_v49, %v4095_v10  ;;  %v4251_v29 = vmul.f32 %v1126_v44, %v4095_v10  ;;  %v4254_v3 = vmul.f32 %v1136_v4, %v4095_v10  ;;  %v4259_v26 = vmul.f32 %v1244_v30, %v4095_v10  ;;  %s4284_s13 = sld [smem:[#allocation10 + $0x3e]] }
 0x13d   : > { %5933 = vst [vmem:[#allocation43_spill] sm:$0xff] %v4234_v51  ;;  %v4262_v36 = vmul.f32 %v1254_v21, %v4095_v10  ;;  %v4265_v15 = vmul.f32 %v1008_v24, %v4099_v40  ;;  %v4268_v35 = vmul.f32 %v1018_v49, %v4099_v40  ;;  %v4273_v11 = vmul.f32 %v1126_v44, %v4099_v40  ;;  %s4298_s10 = sld [smem:[#allocation12 + $0xa]] }
 0x13e   : > { %5934 = vst [vmem:[#allocation44_spill] sm:$0xff] %v4259_v26  ;;  %v4276_v7 = vmul.f32 %v1136_v4, %v4099_v40  ;;  %v4279_v34 = vmul.f32 %v1244_v30, %v4099_v40  ;;  %v4282_v27 = vmul.f32 %v1254_v21, %v4099_v40  ;;  %v4287_v56 = vmul.f32 %v984_v58, %v4075_v38  ;;  %s4312_s21 = sld [smem:[#allocation10 + $0x32]] }
 0x13f   : > { %5935 = vst [vmem:[#allocation45_spill] sm:$0xff] %v4262_v36  ;;  %v4290_v43 = vmul.f32 %v984_v58, %v4097_v8  ;;  %v4293_v23 = vmul.f32 %v994_v33, %v4075_v38  ;;  %v4296_v19 = vmul.f32 %v994_v33, %v4097_v8  ;;  %v4301_v53 = vmul.f32 %v1102_v45, %v4075_v38  ;;  %s4323_s0 = sld [smem:[#allocation10 + $0x44]] }
 0x140   : > { %5936 = vst [vmem:[#allocation46_spill] sm:$0xff] %v4282_v27  ;;  %v4304_v62 = vmul.f32 %v1102_v45, %v4097_v8  ;;  %v4307_v31 = vmul.f32 %v1112_v39, %v4075_v38  ;;  %v4310_v59 = vmul.f32 %v1112_v39, %v4097_v8  ;;  %vm933_vm10 = vcmp.lt.s32.totalorder %v5937_v57, 2  ;;  %s4460_s4 = sld [smem:[#allocation12 + $0x8]] }
 0x141   : > { %v4318_v0 = vmul.f32 %v1220_v13, %v4075_v38  ;;  %v4321_v32 = vmul.f32 %v1220_v13, %v4097_v8  ;;  %v4326_v5 = vmul.f32 %v1230_v2, %v4075_v38  ;;  %v960_v63 = vstv %s4157_s29  ;;  %s4464_s6 = sld [smem:[#allocation12 + $0xb]] }
 0x142   : > { %v970_v41 = vstv %s4159_s24  ;;  %v1078_v28 = vstv %s4161_s26  ;;  %v4332_v24 = vmul.f32 %v1230_v2, %v4097_v8  ;;  %v1088_v44 = vstv %s4163_s23  ;;  %s4472_s9 = sld [smem:[#allocation13 + $0x9]]  ;;  %s5980_s23 = smov 1  }
 0x143   : > { %5938 = vst [vmem:[#allocation38_spill] sm:$0xff] %v4326_v5  ;;  %v1196_v4 = vstv %s4165_s25  ;;  %v1206_v30 = vstv %s4167_s28  ;;  %v1004_v21 = vstv %s4170_s8  ;;  %v1014_v45 = vstv %s4176_s2  ;;  %s4449_s2 = sld [smem:[#allocation12 + $0x7]] }
 0x144   : > { %5939 = vst [vmem:[#allocation47_spill] sm:$0xff] %v4332_v24  ;;  %v1122_v39 = vstv %s4181_s22  ;;  %v1132_v2 = vstv %s4184_s27  ;;  %v980_v8 = vstv %s4214_s30  ;;  %v1108_v14 = vstv %s4284_s13  ;;  %s4481_s11 = sld [smem:[#allocation13 + $0xa]] }
 0x145   : > { %s4488_s12 = sld [smem:[#allocation13 + $0xc]] }
 0x146   : > { %s4493_s29 = sld [smem:[#allocation13 + $0xd]] }
 0x147   : > { %s4497_s24 = sld [smem:[#allocation13 + $0xf]] }
 0x148   : > { %s4500_s26 = sld [smem:[#allocation13 + $0x10]] }
 0x149   : > { %s2553_s25 = sld [smem:[#allocation16 + $0x3]] }
 0x14a   : > { %s2554_s28 = sld [smem:[#allocation16 + $0x4]] }
 0x14b   : > { %s2555_s8 = sld [smem:[#allocation16 + $0x5]] }
 0x14c   : > { %s4713_s22 = sld [smem:[#allocation10 + $0x49]] }
 0x14d   : > { %s4715_s27 = sld [smem:[#allocation10 + $0x5b]] }
 0x14e   : > { %s4721_s30 = sld [smem:[#allocation10 + $0x55]] }
 0x14f   : > { %s4731_s13 = sld [smem:[#allocation10 + $0x65]] }
 0x189   : > { %v4314_v12 = vpop.permute.xlu2 %943 }
 0x1a1   : > { %v936_v20 = vpop.permute.xlu0 %935 }
 0x1a3   : > { %v938_v49 = vpop.permute.xlu1 %937 }
 0x1a4   : > { %v939_v58 = vsel %vm933_vm10, %v936_v20, %v938_v49  ;;  %v940_v33 = vsel %vm933_vm10, %v938_v49, %v936_v20  ;;  %v990_v20 = vstv %s4228_s15  ;;  %v1098_v49 = vstv %s4270_s7  ;;  %s4723_s15 = sld [smem:[#allocation10 + $0x67]] }
 0x1a5   : > { %v941_v13 = vsel %vm933_vm10, 0.0, %v940_v33  ;;  %v962_v42 = vmul.f32 %v960_v63, %v939_v58  ;;  %v972_v22 = vmul.f32 %v970_v41, %v939_v58  ;;  %v1080_v61 = vmul.f32 %v1078_v28, %v939_v58  ;;  %s4729_s7 = sld [smem:[#allocation10 + $0x53]] }
 0x1a6   : > { %v961_v10 = vmul.f32 %v960_v63, %v941_v13  ;;  %v971_v40 = vmul.f32 %v970_v41, %v941_v13  ;;  %v1079_v27 = vmul.f32 %v1078_v28, %v941_v13  ;;  %v1089_v24 = vmul.f32 %v1088_v44, %v941_v13  ;;  %v954_v41 = vpop.permute.xlu2 %953 }
 0x1a7   : > { %v1216_v33 = vstv %s4312_s21  ;;  %v968_v9 = vadd.f32 %v4217_v46, %v962_v42  ;;  %v978_v26 = vadd.f32 %v4220_v47, %v972_v22  ;;  %v1086_v51 = vadd.f32 %v4223_v60, %v1080_v61  ;;  %s4735_s21 = sld [smem:[#allocation10 + $0x6b]] }
 0x1a8   : > { %v967_v16 = vadd.f32 %v4203_v1, %v961_v10  ;;  %v977_v36 = vadd.f32 %v4206_v48, %v971_v40  ;;  %v1090_v28 = vmul.f32 %v1088_v44, %v939_v58  ;;  %v1197_v42 = vmul.f32 %v1196_v4, %v941_v13 }
 0x1a9   : > { %v946_v54 = vpop.permute.xlu0 %945  ;;  %v1198_v46 = vmul.f32 %v1196_v4, %v939_v58  ;;  %v1207_v47 = vmul.f32 %v1206_v30, %v941_v13  ;;  %v1085_v48 = vadd.f32 %v4209_v25, %v1079_v27  ;;  %v1095_v60 = vadd.f32 %v4212_v18, %v1089_v24 }
 0x1aa   : > { %v948_v63 = vsel %vm933_vm10, %v946_v54, %v4314_v12  ;;  %v4400_v18 = vmul.f32 %v1206_v30, %v939_v58 }
 0x1ab   : > { %v952_v38 = vpop.permute.xlu1 %951  ;;  %v4368_v5 = vsel %vm933_vm10, 0.0, %v948_v63  ;;  %v1096_v63 = vadd.f32 %v4226_v37, %v1090_v28  ;;  %v4398_v25 = vadd.f32 %v4231_v50, %v1198_v46  ;;  %v4404_v37 = vadd.f32 %v4240_v17, %v1207_v47 }
 0x1ac   : > { %v4372_v22 = vsel %vm933_vm10, %v952_v38, %v954_v41  ;;  %v956_v61 = vsel %vm933_vm10, %v954_v41, %v952_v38  ;;  %v981_v4 = vmul.f32 %v980_v8, %v4368_v5  ;;  %v4392_v41 = vsel %vm933_vm10, %v4314_v12, %v946_v54 }
 0x1ad   : > { %v4378_v10 = vsel %vm933_vm10, 0.0, %v956_v61  ;;  %v1006_v40 = vmul.f32 %v1004_v21, %v4372_v22  ;;  %v1016_v1 = vmul.f32 %v1014_v45, %v4372_v22  ;;  %v1124_v44 = vmul.f32 %v1122_v39, %v4372_v22 }
 0x1ae   : > { %v1005_v38 = vmul.f32 %v1004_v21, %v4378_v10  ;;  %v1015_v13 = vmul.f32 %v1014_v45, %v4378_v10  ;;  %v4395_v61 = vadd.f32 %v4237_v6, %v1197_v42  ;;  %v1123_v27 = vmul.f32 %v1122_v39, %v4378_v10 }
 0x1af   : > { %v1012_v24 = vadd.f32 %v4245_v52, %v1006_v40  ;;  %v1022_v21 = vadd.f32 %v4248_v55, %v1016_v1  ;;  %v1133_v54 = vmul.f32 %v1132_v2, %v4378_v10  ;;  %v1130_v12 = vadd.f32 %v4251_v29, %v1124_v44 }
 0x1b0   : > { %v982_v6 = vmul.f32 %v980_v8, %v4392_v41  ;;  %v987_v50 = vadd.f32 %v4287_v56, %v981_v4  ;;  %v991_v30 = vmul.f32 %v990_v20, %v4368_v5  ;;  %v1011_v58 = vadd.f32 %v4265_v15, %v1005_v38 }
 0x1b1   : > { %v1021_v45 = vadd.f32 %v4268_v35, %v1015_v13  ;;  %v1134_v17 = vmul.f32 %v1132_v2, %v4372_v22  ;;  %v992_v52 = vmul.f32 %v990_v20, %v4392_v41  ;;  %v1129_v55 = vadd.f32 %v4273_v11, %v1123_v27 }
 0x1b2   : > { %v988_v39 = vadd.f32 %v4290_v43, %v982_v6  ;;  %v997_v29 = vadd.f32 %v4293_v23, %v991_v30  ;;  %v999_v28 = vadd.f32 %v987_v50, %v967_v16  ;;  %v1099_v56 = vmul.f32 %v1098_v49, %v4368_v5 }
 0x1b3   : > { %v998_v8 = vadd.f32 %v4296_v19, %v992_v52  ;;  %v1100_v42 = vmul.f32 %v1098_v49, %v4392_v41  ;;  %v1109_v15 = vmul.f32 %v1108_v14, %v4368_v5  ;;  %v1110_v11 = vmul.f32 %v1108_v14, %v4392_v41 }
 0x1b4   : > { %v1000_v35 = vadd.f32 %v988_v39, %v968_v9  ;;  %v1001_v46 = vadd.f32 %v997_v29, %v977_v36  ;;  %v4424_v2 = vadd.f32 %v1011_v58, %v999_v28  ;;  %v1105_v16 = vadd.f32 %v4301_v53, %v1099_v56 }
 0x1b5   : > { %v1002_v43 = vadd.f32 %v998_v8, %v978_v26  ;;  %v1106_v23 = vadd.f32 %v4304_v62, %v1100_v42  ;;  %v1115_v19 = vadd.f32 %v4307_v31, %v1109_v15  ;;  %v1139_v20 = vadd.f32 %v4276_v7, %v1133_v54  ;;  %v5951_v15 = vld [vmem:[#allocation44_spill] sm:$0xff] }
 0x1b6   : > { %v4431_v49 = vadd.f32 %v1012_v24, %v1000_v35  ;;  %v1025_v9 = vadd.f32 %v1021_v45, %v1001_v46  ;;  %v1116_v36 = vadd.f32 %v4310_v59, %v1110_v11  ;;  %v1117_v40 = vadd.f32 %v1105_v16, %v1085_v48  ;;  %v5954_v11 = vld [vmem:[#allocation46_spill] sm:$0xff] }
 0x1b7   : > { %v1026_v47 = vadd.f32 %v1022_v21, %v1002_v43  ;;  %v1118_v14 = vadd.f32 %v1106_v23, %v1086_v51  ;;  %v1119_v26 = vadd.f32 %v1115_v19, %v1095_v60  ;;  %v1140_v53 = vadd.f32 %v4254_v3, %v1134_v17 }
 0x1b8   : > { %v5940_v62 = vstv %s4190_s1  ;;  %v5941_v1 = vstv %s4256_s5  ;;  %v1120_v44 = vadd.f32 %v1116_v36, %v1096_v63  ;;  %v4442_v59 = vadd.f32 %v1129_v55, %v1117_v40  ;;  %v5956_v36 = vld [vmem:[#allocation39_spill] sm:$0xff]  ;;  %v5958_v40 = vld [vmem:[#allocation40_spill] sm:$0xff]  ;;  %s4717_s1 = sld [smem:[#allocation10 + $0x4f]] }
 0x1b9   : > { %v1241_v31 = vmul.f32 %v5940_v62, %v4378_v10  ;;  %v1033_v7 = vadd.f32 %v5941_v1, %v1025_v9  ;;  %v5942_v4 = vmov %v5941_v1  ;;  %v4444_v48 = vadd.f32 %v1130_v12, %v1118_v14  ;;  %s4727_s5 = sld [smem:[#allocation10 + $0x5f]] }
 0x1ba   : > { %v1034_v38 = vadd.f32 %v5942_v4, %v1026_v47  ;;  %v1143_v51 = vadd.f32 %v1139_v20, %v1119_v26  ;;  %v5943_v60 = vmov %v5940_v62  ;;  %v1144_v27 = vadd.f32 %v1140_v53, %v1120_v44  ;;  %v5960_v53 = vld [vmem:[#allocation41_spill] sm:$0xff] }
 0x1bb   : > { %v1242_v13 = vmul.f32 %v5943_v60, %v4372_v22  ;;  %v2519_v3 = vmul.f32 -1.442695, %v1033_v7  ;;  %v1217_v63 = vmul.f32 %v1216_v33, %v4368_v5  ;;  %v5944_v24 = vstv %s4196_s18  ;;  %s4719_s18 = sld [smem:[#allocation10 + $0x61]] }
 0x1bc   : > { %v1251_v21 = vmul.f32 %v5944_v24, %v4378_v10  ;;  %v5945_v54 = vmov %v5944_v24  ;;  %v2520_v6 = vmul.f32 -1.442695, %v1034_v38  ;;  %v5946_v50 = vstv %s4298_s10  ;;  %s4733_s10 = sld [smem:[#allocation10 + $0x59]] }
 0x1bd   : > { %v1252_v12 = vmul.f32 %v5945_v54, %v4372_v22  ;;  %v1151_v30 = vadd.f32 %v5946_v50, %v1143_v51  ;;  %2844 = vpow2.f32 %v2519_v3  ;;  %v5947_v58 = vmov %v5946_v50  ;;  %v5966_v54 = vld [vmem:[#allocation37_spill] sm:$0xff] }
 0x1be   : > { %v1152_v45 = vadd.f32 %v5947_v58, %v1144_v27  ;;  %v1218_v17 = vmul.f32 %v1216_v33, %v4392_v41  ;;  %v1223_v52 = vadd.f32 %v4318_v0, %v1217_v63  ;;  %2846 = vpow2.f32 %v2520_v6  ;;  %v5950_v0 = vld [vmem:[#allocation43_spill] sm:$0xff]  ;;  %v5964_v63 = vld [vmem:[#allocation36_spill] sm:$0xff]  ;;  %v5968_v6 = vld [vmem:[#allocation34_spill] sm:$0xff] }
 0x1bf   : > { %v2535_v10 = vmul.f32 -1.442695, %v1151_v30  ;;  %v5948_v22 = vstv %s4323_s0  ;;  %v1247_v28 = vadd.f32 %v4279_v34, %v1241_v31  ;;  %v1214_v42 = vadd.f32 %v5950_v0, %v4400_v18  ;;  %v5955_v18 = vld [vmem:[#allocation45_spill] sm:$0xff]  ;;  %s4737_s0 = sld [smem:[#allocation10 + $0x4b]] }
 0x1c0   : > { %v1227_v55 = vmul.f32 %v5948_v22, %v4368_v5  ;;  %v5949_v39 = vmov %v5948_v22  ;;  %v2536_v8 = vmul.f32 -1.442695, %v1152_v45  ;;  %v1224_v56 = vadd.f32 %v4321_v32, %v1218_v17  ;;  %v5952_v5 = vld [vmem:[#allocation38_spill] sm:$0xff] }
 0x1c1   : > { %v1228_v29 = vmul.f32 %v5949_v39, %v4392_v41  ;;  %v1235_v33 = vadd.f32 %v1223_v52, %v4395_v61  ;;  %v1248_v35 = vadd.f32 %v5951_v15, %v1242_v13  ;;  %v5953_v41 = vld [vmem:[#allocation47_spill] sm:$0xff]  ;;  %v1257_v43 = vadd.f32 %v5954_v11, %v1251_v21 }
 0x1c2   : > { %v1233_v46 = vadd.f32 %v5952_v5, %v1227_v55  ;;  %2848 = vpow2.f32 %v2535_v10  ;;  %v1236_v32 = vadd.f32 %v1224_v56, %v4398_v25  ;;  %v1258_v16 = vadd.f32 %v5955_v18, %v1252_v12 }
 0x1c3   : > { %v1234_v34 = vadd.f32 %v5953_v41, %v1228_v29  ;;  %v1259_v61 = vadd.f32 %v1247_v28, %v1235_v33  ;;  %2850 = vpow2.f32 %v2536_v8  ;;  %v2845_v20 = vpop.eup %2844  ;;  %v5957_v25 = vstv %s4151_s14  ;;  %s4646_s14 = sld [smem:[#allocation13 + $0xb]] }
 0x1c4   : > { %v1237_v23 = vadd.f32 %v1233_v46, %v4404_v37  ;;  %v1260_v9 = vadd.f32 %v1248_v35, %v1236_v32  ;;  %v4505_v47 = vadd.f32 %v5957_v25, %v5956_v36  ;;  %v5959_v14 = vstv %s4153_s19  ;;  %v2847_v31 = vpop.eup %2846  ;;  %s4655_s19 = sld [smem:[#allocation13 + $0xe]] }
 0x1c5   : > { %v1238_v19 = vadd.f32 %v1234_v34, %v1214_v42  ;;  %v4510_v26 = vadd.f32 %v5959_v14, %v5958_v40  ;;  %v5961_v62 = vmov %v5957_v25  ;;  %v5962_v1 = vstv %s4242_s3  ;;  %s4725_s3 = sld [smem:[#allocation10 + $0x4d]] }
 0x1c6   : > { %v4515_v37 = vadd.f32 %v5961_v62, %v5960_v53  ;;  %v1029_v7 = vadd.f32 %v5962_v1, %v4424_v2  ;;  %v4520_v44 = vadd.f32 1.0, %v2845_v20  ;;  %v1261_v4 = vadd.f32 %v1257_v43, %v1237_v23 }
 0x1c7   : > { %v1262_v38 = vadd.f32 %v1258_v16, %v1238_v19  ;;  %v1146_v51 = vstv %s4449_s2  ;;  %v1268_v60 = vstv %s4464_s6  ;;  %v5963_v13 = vmov %v5962_v1  ;;  %s4739_s2 = sld [smem:[#allocation10 + $0x5d]] }
 0x1c8   : > { %v1030_v3 = vadd.f32 %v5963_v13, %v4431_v49  ;;  %v4527_v27 = vadd.f32 1.0, %v2847_v31  ;;  %2852 = vrcp.f32 %v4520_v44  ;;  %v5965_v24 = vstv %s4155_s20  ;;  %v2849_v49 = vpop.eup %2848  ;;  %s4664_s20 = sld [smem:[#allocation13 + $0x11]] }
 0x1c9   : > { %v4533_v21 = vadd.f32 %v5965_v24, %v5964_v63  ;;  %v5967_v2 = vmov %v5965_v24  ;;  %v5969_v50 = vmov %v5959_v14  ;;  %v1264_v58 = vstv %s4460_s4  ;;  %v2851_v52 = vpop.eup %2850  ;;  %s4741_s4 = sld [smem:[#allocation10 + $0x51]] }
 0x1ca   : > { %v4538_v12 = vadd.f32 %v5967_v2, %v5966_v54  ;;  %v4543_v30 = vadd.f32 %v5969_v50, %v5968_v6  ;;  %v1336_v45 = vstv %s4472_s9  ;;  %v1342_v17 = vstv %s4481_s11  ;;  %s4743_s6 = sld [smem:[#allocation10 + $0x63]] }
 0x1cb   : > { %2854 = vrcp.f32 %v4527_v27  ;;  %v1147_v10 = vadd.f32 %v1146_v51, %v4442_v59  ;;  %v4550_v22 = vadd.f32 1.0, %v2849_v49  ;;  %v1269_v55 = vadd.f32 %v1268_v60, %v1261_v4  ;;  %s4745_s9 = sld [smem:[#allocation10 + $0x57]] }
 0x1cc   : > { %2856 = vtanh.f32 %v1029_v7  ;;  %v1358_v39 = vstv %s4488_s12  ;;  %v1148_v29 = vadd.f32 %v1146_v51, %v4444_v48  ;;  %v4554_v28 = vadd.f32 1.0, %v2851_v52  ;;  %s4747_s11 = sld [smem:[#allocation10 + $0x69]] }
 0x1cd   : > { %2858 = vtanh.f32 %v1030_v3  ;;  %v1364_v8 = vstv %s4493_s29  ;;  %v1380_v56 = vstv %s4497_s24  ;;  %v1270_v33 = vadd.f32 %v1268_v60, %v1262_v38  ;;  %s4749_s12 = sld [smem:[#allocation15 + $0x6]] }
 0x1ce   : > { %2860 = vrcp.f32 %v4550_v22  ;;  %v1386_v0 = vstv %s4500_s26  ;;  %v1054_v42 = vand.u32 2147483647, %v4520_v44  ;;  %v1056_v15 = vand.u32 2147483648, %v4520_v44  ;;  %v2853_v59 = vpop.eup %2852  ;;  %s4751_s29 = sld [smem:[#allocation10 + $0x48]] }
 0x1cf   : > { %2862 = vrcp.f32 %v4554_v28  ;;  %v1069_v35 = vand.u32 2147483647, %v4527_v27  ;;  %v1071_v5 = vand.u32 2147483648, %v4527_v27  ;;  %v2551_v48 = vmul.f32 -1.442695, %v1269_v55  ;;  %s4753_s24 = sld [smem:[#allocation10 + $0x5a]] }
 0x1d0   : > { %2864 = vtanh.f32 %v1147_v10  ;;  %v1046_v41 = vmul.f32 %v2853_v59, %v4520_v44  ;;  %v4566_v34 = vadd.f32 %v1264_v58, %v1259_v61  ;;  %v4568_v11 = vadd.f32 %v1264_v58, %v1260_v9  ;;  %s4755_s26 = sld [smem:[#allocation10 + $0x4e]] }
 0x1d1   : > { %v2855_v46 = vpop.eup %2854  ;;  %2866 = vtanh.f32 %v1148_v29  ;;  %vm1050_vm11 = vweird.f32 %v4520_v44  ;;  %v2552_v18 = vmul.f32 -1.442695, %v1270_v33  ;;  %vm4572_vm12 = vcmp.eq.f32.partialorder %v1054_v42, 8.507059e+37 }
 0x1d2   : > { %v2857_v43 = vpop.eup %2856  ;;  %v1061_v32 = vmul.f32 %v2855_v46, %v4527_v27  ;;  %2868 = vpow2.f32 %v2551_v48  ;;  %v1047_v23 = vsub.f32 1.0, %v1046_v41  ;;  %v1057_v20 = vor.u32 1.1754944e-38, %v1056_v15 }
 0x1d3   : > { %v2859_v16 = vpop.eup %2858  ;;  %vm1065_vm13 = vweird.f32 %v4527_v27  ;;  %vm4577_vm14 = vcmp.eq.f32.partialorder %v1069_v35, 8.507059e+37  ;;  %v1072_v25 = vor.u32 1.1754944e-38, %v1071_v5  ;;  %2870 = vpow2.f32 %v2552_v18 }
 0x1d4   : > { %v2861_v61 = vpop.eup %2860  ;;  %v1062_v36 = vsub.f32 1.0, %v1061_v32  ;;  %v1048_v14 = vmul.f32 %v2853_v59, %v1047_v23  ;;  %vm1051_vm15 = vweird.f32 %v2853_v59  ;;  %vm1168_vm1 = vweird.f32 %v4550_v22 }
 0x1d5   : > { %v2863_v40 = vpop.eup %2862  ;;  %v1164_v53 = vmul.f32 %v2861_v61, %v4550_v22  ;;  %vm1066_vm2 = vweird.f32 %v2855_v46  ;;  %v1172_v1 = vand.u32 2147483647, %v4550_v22  ;;  %v1174_v60 = vand.u32 2147483648, %v4550_v22  ;;  %vm1052_vm4 = vmor %vm1050_vm11, %vm1051_vm15 }
 0x1d6   : > { %v2865_v62 = vpop.eup %2864  ;;  %v1063_v31 = vmul.f32 %v2855_v46, %v1062_v36  ;;  %v1179_v7 = vmul.f32 %v2863_v40, %v4554_v28  ;;  %v1049_v38 = vadd.f32 %v2853_v59, %v1048_v14  ;;  %vm1183_vm3 = vweird.f32 %v4554_v28  ;;  %vm1067_vm5 = vmor %vm1065_vm13, %vm1066_vm2 }
 0x1d7   : > { %v2867_v4 = vpop.eup %2866  ;;  %v1165_v51 = vsub.f32 1.0, %v1164_v53  ;;  %v1187_v24 = vand.u32 2147483647, %v4554_v28  ;;  %v1189_v54 = vand.u32 2147483648, %v4554_v28  ;;  %vm1169_vm6 = vweird.f32 %v2861_v61 }
 0x1d8   : > { %v2869_v13 = vpop.eup %2868  ;;  %v1064_v3 = vadd.f32 %v2855_v46, %v1063_v31  ;;  %v1180_v63 = vsub.f32 1.0, %v1179_v7  ;;  %v1053_v2 = vsel %vm1052_vm4, %v2853_v59, %v1049_v38  ;;  %vm1184_vm7 = vweird.f32 %v2863_v40  ;;  %vm1170_vm8 = vmor %vm1168_vm1, %vm1169_vm6 }
 0x1d9   : > { %v1166_v6 = vmul.f32 %v2861_v61, %v1165_v51  ;;  %v4594_v50 = vadd.f32 1.0, %v2869_v13  ;;  %v2871_v49 = vpop.eup %2870  ;;  %v1058_v44 = vsel %vm4572_vm12, %v1057_v20, %v1053_v2  ;;  %v1175_v42 = vor.u32 1.1754944e-38, %v1174_v60  ;;  %vm1185_vm11 = vmor %vm1183_vm3, %vm1184_vm7 }
 0x1da   : > { %v1068_v58 = vsel %vm1067_vm5, %v2855_v46, %v1064_v3  ;;  %v1181_v52 = vmul.f32 %v2863_v40, %v1180_v63  ;;  %v4600_v55 = vmul.f32 %v2857_v43, %v1058_v44  ;;  %v4602_v33 = vadd.f32 1.0, %v2871_v49 }
 0x1db   : > { %v1073_v10 = vsel %vm4577_vm14, %v1072_v25, %v1068_v58  ;;  %v1167_v29 = vadd.f32 %v2861_v61, %v1166_v6  ;;  %2872 = vrcp.f32 %v4594_v50  ;;  %vm1173_vm9 = vcmp.eq.f32.partialorder %v1172_v1, 8.507059e+37 }
 0x1dc   : > { %v4604_v27 = vmul.f32 %v2859_v16, %v1073_v10  ;;  %v1182_v15 = vadd.f32 %v2863_v40, %v1181_v52  ;;  %v1190_v35 = vor.u32 1.1754944e-38, %v1189_v54  ;;  %2874 = vrcp.f32 %v4602_v33 }
 0x1dd   : > { %v1171_v59 = vsel %vm1170_vm8, %v2861_v61, %v1167_v29  ;;  %vm1188_vm12 = vcmp.eq.f32.partialorder %v1187_v24, 8.507059e+37  ;;  %2876 = vtanh.f32 %v4566_v34  ;;  %v1290_v28 = vand.u32 2147483647, %v4594_v50 }
 0x1de   : > { %v1176_v5 = vsel %vm1173_vm9, %v1175_v42, %v1171_v59  ;;  %v1186_v48 = vsel %vm1185_vm11, %v2863_v40, %v1182_v15  ;;  %2878 = vtanh.f32 %v4568_v11  ;;  %v1292_v43 = vand.u32 2147483648, %v4594_v50 }
 0x1df   : > { %v1191_v22 = vsel %vm1188_vm12, %v1190_v35, %v1186_v48  ;;  %v4613_v46 = vmul.f32 %v2865_v62, %v1176_v5  ;;  %v1305_v32 = vand.u32 2147483647, %v4602_v33  ;;  %v1307_v18 = vand.u32 2147483648, %v4602_v33 }
 0x1e0   : > { %v4617_v41 = vmul.f32 %v2867_v4, %v1191_v22  ;;  %v1337_v34 = vmul.f32 %v1336_v45, %v4600_v55  ;;  %v1338_v16 = vmul.f32 %v1336_v45, %v4604_v27  ;;  %v1359_v23 = vmul.f32 %v1358_v39, %v4600_v55 }
 0x1e1   : > { %v1343_v11 = vmul.f32 %v1342_v17, %v4613_v46  ;;  %v2873_v19 = vpop.eup %2872  ;;  %v1360_v61 = vmul.f32 %v1358_v39, %v4604_v27  ;;  %v1365_v36 = vmul.f32 %v1364_v8, %v4613_v46  ;;  %v1381_v40 = vmul.f32 %v1380_v56, %v4600_v55 }
 0x1e2   : > { %v1344_v20 = vmul.f32 %v1342_v17, %v4617_v41  ;;  %v1366_v45 = vmul.f32 %v1364_v8, %v4617_v41  ;;  %v2875_v9 = vpop.eup %2874  ;;  %v1282_v25 = vmul.f32 %v2873_v19, %v4594_v50  ;;  %vm1287_vm13 = vweird.f32 %v2873_v19 }
 0x1e3   : > { %v1382_v17 = vmul.f32 %v1380_v56, %v4604_v27  ;;  %v2877_v39 = vpop.eup %2876  ;;  %v1297_v14 = vmul.f32 %v2875_v9, %v4602_v33  ;;  %vm1302_vm14 = vweird.f32 %v2875_v9  ;;  %v1387_v8 = vmul.f32 %v1386_v0, %v4613_v46 }
 0x1e4   : > { %v1388_v53 = vmul.f32 %v1386_v0, %v4617_v41  ;;  %v2879_v62 = vpop.eup %2878  ;;  %v1283_v31 = vsub.f32 1.0, %v1282_v25  ;;  %v1340_v1 = vadd.f32 %v1338_v16, %v4505_v47  ;;  %v1361_v56 = vadd.f32 %v1359_v23, %v4510_v26 }
 0x1e5   : > { %v1339_v7 = vadd.f32 %v1337_v34, %v4515_v37  ;;  %v1298_v4 = vsub.f32 1.0, %v1297_v14  ;;  %v1383_v38 = vadd.f32 %v1381_v40, %v4533_v21  ;;  %v1384_v51 = vadd.f32 %v1382_v17, %v4538_v12 }
 0x1e6   : > { %v1362_v60 = vadd.f32 %v1360_v61, %v4543_v30  ;;  %v1284_v13 = vmul.f32 %v2873_v19, %v1283_v31  ;;  %v1346_v0 = vadd.f32 %v1344_v20, %v1340_v1  ;;  %v1367_v3 = vadd.f32 %v1365_v36, %v1361_v56  ;;  %v5981_v20 = vld [vmem:[#allocation42_spill] sm:$0xff]  ;;  %v5982_v36 = vld [vmem:[#allocation35_spill] sm:$0xff] }
 0x1e7   : > { %v1345_v63 = vadd.f32 %v1343_v11, %v1339_v7  ;;  %v1299_v24 = vmul.f32 %v2875_v9, %v1298_v4  ;;  %v1389_v54 = vadd.f32 %v1387_v8, %v1383_v38  ;;  %v1390_v47 = vadd.f32 %v1388_v53, %v1384_v51 }
 0x1e8   : > { %v1368_v2 = vadd.f32 %v1366_v45, %v1362_v60  ;;  %v1285_v26 = vadd.f32 %v2873_v19, %v1284_v13  ;;  %vm1286_vm15 = vweird.f32 %v4594_v50  ;;  %v1293_v37 = vor.u32 1.1754944e-38, %v1292_v43 }
 0x1e9   : > { %vm1288_vm1 = vmor %vm1286_vm15, %vm1287_vm13  ;;  %v1300_v21 = vadd.f32 %v2875_v9, %v1299_v24  ;;  %vm1301_vm2 = vweird.f32 %v4602_v33  ;;  %v1348_v12 = vstv %s4646_s14  ;;  %vm1291_vm3 = vcmp.eq.f32.partialorder %v1290_v28, 8.507059e+37  ;;  %s4757_s14 = sld [smem:[#allocation10 + $0x60]] }
 0x1ea   : > { %v1289_v30 = vsel %vm1288_vm1, %v2873_v19, %v1285_v26  ;;  %vm1303_vm4 = vmor %vm1301_vm2, %vm1302_vm14  ;;  %v1308_v6 = vor.u32 1.1754944e-38, %v1307_v18  ;;  %v1370_v49 = vstv %s4655_s19  ;;  %vm1306_vm5 = vcmp.eq.f32.partialorder %v1305_v32, 8.507059e+37  ;;  %s4759_s19 = sld [smem:[#allocation10 + $0x54]] }
 0x1eb   : > { %v1294_v44 = vsel %vm1291_vm3, %v1293_v37, %v1289_v30  ;;  %v1304_v58 = vsel %vm1303_vm4, %v2875_v9, %v1300_v21  ;;  %v1392_v52 = vstv %s4664_s20  ;;  %v1314_v34 = vstv %s2553_s25  ;;  %s4761_s20 = sld [smem:[#allocation10 + $0x66]] }
 0x1ec   : > { %v1309_v10 = vsel %vm1306_vm5, %v1308_v6, %v1304_v58  ;;  %v1311_v29 = vmul.f32 %v2877_v39, %v1294_v44  ;;  %v1320_v16 = vstv %s2554_s28  ;;  %v1315_v11 = vmul.f32 %v1314_v34, %v4600_v55  ;;  %s4765_s25 = sld [smem:[#allocation10 + $0x5e]] }
 0x1ed   : > { %v1312_v50 = vmul.f32 %v2879_v62, %v1309_v10  ;;  %v1316_v23 = vmul.f32 %v1314_v34, %v4604_v27  ;;  %v1326_v19 = vstv %s2555_s8  ;;  %v1321_v9 = vmul.f32 %v1320_v16, %v4613_v46  ;;  %s4768_s28 = sld [smem:[#allocation10 + $0x52]] }
 0x1ee   : > { %v1371_v42 = vmul.f32 %v1370_v49, %v1311_v29  ;;  %v1349_v15 = vmul.f32 %v1348_v12, %v1311_v29  ;;  %v1393_v59 = vmul.f32 %v1392_v52, %v1311_v29  ;;  %v1317_v61 = vadd.f32 %v1315_v11, %v5981_v20  ;;  %s4774_s8 = sld [smem:[#allocation10 + $0x64]] }
 0x1ef   : > { %v1350_v35 = vmul.f32 %v1348_v12, %v1312_v50  ;;  %v1394_v5 = vmul.f32 %v1392_v52, %v1312_v50  ;;  %v1372_v33 = vmul.f32 %v1370_v49, %v1312_v50  ;;  %v1318_v45 = vadd.f32 %v1316_v23, %v5982_v36 }
 0x1f0   : > { %v4679_v48 = vadd.f32 %v1371_v42, %v1367_v3  ;;  %v4681_v22 = vadd.f32 %v1349_v15, %v1345_v63  ;;  %v4683_v28 = vadd.f32 %v1393_v59, %v1389_v54  ;;  %v1322_v25 = vmul.f32 %v1320_v16, %v4617_v41 }
 0x1f1   : > { %v4685_v43 = vadd.f32 %v1350_v35, %v1346_v0  ;;  %v4687_v18 = vadd.f32 %v1394_v5, %v1390_v47  ;;  %v4689_v32 = vadd.f32 %v1372_v33, %v1368_v2  ;;  %v1323_v40 = vadd.f32 %v1321_v9, %v1317_v61 }
 0x1f2   : > { %5974 = vst [vmem:[#allocation43_spill] sm:$0xff] %v4679_v48  ;;  %1405 = vrot.lane.b32.xlu2 %v4679_v48, %s5980_s23  ;;  %1397 = vrot.lane.b32.xlu0 %v4681_v22, %s5980_s23  ;;  %v1324_v17 = vadd.f32 %v1322_v25, %v1318_v45  ;;  %v1327_v39 = vmul.f32 %v1326_v19, %v1311_v29  ;;  %v1426_v55 = vstv %s4713_s22  ;;  %v1436_v27 = vstv %s4715_s27  ;;  %s4780_s22 = sld [smem:[#allocation10 + $0x58]] }
 0x1f3   : > { %5975 = vst [vmem:[#allocation44_spill] sm:$0xff] %v4681_v22  ;;  %1399 = vrot.lane.b32.xlu1 %v4685_v43, %s5980_s23  ;;  %v1328_v14 = vmul.f32 %v1326_v19, %v1312_v50  ;;  %v1544_v46 = vstv %s4717_s1  ;;  %v1554_v41 = vstv %s4719_s18  ;;  %v1662_v62 = vstv %s4721_s30  ;;  %s4784_s27 = sld [smem:[#allocation10 + $0x6a]] }
 0x1f4   : > { %5976 = vst [vmem:[#allocation38_spill] sm:$0xff] %v4683_v28  ;;  %v4709_v8 = vadd.f32 %v1327_v39, %v1323_v40  ;;  %v1672_v31 = vstv %s4723_s15  ;;  %v1470_v1 = vstv %s4725_s3  ;;  %v1480_v56 = vstv %s4727_s5  ;;  %s4788_s1 = sld [smem:[#allocation10 + $0x4a]] }
 0x1f5   : > { %5977 = vst [vmem:[#allocation47_spill] sm:$0xff] %v4685_v43  ;;  %v4711_v53 = vadd.f32 %v1328_v14, %v1324_v17  ;;  %v1588_v7 = vstv %s4729_s7  ;;  %v1598_v4 = vstv %s4731_s13  ;;  %v1706_v38 = vstv %s4733_s10  ;;  %s4800_s18 = sld [smem:[#allocation10 + $0x5c]] }
 0x1f6   : > { %5978 = vst [vmem:[#allocation46_spill] sm:$0xff] %v4687_v18  ;;  %v1716_v51 = vstv %s4735_s21  ;;  %v1446_v60 = vstv %s4737_s0  ;;  %v1456_v13 = vstv %s4739_s2  ;;  %v1564_v0 = vstv %s4741_s4  ;;  %s4816_s30 = sld [smem:[#allocation12 + $0xc]] }
 0x1f7   : > { %5979 = vst [vmem:[#allocation45_spill] sm:$0xff] %v4689_v32  ;;  %v1574_v3 = vstv %s4743_s6  ;;  %v1682_v63 = vstv %s4745_s9  ;;  %v4795_v24 = vmul.f32 %v1426_v55, %v4681_v22  ;;  %v4798_v54 = vmul.f32 %v1436_v27, %v4681_v22  ;;  %s4830_s15 = sld [smem:[#allocation12 + $0xf]] }
 0x1f8   : > { %5983 = vst [vmem:[#allocation39_spill] sm:$0xff] %v4709_v8  ;;  %v1692_v47 = vstv %s4747_s11  ;;  %v4805_v26 = vmul.f32 %v1426_v55, %v4685_v43  ;;  %v4808_v37 = vmul.f32 %v1436_v27, %v4685_v43  ;;  %v4811_v21 = vmul.f32 %v1544_v46, %v4685_v43  ;;  %s4844_s3 = sld [smem:[#allocation10 + $0x50]] }
 0x1f9   : > { %5984 = vst [vmem:[#allocation40_spill] sm:$0xff] %v4711_v53  ;;  %v4814_v12 = vmul.f32 %v1544_v46, %v4681_v22  ;;  %v4819_v30 = vmul.f32 %v1554_v41, %v4685_v43  ;;  %v4822_v6 = vmul.f32 %v1662_v62, %v4685_v43  ;;  %v4825_v49 = vmul.f32 %v1672_v31, %v4685_v43  ;;  %s4858_s5 = sld [smem:[#allocation10 + $0x62]] }
 0x1fa   : > { %1415 = vrot.lane.b32.xlu2 %v4687_v18, %s5980_s23  ;;  %1407 = vrot.lane.b32.xlu0 %v4689_v32, %s5980_s23  ;;  %v4828_v44 = vmul.f32 %v1554_v41, %v4681_v22  ;;  %v4833_v58 = vmul.f32 %v1662_v62, %v4681_v22  ;;  %v4836_v52 = vmul.f32 %v1672_v31, %v4681_v22  ;;  %s4872_s7 = sld [smem:[#allocation12 + $0xd]]  ;;  %v1422_v14 = vstv %s4751_s29 }
 0x1fb   : > { %1413 = vrot.lane.b32.xlu1 %v4683_v28, %s5980_s23  ;;  %s4763_s23 = sld [smem:[#allocation10 + $0x4c]]  ;;  %v4839_v10 = vmul.f32 %v1470_v1, %v4687_v18  ;;  %v4842_v29 = vmul.f32 %v1480_v56, %v4687_v18  ;;  %v4847_v50 = vmul.f32 %v1588_v7, %v4687_v18  ;;  %v4850_v42 = vmul.f32 %v1598_v4, %v4687_v18 }
 0x1fc   : > { %v4853_v15 = vmul.f32 %v1706_v38, %v4687_v18  ;;  %v4856_v59 = vmul.f32 %v1716_v51, %v4687_v18  ;;  %v4861_v35 = vmul.f32 %v1470_v1, %v4683_v28  ;;  %v4864_v5 = vmul.f32 %v1480_v56, %v4683_v28  ;;  %s4886_s13 = sld [smem:[#allocation12 + $0x10]] }
 0x1fd   : > { %v4867_v33 = vmul.f32 %v1588_v7, %v4683_v28  ;;  %v4870_v34 = vmul.f32 %v1598_v4, %v4683_v28  ;;  %v4875_v16 = vmul.f32 %v1706_v38, %v4683_v28  ;;  %v4878_v11 = vmul.f32 %v1716_v51, %v4683_v28  ;;  %s4902_s10 = sld [smem:[#allocation10 + $0x56]] }
 0x1fe   : > { %5985 = vst [vmem:[#allocation41_spill] sm:$0xff] %v4853_v15  ;;  %v4881_v23 = vmul.f32 %v1446_v60, %v4679_v48  ;;  %v4884_v19 = vmul.f32 %v1446_v60, %v4689_v32  ;;  %v4891_v61 = vmul.f32 %v1456_v13, %v4679_v48  ;;  %v4894_v36 = vmul.f32 %v1456_v13, %v4689_v32  ;;  %s4916_s21 = sld [smem:[#allocation10 + $0x68]] }
 0x1ff   : > { %5986 = vst [vmem:[#allocation36_spill] sm:$0xff] %v4856_v59  ;;  %v4897_v45 = vmul.f32 %v1564_v0, %v4679_v48  ;;  %v4900_v9 = vmul.f32 %v1564_v0, %v4689_v32  ;;  %v4905_v25 = vmul.f32 %v1574_v3, %v4679_v48  ;;  %v4908_v40 = vmul.f32 %v1574_v3, %v4689_v32  ;;  %s5029_s0 = sld [smem:[#allocation12 + $0x11]] }
 0x200   : > { %5987 = vst [vmem:[#allocation37_spill] sm:$0xff] %v4875_v16  ;;  %v4911_v17 = vmul.f32 %v1682_v63, %v4679_v48  ;;  %v4914_v39 = vmul.f32 %v1682_v63, %v4689_v32  ;;  %v1432_v55 = vstv %s4753_s24  ;;  %v4921_v46 = vmul.f32 %v1692_v47, %v4679_v48  ;;  %s5037_s2 = sld [smem:[#allocation15 + $0x7]] }
 0x201   : > { %5988 = vst [vmem:[#allocation34_spill] sm:$0xff] %v4878_v11  ;;  %v4924_v41 = vmul.f32 %v1692_v47, %v4689_v32  ;;  %v1540_v31 = vstv %s4755_s26  ;;  %v1550_v1 = vstv %s4757_s14  ;;  %v1658_v56 = vstv %s4759_s19  ;;  %s5051_s4 = sld [smem:[#allocation15 + $0x8]] }
 0x202   : > { %5989 = vst [vmem:[#allocation42_spill] sm:$0xff] %v4911_v17  ;;  %v1668_v7 = vstv %s4761_s20  ;;  %v1466_v51 = vstv %s4763_s23  ;;  %v1476_v60 = vstv %s4765_s25  ;;  %v1584_v0 = vstv %s4768_s28  ;;  %s5057_s6 = sld [smem:[#allocation12 + $0xe]]  ;;  %s6031_s28 = smov 2  }
 0x203   : > { %5990 = vst [vmem:[#allocation35_spill] sm:$0xff] %v4914_v39  ;;  %v1594_v3 = vstv %s4774_s8  ;;  %v1442_v53 = vstv %s4788_s1  ;;  %v1452_v8 = vstv %s4800_s18  ;;  %v1560_v48 = vstv %s4844_s3  ;;  %s5134_s9 = sld [smem:[#allocation13 + $0x12]] }
 0x204   : > { %5991 = vst [vmem:[#allocation48_spill] sm:$0xff] %v4921_v46  ;;  %v1570_v43 = vstv %s4858_s5  ;;  %v1678_v11 = vstv %s4902_s10  ;;  %s5140_s11 = sld [smem:[#allocation13 + $0x13]] }
 0x205   : > { %5992 = vst [vmem:[#allocation49_spill] sm:$0xff] %v4924_v41  ;;  %s5148_s29 = sld [smem:[#allocation13 + $0x16]] }
 0x206   : > { %s5151_s24 = sld [smem:[#allocation13 + $0x18]] }
 0x207   : > { %s5160_s26 = sld [smem:[#allocation13 + $0x19]] }
 0x208   : > { %s5216_s14 = sld [smem:[#allocation13 + $0x14]] }
 0x209   : > { %s5223_s19 = sld [smem:[#allocation13 + $0x17]] }
 0x20a   : > { %s5230_s20 = sld [smem:[#allocation13 + $0x1a]] }
 0x20b   : > { %s2616_s23 = sld [smem:[#allocation16 + $0x6]] }
 0x20c   : > { %s2617_s25 = sld [smem:[#allocation16 + $0x7]] }
 0x20d   : > { %s2618_s8 = sld [smem:[#allocation16 + $0x8]] }
 0x20e   : > { %s5287_s1 = sld [smem:[#allocation10 + $0x73]] }
 0x20f   : > { %s5289_s18 = sld [smem:[#allocation10 + $0x85]] }
 0x210   : > { %s5295_s3 = sld [smem:[#allocation10 + $0x71]] }
 0x211   : > { %s5297_s5 = sld [smem:[#allocation10 + $0x83]] }
 0x212   : > { %s5303_s10 = sld [smem:[#allocation10 + $0x7d]] }
 0x24c   : > { %v4888_v20 = vpop.permute.xlu2 %1405 }
 0x254   : > { %v1416_v46 = vpop.permute.xlu2 %1415 }
 0x264   : > { %v1398_v27 = vpop.permute.xlu0 %1397 }
 0x265   : > { %v1400_v62 = vpop.permute.xlu1 %1399 }
 0x266   : > { %v1401_v4 = vsel %vm471_vm0, %v1398_v27, %v1400_v62  ;;  %v1402_v38 = vsel %vm471_vm0, %v1400_v62, %v1398_v27 }
 0x267   : > { %v1403_v13 = vsel %vm471_vm0, 0.0, %v1402_v38  ;;  %v1424_v47 = vmul.f32 %v1422_v14, %v1401_v4  ;;  %v1434_v32 = vmul.f32 %v1432_v55, %v1401_v4  ;;  %v1542_v18 = vmul.f32 %v1540_v31, %v1401_v4 }
 0x268   : > { %v1423_v27 = vmul.f32 %v1422_v14, %v1403_v13  ;;  %v1433_v62 = vmul.f32 %v1432_v55, %v1403_v13  ;;  %v1541_v39 = vmul.f32 %v1540_v31, %v1403_v13  ;;  %v1551_v15 = vmul.f32 %v1550_v1, %v1403_v13 }
 0x269   : > { %v1430_v63 = vadd.f32 %v4805_v26, %v1424_v47  ;;  %v1552_v2 = vmul.f32 %v1550_v1, %v1401_v4  ;;  %v1440_v55 = vadd.f32 %v4808_v37, %v1434_v32  ;;  %v1548_v28 = vadd.f32 %v4811_v21, %v1542_v18 }
 0x26a   : > { %v1429_v16 = vadd.f32 %v4795_v24, %v1423_v27  ;;  %v1439_v14 = vadd.f32 %v4798_v54, %v1433_v62  ;;  %v1659_v38 = vmul.f32 %v1658_v56, %v1403_v13  ;;  %v1660_v59 = vmul.f32 %v1658_v56, %v1401_v4 }
 0x26b   : > { %v1547_v37 = vadd.f32 %v4814_v12, %v1541_v39  ;;  %v1557_v21 = vadd.f32 %v4828_v44, %v1551_v15  ;;  %v1558_v31 = vadd.f32 %v4819_v30, %v1552_v2  ;;  %v1669_v44 = vmul.f32 %v1668_v7, %v1403_v13 }
 0x26c   : > { %v1408_v17 = vpop.permute.xlu0 %1407  ;;  %v4985_v12 = vadd.f32 %v4833_v58, %v1659_v38  ;;  %v1670_v2 = vmul.f32 %v1668_v7, %v1401_v4  ;;  %v4989_v15 = vadd.f32 %v4822_v6, %v1660_v59 }
 0x26d   : > { %v1414_v22 = vpop.permute.xlu1 %1413  ;;  %v1410_v47 = vsel %vm471_vm0, %v1408_v17, %v4888_v20 }
 0x26e   : > { %v4959_v41 = vsel %vm471_vm0, %v1414_v22, %v1416_v46  ;;  %v1418_v26 = vsel %vm471_vm0, %v1416_v46, %v1414_v22  ;;  %v4976_v22 = vsel %vm471_vm0, %v4888_v20, %v1408_v17  ;;  %v1411_v20 = vsel %vm471_vm0, 0.0, %v1410_v47 }
 0x26f   : > { %v4965_v24 = vsel %vm471_vm0, 0.0, %v1418_v26  ;;  %v1468_v54 = vmul.f32 %v1466_v51, %v4959_v41  ;;  %v1478_v32 = vmul.f32 %v1476_v60, %v4959_v41  ;;  %v1586_v18 = vmul.f32 %v1584_v0, %v4959_v41 }
 0x270   : > { %v1467_v46 = vmul.f32 %v1466_v51, %v4965_v24  ;;  %v1477_v1 = vmul.f32 %v1476_v60, %v4965_v24  ;;  %v1585_v56 = vmul.f32 %v1584_v0, %v4965_v24  ;;  %v1595_v30 = vmul.f32 %v1594_v3, %v4965_v24 }
 0x271   : > { %v1474_v39 = vadd.f32 %v4839_v10, %v1468_v54  ;;  %v1484_v51 = vadd.f32 %v4842_v29, %v1478_v32  ;;  %v1592_v60 = vadd.f32 %v4847_v50, %v1586_v18  ;;  %v1596_v0 = vmul.f32 %v1594_v3, %v4959_v41 }
 0x272   : > { %v1444_v58 = vmul.f32 %v1442_v53, %v4976_v22  ;;  %v1454_v17 = vmul.f32 %v1452_v8, %v4976_v22  ;;  %v1473_v7 = vadd.f32 %v4861_v35, %v1467_v46  ;;  %v1483_v6 = vadd.f32 %v4864_v5, %v1477_v1 }
 0x273   : > { %v1591_v59 = vadd.f32 %v4867_v33, %v1585_v56  ;;  %v1443_v10 = vmul.f32 %v1442_v53, %v1411_v20  ;;  %v1601_v29 = vadd.f32 %v4870_v34, %v1595_v30  ;;  %v1453_v4 = vmul.f32 %v1452_v8, %v1411_v20 }
 0x274   : > { %v1450_v50 = vadd.f32 %v4884_v19, %v1444_v58  ;;  %v1460_v13 = vadd.f32 %v4894_v36, %v1454_v17  ;;  %v1561_v27 = vmul.f32 %v1560_v48, %v1411_v20  ;;  %v1562_v62 = vmul.f32 %v1560_v48, %v4976_v22 }
 0x275   : > { %v1449_v3 = vadd.f32 %v4881_v23, %v1443_v10  ;;  %v1571_v38 = vmul.f32 %v1570_v43, %v1411_v20  ;;  %v1459_v35 = vadd.f32 %v4891_v61, %v1453_v4  ;;  %v1572_v53 = vmul.f32 %v1570_v43, %v4976_v22 }
 0x276   : > { %v1462_v26 = vadd.f32 %v1450_v50, %v1430_v63  ;;  %v1464_v5 = vadd.f32 %v1460_v13, %v1440_v55  ;;  %v1567_v34 = vadd.f32 %v4897_v45, %v1561_v27  ;;  %v1568_v8 = vadd.f32 %v4900_v9, %v1562_v62  ;;  %v6005_v62 = vld [vmem:[#allocation41_spill] sm:$0xff] }
 0x277   : > { %v1461_v33 = vadd.f32 %v1449_v3, %v1429_v16  ;;  %v1577_v19 = vadd.f32 %v4905_v25, %v1571_v38  ;;  %v1463_v36 = vadd.f32 %v1459_v35, %v1439_v14  ;;  %v1578_v48 = vadd.f32 %v4908_v40, %v1572_v53  ;;  %v6004_v3 = vld [vmem:[#allocation37_spill] sm:$0xff]  ;;  %v6006_v38 = vld [vmem:[#allocation35_spill] sm:$0xff] }
 0x278   : > { %v1486_v23 = vadd.f32 %v1474_v39, %v1462_v26  ;;  %v1488_v54 = vadd.f32 %v1484_v51, %v1464_v5  ;;  %v1579_v61 = vadd.f32 %v1567_v34, %v1547_v37  ;;  %v1580_v63 = vadd.f32 %v1568_v8, %v1548_v28  ;;  %v6007_v26 = vld [vmem:[#allocation48_spill] sm:$0xff]  ;;  %v6009_v53 = vld [vmem:[#allocation49_spill] sm:$0xff]  ;;  %v6010_v34 = vld [vmem:[#allocation34_spill] sm:$0xff] }
 0x279   : > { %v1485_v32 = vadd.f32 %v1473_v7, %v1461_v33  ;;  %v1581_v43 = vadd.f32 %v1577_v19, %v1557_v21  ;;  %v1602_v16 = vadd.f32 %v4850_v42, %v1596_v0  ;;  %v1487_v45 = vadd.f32 %v1483_v6, %v1463_v36 }
 0x27a   : > { %v5993_v9 = vstv %s4830_s15  ;;  %v1582_v25 = vadd.f32 %v1578_v48, %v1558_v31  ;;  %v1675_v14 = vadd.f32 %v4836_v52, %v1669_v44  ;;  %v1603_v18 = vadd.f32 %v1591_v59, %v1579_v61  ;;  %v6011_v48 = vld [vmem:[#allocation36_spill] sm:$0xff]  ;;  %s5293_s15 = sld [smem:[#allocation10 + $0x8b]] }
 0x27b   : > { %v1496_v55 = vadd.f32 %v5993_v9, %v1488_v54  ;;  %v1604_v40 = vadd.f32 %v1592_v60, %v1580_v63  ;;  %v1605_v46 = vadd.f32 %v1601_v29, %v1581_v43  ;;  %v1676_v37 = vadd.f32 %v4825_v49, %v1670_v2  ;;  %v6002_v29 = vld [vmem:[#allocation42_spill] sm:$0xff] }
 0x27c   : > { %v5994_v28 = vmov %v5993_v9  ;;  %v1606_v1 = vadd.f32 %v1602_v16, %v1582_v25  ;;  %v5995_v56 = vstv %s4780_s22  ;;  %v5997_v52 = vstv %s4784_s27  ;;  %s5283_s22 = sld [smem:[#allocation10 + $0x6d]] }
 0x27d   : > { %v1495_v21 = vadd.f32 %v5994_v28, %v1487_v45  ;;  %v2583_v42 = vmul.f32 -1.442695, %v1496_v55  ;;  %v1703_v47 = vmul.f32 %v5995_v56, %v4965_v24  ;;  %v5996_v31 = vmov %v5995_v56  ;;  %s5285_s27 = sld [smem:[#allocation10 + $0x7f]] }
 0x27e   : > { %v1704_v30 = vmul.f32 %v5996_v31, %v4959_v41  ;;  %v1713_v44 = vmul.f32 %v5997_v52, %v4965_v24  ;;  %v5998_v39 = vstv %s4886_s13  ;;  %v1679_v0 = vmul.f32 %v1678_v11, %v1411_v20  ;;  %v6015_v31 = vld [vmem:[#allocation47_spill] sm:$0xff]  ;;  %s5301_s13 = sld [smem:[#allocation10 + $0x89]] }
 0x27f   : > { %v1613_v49 = vadd.f32 %v5998_v39, %v1605_v46  ;;  %v2582_v2 = vmul.f32 -1.442695, %v1495_v21  ;;  %2880 = vpow2.f32 %v2583_v42  ;;  %v5999_v51 = vmov %v5998_v39  ;;  %v6018_v39 = vld [vmem:[#allocation44_spill] sm:$0xff] }
 0x280   : > { %v1614_v60 = vadd.f32 %v5999_v51, %v1606_v1  ;;  %v6000_v58 = vmov %v5997_v52  ;;  %v1680_v24 = vmul.f32 %v1678_v11, %v4976_v22  ;;  %v6001_v6 = vstv %s4916_s21  ;;  %s5305_s21 = sld [smem:[#allocation10 + $0x8f]] }
 0x281   : > { %v1714_v17 = vmul.f32 %v6000_v58, %v4959_v41  ;;  %v2598_v7 = vmul.f32 -1.442695, %v1613_v49  ;;  %v1689_v59 = vmul.f32 %v6001_v6, %v1411_v20  ;;  %2882 = vpow2.f32 %v2582_v2 }
 0x282   : > { %v2599_v10 = vmul.f32 -1.442695, %v1614_v60  ;;  %v1685_v50 = vadd.f32 %v6002_v29, %v1679_v0  ;;  %v6003_v4 = vmov %v6001_v6  ;;  %v1709_v27 = vadd.f32 %v6004_v3, %v1703_v47  ;;  %v6022_v3 = vld [vmem:[#allocation45_spill] sm:$0xff] }
 0x283   : > { %v1690_v13 = vmul.f32 %v6003_v4, %v4976_v22  ;;  %v1710_v41 = vadd.f32 %v6005_v62, %v1704_v30  ;;  %v1686_v35 = vadd.f32 %v6006_v38, %v1680_v24  ;;  %v1695_v11 = vadd.f32 %v6007_v26, %v1689_v59  ;;  %v6020_v59 = vld [vmem:[#allocation38_spill] sm:$0xff] }
 0x284   : > { %v6008_v20 = vstv %s4816_s30  ;;  %2884 = vpow2.f32 %v2598_v7  ;;  %v1697_v22 = vadd.f32 %v1685_v50, %v4985_v12  ;;  %v1719_v8 = vadd.f32 %v6010_v34, %v1713_v44  ;;  %v6021_v4 = vld [vmem:[#allocation46_spill] sm:$0xff]  ;;  %s5291_s30 = sld [smem:[#allocation10 + $0x79]] }
 0x285   : > { %v1492_v5 = vadd.f32 %v6008_v20, %v1486_v23  ;;  %v1696_v33 = vadd.f32 %v6009_v53, %v1690_v13  ;;  %2886 = vpow2.f32 %v2599_v10  ;;  %v1698_v19 = vadd.f32 %v1686_v35, %v4989_v15  ;;  %v2881_v54 = vpop.eup %2880 }
 0x286   : > { %v1699_v36 = vadd.f32 %v1695_v11, %v1675_v14  ;;  %v1720_v61 = vadd.f32 %v6011_v48, %v1714_v17  ;;  %v6012_v63 = vmov %v6008_v20  ;;  %v1721_v16 = vadd.f32 %v1709_v27, %v1697_v22 }
 0x287   : > { %v1491_v43 = vadd.f32 %v6012_v63, %v1485_v32  ;;  %v1700_v23 = vadd.f32 %v1696_v33, %v1676_v37  ;;  %v1730_v45 = vstv %s5029_s0  ;;  %v5069_v9 = vadd.f32 1.0, %v2881_v54  ;;  %v2883_v25 = vpop.eup %2882  ;;  %s5307_s0 = sld [smem:[#allocation10 + $0x6f]] }
 0x288   : > { %v1722_v12 = vadd.f32 %v1710_v41, %v1698_v19  ;;  %v1723_v55 = vadd.f32 %v1719_v8, %v1699_v36  ;;  %2888 = vtanh.f32 %v1492_v5  ;;  %v6013_v15 = vstv %s4872_s7  ;;  %s5299_s7 = sld [smem:[#allocation10 + $0x77]] }
 0x289   : > { %v1609_v14 = vadd.f32 %v6013_v15, %v1603_v18  ;;  %v1724_v46 = vadd.f32 %v1720_v61, %v1700_v23  ;;  %v1816_v28 = vstv %s5037_s2  ;;  %v5074_v21 = vadd.f32 1.0, %v2883_v25  ;;  %v6017_v18 = vld [vmem:[#allocation43_spill] sm:$0xff]  ;;  %s5309_s2 = sld [smem:[#allocation10 + $0x81]] }
 0x28a   : > { %2890 = vrcp.f32 %v5069_v9  ;;  %v6014_v32 = vmov %v6013_v15  ;;  %v2885_v42 = vpop.eup %2884  ;;  %v1731_v1 = vadd.f32 %v1730_v45, %v1723_v55  ;;  %v1838_v56 = vstv %s5051_s4  ;;  %s5311_s4 = sld [smem:[#allocation10 + $0x75]] }
 0x28b   : > { %v1610_v37 = vadd.f32 %v6014_v32, %v1604_v40  ;;  %2892 = vtanh.f32 %v1491_v43  ;;  %v2887_v47 = vpop.eup %2886  ;;  %v6016_v30 = vstv %s4749_s12  ;;  %v5087_v44 = vadd.f32 %v1816_v28, %v6017_v18  ;;  %s5142_s12 = sld [smem:[#allocation13 + $0x15]] }
 0x28c   : > { %2894 = vrcp.f32 %v5074_v21  ;;  %v5084_v52 = vadd.f32 %v6016_v30, %v6015_v31  ;;  %v6019_v49 = vmov %v6016_v30  ;;  %v1726_v51 = vstv %s5057_s6  ;;  %s5313_s6 = sld [smem:[#allocation10 + $0x87]] }
 0x28d   : > { %v5092_v2 = vadd.f32 %v6019_v49, %v6018_v39  ;;  %2896 = vtanh.f32 %v1609_v14  ;;  %v5095_v40 = vadd.f32 1.0, %v2885_v42  ;;  %v5097_v60 = vadd.f32 1.0, %v2887_v47 }
 0x28e   : > { %v1531_v0 = vand.u32 2147483647, %v5069_v9  ;;  %v1533_v58 = vand.u32 2147483648, %v5069_v9  ;;  %2898 = vtanh.f32 %v1610_v37  ;;  %v1732_v17 = vadd.f32 %v1730_v45, %v1724_v46  ;;  %v5101_v7 = vpop.eup %2888 }
 0x28f   : > { %v1516_v24 = vand.u32 2147483647, %v5074_v21  ;;  %2900 = vrcp.f32 %v5095_v40  ;;  %v2614_v6 = vmul.f32 -1.442695, %v1731_v1  ;;  %v5106_v10 = vadd.f32 %v1838_v56, %v6020_v59 }
 0x290   : > { %v2891_v29 = vpop.eup %2890  ;;  %v1518_v50 = vand.u32 2147483648, %v5074_v21  ;;  %2902 = vrcp.f32 %v5097_v60  ;;  %v5111_v13 = vadd.f32 %v1838_v56, %v6021_v4  ;;  %v5114_v27 = vadd.f32 %v1816_v28, %v6022_v3 }
 0x291   : > { %v5116_v62 = vpop.eup %2892  ;;  %v1523_v41 = vmul.f32 %v2891_v29, %v5069_v9  ;;  %vm1527_vm0 = vweird.f32 %v5069_v9  ;;  %v1727_v38 = vadd.f32 %v1726_v51, %v1721_v16  ;;  %v5120_v35 = vadd.f32 %v1726_v51, %v1722_v12 }
 0x292   : > { %v2895_v26 = vpop.eup %2894  ;;  %vm1512_vm6 = vweird.f32 %v5074_v21  ;;  %vm5123_vm7 = vcmp.eq.f32.partialorder %v1531_v0, 8.507059e+37  ;;  %v1534_v20 = vor.u32 1.1754944e-38, %v1533_v58  ;;  %v2615_v5 = vmul.f32 -1.442695, %v1732_v17 }
 0x293   : > { %v5127_v53 = vpop.eup %2896  ;;  %v1508_v33 = vmul.f32 %v2895_v26, %v5074_v21  ;;  %vm5130_vm8 = vcmp.eq.f32.partialorder %v1516_v24, 8.507059e+37  ;;  %v1524_v34 = vsub.f32 1.0, %v1523_v41  ;;  %2904 = vpow2.f32 %v2614_v6 }
 0x294   : > { %v5136_v8 = vpop.eup %2898  ;;  %v1519_v19 = vor.u32 1.1754944e-38, %v1518_v50  ;;  %v1634_v36 = vand.u32 2147483647, %v5095_v40  ;;  %v1636_v54 = vand.u32 2147483648, %v5095_v40  ;;  %2906 = vpow2.f32 %v2615_v5 }
 0x295   : > { %v2901_v48 = vpop.eup %2900  ;;  %v1509_v61 = vsub.f32 1.0, %v1508_v33  ;;  %v1525_v63 = vmul.f32 %v2891_v29, %v1524_v34  ;;  %vm1528_vm9 = vweird.f32 %v2891_v29  ;;  %2908 = vtanh.f32 %v1727_v38 }
 0x296   : > { %v2903_v43 = vpop.eup %2902  ;;  %v1626_v23 = vmul.f32 %v2901_v48, %v5095_v40  ;;  %vm1630_vm11 = vweird.f32 %v5095_v40  ;;  %vm1645_vm12 = vweird.f32 %v5097_v60  ;;  %v1649_v16 = vand.u32 2147483647, %v5097_v60  ;;  %vm1529_vm14 = vmor %vm1527_vm0, %vm1528_vm9 }
 0x297   : > { %v1510_v45 = vmul.f32 %v2895_v26, %v1509_v61  ;;  %vm1513_vm13 = vweird.f32 %v2895_v26  ;;  %v1526_v12 = vadd.f32 %v2891_v29, %v1525_v63  ;;  %v1641_v55 = vmul.f32 %v2903_v43, %v5097_v60 }
 0x298   : > { %v1627_v25 = vsub.f32 1.0, %v1626_v23  ;;  %vm5155_vm15 = vcmp.eq.f32.partialorder %v1634_v36, 8.507059e+37  ;;  %v1637_v14 = vor.u32 1.1754944e-38, %v1636_v54  ;;  %v1651_v46 = vand.u32 2147483648, %v5097_v60  ;;  %vm1514_vm2 = vmor %vm1512_vm6, %vm1513_vm13 }
 0x299   : > { %v2905_v28 = vpop.eup %2904  ;;  %v1511_v32 = vadd.f32 %v2895_v26, %v1510_v45  ;;  %v1530_v37 = vsel %vm1529_vm14, %v2891_v29, %v1526_v12  ;;  %vm1631_vm1 = vweird.f32 %v2901_v48  ;;  %v1642_v42 = vsub.f32 1.0, %v1641_v55 }
 0x29a   : > { %v2907_v1 = vpop.eup %2906  ;;  %v1535_v9 = vsel %vm5123_vm7, %v1534_v20, %v1530_v37  ;;  %v1628_v56 = vmul.f32 %v2901_v48, %v1627_v25  ;;  %vm1646_vm3 = vweird.f32 %v2903_v43  ;;  %v5167_v47 = vadd.f32 1.0, %v2905_v28  ;;  %vm1632_vm5 = vmor %vm1630_vm11, %vm1631_vm1 }
 0x29b   : > { %v5169_v31 = vpop.eup %2908  ;;  %v1515_v30 = vsel %vm1514_vm2, %v2895_v26, %v1511_v32  ;;  %v5172_v18 = vmul.f32 %v5101_v7, %v1535_v9  ;;  %v1643_v39 = vmul.f32 %v2903_v43, %v1642_v42  ;;  %v5174_v49 = vadd.f32 1.0, %v2907_v1  ;;  %vm1647_vm0 = vmor %vm1645_vm12, %vm1646_vm3 }
 0x29c   : > { %v1520_v21 = vsel %vm5130_vm8, %v1519_v19, %v1515_v30  ;;  %v1629_v51 = vadd.f32 %v2901_v48, %v1628_v56  ;;  %vm5178_vm4 = vcmp.eq.f32.partialorder %v1649_v16, 8.507059e+37  ;;  %2910 = vrcp.f32 %v5167_v47 }
 0x29d   : > { %v5184_v58 = vmul.f32 %v5116_v62, %v1520_v21  ;;  %v1644_v17 = vadd.f32 %v2903_v43, %v1643_v39  ;;  %v1652_v7 = vor.u32 1.1754944e-38, %v1651_v46  ;;  %2912 = vtanh.f32 %v5120_v35 }
 0x29e   : > { %v1633_v24 = vsel %vm1632_vm5, %v2901_v48, %v1629_v51  ;;  %2914 = vrcp.f32 %v5174_v49  ;;  %v1798_v6 = vstv %s5134_s9  ;;  %v1820_v59 = vstv %s5142_s12  ;;  %s5315_s9 = sld [smem:[#allocation10 + $0x7b]] }
 0x29f   : > { %v1638_v29 = vsel %vm5155_vm15, %v1637_v14, %v1633_v24  ;;  %v1648_v40 = vsel %vm1647_vm0, %v2903_v43, %v1644_v17  ;;  %v1826_v50 = vstv %s5148_s29  ;;  %v1842_v4 = vstv %s5151_s24  ;;  %s5319_s12 = sld [smem:[#allocation10 + $0x6c]] }
 0x2a0   : > { %v1653_v3 = vsel %vm5178_vm4, %v1652_v7, %v1648_v40  ;;  %v5203_v62 = vmul.f32 %v5127_v53, %v1638_v29  ;;  %v1804_v41 = vstv %s5140_s11  ;;  %v1848_v38 = vstv %s5160_s26  ;;  %s5317_s11 = sld [smem:[#allocation10 + $0x8d]] }
 0x2a1   : > { %v5208_v60 = vmul.f32 %v5136_v8, %v1653_v3  ;;  %vm1748_vm6 = vweird.f32 %v5167_v47  ;;  %v1800_v35 = vmul.f32 %v1798_v6, %v5172_v18  ;;  %v1821_v26 = vmul.f32 %v1820_v59, %v5184_v58  ;;  %s5321_s29 = sld [smem:[#allocation10 + $0x7e]] }
 0x2a2   : > { %v1799_v11 = vmul.f32 %v1798_v6, %v5184_v58  ;;  %v2911_v20 = vpop.eup %2910  ;;  %v1752_v5 = vand.u32 2147483647, %v5167_v47  ;;  %v1754_v33 = vand.u32 2147483648, %v5167_v47  ;;  %v1827_v53 = vmul.f32 %v1826_v50, %v5203_v62  ;;  %s5323_s24 = sld [smem:[#allocation10 + $0x72]] }
 0x2a3   : > { %v1843_v22 = vmul.f32 %v1842_v4, %v5184_v58  ;;  %v2913_v34 = vpop.eup %2912  ;;  %v1744_v8 = vmul.f32 %v2911_v20, %v5167_v47  ;;  %v1802_v19 = vadd.f32 %v1800_v35, %v5084_v52  ;;  %v1806_v36 = vmul.f32 %v1804_v41, %v5208_v60  ;;  %s5325_s26 = sld [smem:[#allocation10 + $0x84]] }
 0x2a4   : > { %v1805_v54 = vmul.f32 %v1804_v41, %v5203_v62  ;;  %v2915_v48 = vpop.eup %2914  ;;  %v1823_v61 = vadd.f32 %v1821_v26, %v5087_v44  ;;  %v1801_v63 = vadd.f32 %v1799_v11, %v5092_v2  ;;  %v1849_v23 = vmul.f32 %v1848_v38, %v5203_v62 }
 0x2a5   : > { %v1845_v43 = vadd.f32 %v1843_v22, %v5106_v10  ;;  %v1745_v16 = vsub.f32 1.0, %v1744_v8  ;;  %v1759_v52 = vmul.f32 %v2915_v48, %v5174_v49  ;;  %v1767_v45 = vand.u32 2147483647, %v5174_v49 }
 0x2a6   : > { %v1808_v12 = vadd.f32 %v1806_v36, %v1802_v19  ;;  %v1829_v55 = vadd.f32 %v1827_v53, %v1823_v61  ;;  %v1807_v25 = vadd.f32 %v1805_v54, %v1801_v63  ;;  %v1844_v14 = vmul.f32 %v1842_v4, %v5172_v18  ;;  %v6033_v19 = vld [vmem:[#allocation40_spill] sm:$0xff] }
 0x2a7   : > { %v1851_v15 = vadd.f32 %v1849_v23, %v1845_v43  ;;  %v1746_v44 = vmul.f32 %v2911_v20, %v1745_v16  ;;  %vm1749_vm7 = vweird.f32 %v2911_v20  ;;  %v1760_v2 = vsub.f32 1.0, %v1759_v52 }
 0x2a8   : > { %v1822_v10 = vmul.f32 %v1820_v59, %v5172_v18  ;;  %vm1764_vm8 = vweird.f32 %v2915_v48  ;;  %v1769_v46 = vand.u32 2147483648, %v5174_v49  ;;  %v1846_v28 = vadd.f32 %v1844_v14, %v5111_v13  ;;  %vm1750_vm9 = vmor %vm1748_vm6, %vm1749_vm7 }
 0x2a9   : > { %v1850_v32 = vmul.f32 %v1848_v38, %v5208_v60  ;;  %v1747_v37 = vadd.f32 %v2911_v20, %v1746_v44  ;;  %v1761_v42 = vmul.f32 %v2915_v48, %v1760_v2  ;;  %v1828_v9 = vmul.f32 %v1826_v50, %v5208_v60 }
 0x2aa   : > { %v1824_v1 = vadd.f32 %v1822_v10, %v5114_v27  ;;  %v1755_v56 = vor.u32 1.1754944e-38, %v1754_v33  ;;  %vm1763_vm11 = vweird.f32 %v5174_v49  ;;  %v1810_v30 = vstv %s5216_s14  ;;  %s5327_s14 = sld [smem:[#allocation10 + $0x78]] }
 0x2ab   : > { %v1852_v39 = vadd.f32 %v1850_v32, %v1846_v28  ;;  %v1751_v21 = vsel %vm1750_vm9, %v2911_v20, %v1747_v37  ;;  %vm1753_vm12 = vcmp.eq.f32.partialorder %v1752_v5, 8.507059e+37  ;;  %v1762_v13 = vadd.f32 %v2915_v48, %v1761_v42  ;;  %vm1765_vm13 = vmor %vm1763_vm11, %vm1764_vm8 }
 0x2ac   : > { %v1830_v51 = vadd.f32 %v1828_v9, %v1824_v1  ;;  %v1756_v0 = vsel %vm1753_vm12, %v1755_v56, %v1751_v21  ;;  %v1770_v17 = vor.u32 1.1754944e-38, %v1769_v46  ;;  %v1832_v7 = vstv %s5223_s19  ;;  %s5329_s19 = sld [smem:[#allocation10 + $0x8a]] }
 0x2ad   : > { %v1854_v27 = vstv %s5230_s20  ;;  %v1766_v24 = vsel %vm1765_vm13, %v2915_v48, %v1762_v13  ;;  %vm1768_vm14 = vcmp.eq.f32.partialorder %v1767_v45, 8.507059e+37  ;;  %v1773_v47 = vmul.f32 %v5169_v31, %v1756_v0  ;;  %s5331_s20 = sld [smem:[#allocation10 + $0x70]] }
 0x2ae   : > { %v1771_v6 = vsel %vm1768_vm14, %v1770_v17, %v1766_v24  ;;  %v1776_v20 = vstv %s2616_s23  ;;  %v1782_v53 = vstv %s2617_s25  ;;  %v1788_v22 = vstv %s2618_s8  ;;  %s5333_s23 = sld [smem:[#allocation10 + $0x82]] }
 0x2af   : > { %v1774_v59 = vmul.f32 %v2913_v34, %v1771_v6  ;;  %v1833_v49 = vmul.f32 %v1832_v7, %v1773_v47  ;;  %v1811_v29 = vmul.f32 %v1810_v30, %v1773_v47  ;;  %v1855_v40 = vmul.f32 %v1854_v27, %v1773_v47  ;;  %v6032_v34 = vld [vmem:[#allocation39_spill] sm:$0xff]  ;;  %s5335_s25 = sld [smem:[#allocation10 + $0x76]] }
 0x2b0   : > { %v1777_v5 = vmul.f32 %v1776_v20, %v5184_v58  ;;  %v1778_v33 = vmul.f32 %v1776_v20, %v5172_v18  ;;  %v1783_v54 = vmul.f32 %v1782_v53, %v5203_v62  ;;  %v1784_v58 = vmul.f32 %v1782_v53, %v5208_v60  ;;  %s5347_s8 = sld [smem:[#allocation10 + $0x7c]] }
 0x2b1   : > { %v1812_v50 = vmul.f32 %v1810_v30, %v1774_v59  ;;  %v5249_v4 = vadd.f32 %v1833_v49, %v1829_v55  ;;  %v5251_v3 = vadd.f32 %v1811_v29, %v1807_v25  ;;  %v5253_v41 = vadd.f32 %v1855_v40, %v1851_v15 }
 0x2b2   : > { %v1856_v38 = vmul.f32 %v1854_v27, %v1774_v59  ;;  %v1834_v35 = vmul.f32 %v1832_v7, %v1774_v59  ;;  %v1779_v8 = vadd.f32 %v1777_v5, %v6032_v34  ;;  %v1780_v36 = vadd.f32 %v1778_v33, %v6033_v19 }
 0x2b3   : > { %v5255_v26 = vadd.f32 %v1812_v50, %v1808_v12  ;;  %1867 = vrot.lane.b32.xlu2 %v5249_v4, %s6031_s28  ;;  %1859 = vrot.lane.b32.xlu0 %v5251_v3, %s6031_s28  ;;  %v1789_v48 = vmul.f32 %v1788_v22, %v1773_v47  ;;  %v1790_v63 = vmul.f32 %v1788_v22, %v1774_v59  ;;  %v1888_v62 = vstv %s5283_s22  ;;  %s5352_s22 = sld [smem:[#allocation10 + $0x8e]] }
 0x2b4   : > { %v5261_v31 = vadd.f32 %v1856_v38, %v1852_v39  ;;  %v5263_v11 = vadd.f32 %v1834_v35, %v1830_v51  ;;  %v1785_v18 = vadd.f32 %v1783_v54, %v1779_v8  ;;  %v1786_v61 = vadd.f32 %v1784_v58, %v1780_v36 }
 0x2b5   : > { %1861 = vrot.lane.b32.xlu1 %v5255_v26, %s6031_s28  ;;  %v1898_v60 = vstv %s5285_s27  ;;  %v2006_v16 = vstv %s5287_s1  ;;  %v2016_v52 = vstv %s5289_s18  ;;  %s5355_s27 = sld [smem:[#allocation10 + $0x6e]]  ;;  %v5362_v37 = vmul.f32 %v1888_v62, %v5251_v3 }
 0x2b6   : > { %v5279_v43 = vadd.f32 %v1789_v48, %v1785_v18  ;;  %v5281_v23 = vadd.f32 %v1790_v63, %v1786_v61  ;;  %v2124_v45 = vstv %s5291_s30  ;;  %v2134_v12 = vstv %s5293_s15  ;;  %s5367_s1 = sld [smem:[#allocation10 + $0x80]] }
 0x2b7   : > { %v1932_v55 = vstv %s5295_s3  ;;  %v1942_v25 = vstv %s5297_s5  ;;  %v2050_v15 = vstv %s5299_s7  ;;  %v2060_v14 = vstv %s5301_s13  ;;  %s5383_s18 = sld [smem:[#allocation12 + $0x12]] }
 0x2b8   : > { %6034 = vst [vmem:[#allocation42_spill] sm:$0xff] %v5279_v43  ;;  %v2168_v44 = vstv %s5303_s10  ;;  %v2178_v2 = vstv %s5305_s21  ;;  %v1908_v10 = vstv %s5307_s0  ;;  %v1918_v46 = vstv %s5309_s2  ;;  %s5397_s30 = sld [smem:[#allocation12 + $0x15]] }
 0x2b9   : > { %6035 = vst [vmem:[#allocation37_spill] sm:$0xff] %v5281_v23  ;;  %v2026_v28 = vstv %s5311_s4  ;;  %v2036_v32 = vstv %s5313_s6  ;;  %v5365_v42 = vmul.f32 %v1898_v60, %v5251_v3  ;;  %v2144_v1 = vstv %s5315_s9  ;;  %s5411_s15 = sld [smem:[#allocation10 + $0x74]] }
 0x2ba   : > { %v2154_v9 = vstv %s5317_s11  ;;  %v5372_v56 = vmul.f32 %v1888_v62, %v5255_v26  ;;  %v5375_v30 = vmul.f32 %v1898_v60, %v5255_v26  ;;  %v5378_v39 = vmul.f32 %v2006_v16, %v5251_v3  ;;  %s5425_s3 = sld [smem:[#allocation10 + $0x86]]  ;;  %s2688_s11 = sshll.u32 %s3261_s17, 4 }
 0x2bb   : > { %1877 = vrot.lane.b32.xlu2 %v5261_v31, %s6031_s28  ;;  %1869 = vrot.lane.b32.xlu0 %v5263_v11, %s6031_s28  ;;  %v5381_v21 = vmul.f32 %v2016_v52, %v5251_v3  ;;  %v5386_v13 = vmul.f32 %v2006_v16, %v5255_v26  ;;  %v5389_v51 = vmul.f32 %v2016_v52, %v5255_v26  ;;  %s5439_s5 = sld [smem:[#allocation12 + $0x13]]  ;;  %v1884_v54 = vstv %s5319_s12 }
 0x2bc   : > { %v5392_v0 = vmul.f32 %v2124_v45, %v5255_v26  ;;  %v5395_v17 = vmul.f32 %v2134_v12, %v5255_v26  ;;  %v5400_v7 = vmul.f32 %v2124_v45, %v5251_v3  ;;  %v5403_v27 = vmul.f32 %v2134_v12, %v5251_v3  ;;  %s5453_s7 = sld [smem:[#allocation12 + $0x16]] }
 0x2bd   : > { %1875 = vrot.lane.b32.xlu1 %v5253_v41, %s6031_s28  ;;  %s5341_s28 = sld [smem:[#allocation10 + $0x88]]  ;;  %v5406_v24 = vmul.f32 %v1932_v55, %v5261_v31  ;;  %v5409_v47 = vmul.f32 %v1942_v25, %v5261_v31  ;;  %v5414_v6 = vmul.f32 %v2050_v15, %v5261_v31  ;;  %v5417_v59 = vmul.f32 %v2060_v14, %v5261_v31 }
 0x2be   : > { %v5420_v49 = vmul.f32 %v2168_v44, %v5261_v31  ;;  %v5423_v29 = vmul.f32 %v2178_v2, %v5261_v31  ;;  %v5428_v40 = vmul.f32 %v1932_v55, %v5253_v41  ;;  %v5431_v50 = vmul.f32 %v1942_v25, %v5253_v41  ;;  %s5467_s13 = sld [smem:[#allocation10 + $0x7a]] }
 0x2bf   : > { %v5434_v3 = vmul.f32 %v2050_v15, %v5253_v41  ;;  %v5437_v38 = vmul.f32 %v2060_v14, %v5253_v41  ;;  %v5442_v35 = vmul.f32 %v2168_v44, %v5253_v41  ;;  %v5445_v26 = vmul.f32 %v2178_v2, %v5253_v41  ;;  %s5481_s10 = sld [smem:[#allocation10 + $0x8c]] }
 0x2c0   : > { %6036 = vst [vmem:[#allocation41_spill] sm:$0xff] %v5420_v49  ;;  %v5448_v31 = vmul.f32 %v1908_v10, %v5249_v4  ;;  %v5451_v20 = vmul.f32 %v1908_v10, %v5263_v11  ;;  %v5456_v5 = vmul.f32 %v1918_v46, %v5249_v4  ;;  %v5459_v33 = vmul.f32 %v1918_v46, %v5263_v11  ;;  %s5605_s21 = sld [smem:[#allocation12 + $0x17]] }
 0x2c1   : > { %6037 = vst [vmem:[#allocation35_spill] sm:$0xff] %v5423_v29  ;;  %v5462_v41 = vmul.f32 %v2026_v28, %v5249_v4  ;;  %v5465_v53 = vmul.f32 %v2026_v28, %v5263_v11  ;;  %v5470_v22 = vmul.f32 %v2036_v32, %v5249_v4  ;;  %v5473_v34 = vmul.f32 %v2036_v32, %v5263_v11  ;;  %s5640_s0 = sld [smem:[#allocation12 + $0x14]] }
 0x2c2   : > { %6038 = vst [vmem:[#allocation48_spill] sm:$0xff] %v5445_v26  ;;  %v5476_v8 = vmul.f32 %v2144_v1, %v5249_v4  ;;  %v5479_v19 = vmul.f32 %v2144_v1, %v5263_v11  ;;  %v1894_v58 = vstv %s5321_s29  ;;  %v5488_v48 = vmul.f32 %v2154_v9, %v5249_v4  ;;  %s5685_s2 = sld [smem:[#allocation16 + $0x9]] }
 0x2c3   : > { %v5491_v61 = vmul.f32 %v2154_v9, %v5263_v11  ;;  %v2002_v63 = vstv %s5323_s24  ;;  %v2012_v62 = vstv %s5325_s26  ;;  %v2120_v60 = vstv %s5327_s14  ;;  %s5696_s4 = sld [smem:[#allocation16 + $0xa]]  ;;  %s6071_s14 = sshll.u32 %s3364_s16, 4 }
 0x2c4   : > { %6039 = vst [vmem:[#allocation49_spill] sm:$0xff] %v5476_v8  ;;  %v2130_v16 = vstv %s5329_s19  ;;  %v1928_v45 = vstv %s5331_s20  ;;  %v1938_v12 = vstv %s5333_s23  ;;  %v2046_v55 = vstv %s5335_s25  ;;  %s5729_s6 = sld [smem:[#allocation16 + $0xb]]  ;;  %s441_s20 = scalar_lea.vmem [#allocation18], %s6071_s14 }
 0x2c5   : > { %6040 = vst [vmem:[#allocation34_spill] sm:$0xff] %v5479_v19  ;;  %v2056_v25 = vstv %s5341_s28  ;;  %v1904_v46 = vstv %s5355_s27  ;;  %v1914_v1 = vstv %s5367_s1  ;;  %v2022_v9 = vstv %s5411_s15  ;;  %s5737_s9 = sld [smem:[#allocation2]]  ;;  %s2275_s17 = sshll.u32 %s441_s20, 4  ;;  %s2276_s17 = int_to_ptr.vmem [resolvable:$true] %s2275_s17 }
 0x2c6   : > { %6041 = vst [vmem:[#allocation36_spill] sm:$0xff] %v5488_v48  ;;  %v1956_v29 = vstv %s5397_s30  ;;  %s6070_s24 = sld [smem:[#allocation58_spill]]  ;;  %s2262_s25 = scalar_lea.sflag [#allocation5], %s3364_s16 }
 0x2c7   : > { %6042 = vst [vmem:[#allocation47_spill] sm:$0xff] %v5491_v61  ;;  %v2032_v61 = vstv %s5425_s3 }
 0x2cc   : > { %s2273_s26 = scalar_lea.hbm %s6070_s24, %s2688_s11  ;;  %s3107_s1 = scalar_lea.hbm %s6070_s24, 32 }
 0x2cd   : > { %s2277_s23 = sshll.u32 %s2273_s26, 4  ;;  %s2278_s23 = int_to_ptr.hbm [resolvable:$true] %s2277_s23 }
 0x2ce   : > { %s3101_s28 = sshra.s32 %s2278_s23, 4  ;;  %s3102_s28 = int_to_ptr.hbm [resolvable:$true] %s3101_s28 }
 0x2cf   : > { %p3108_p12 = scmp.lt.s32.totalorder %s3102_s28, %s6070_s24 }
 0x30d   : > { %v5483_v36 = vpop.permute.xlu2 %1867 }
 0x315   : > { %v1878_v43 = vpop.permute.xlu2 %1877 }
 0x325   : > { %v1860_v18 = vpop.permute.xlu0 %1859 }
 0x327   : > { %v1862_v52 = vpop.permute.xlu1 %1861 }
 0x328   : > { %v1863_v4 = vsel %vm933_vm10, %v1860_v18, %v1862_v52  ;;  %v1864_v11 = vsel %vm933_vm10, %v1862_v52, %v1860_v18 }
 0x329   : > { %v1865_v44 = vsel %vm933_vm10, 0.0, %v1864_v11  ;;  %v1886_v2 = vmul.f32 %v1884_v54, %v1863_v4  ;;  %v1896_v10 = vmul.f32 %v1894_v58, %v1863_v4  ;;  %v2004_v32 = vmul.f32 %v2002_v63, %v1863_v4 }
 0x32a   : > { %v1885_v28 = vmul.f32 %v1884_v54, %v1865_v44  ;;  %v1895_v23 = vmul.f32 %v1894_v58, %v1865_v44  ;;  %v2003_v11 = vmul.f32 %v2002_v63, %v1865_v44  ;;  %v2013_v49 = vmul.f32 %v2012_v62, %v1865_v44 }
 0x32b   : > { %v1892_v14 = vadd.f32 %v5372_v56, %v1886_v2  ;;  %v1902_v26 = vadd.f32 %v5375_v30, %v1896_v10  ;;  %v5523_v8 = vadd.f32 %v5386_v13, %v2004_v32  ;;  %v2014_v58 = vmul.f32 %v2012_v62, %v1863_v4 }
 0x32c   : > { %v1891_v54 = vadd.f32 %v5362_v37, %v1885_v28  ;;  %v1901_v48 = vadd.f32 %v5365_v42, %v1895_v23  ;;  %v2121_v52 = vmul.f32 %v2120_v60, %v1865_v44  ;;  %v2122_v56 = vmul.f32 %v2120_v60, %v1863_v4 }
 0x32d   : > { %v1870_v19 = vpop.permute.xlu0 %1869  ;;  %v2131_v63 = vmul.f32 %v2130_v16, %v1865_v44  ;;  %v2132_v37 = vmul.f32 %v2130_v16, %v1863_v4  ;;  %v2009_v28 = vadd.f32 %v5378_v39, %v2003_v11  ;;  %v2019_v16 = vadd.f32 %v5381_v21, %v2013_v49 }
 0x32e   : > { %v1872_v18 = vsel %vm933_vm10, %v1870_v19, %v5483_v36  ;;  %v2020_v4 = vadd.f32 %v5389_v51, %v2014_v58  ;;  %v5557_v15 = vadd.f32 %v5392_v0, %v2122_v56 }
 0x32f   : > { %v1876_v2 = vpop.permute.xlu1 %1875  ;;  %v5531_v30 = vsel %vm933_vm10, 0.0, %v1872_v18  ;;  %v5560_v39 = vadd.f32 %v5403_v27, %v2131_v63  ;;  %v5563_v51 = vadd.f32 %v5395_v17, %v2132_v37 }
 0x330   : > { %v5535_v13 = vsel %vm933_vm10, %v1876_v2, %v1878_v43  ;;  %v1880_v62 = vsel %vm933_vm10, %v1878_v43, %v1876_v2  ;;  %v1905_v44 = vmul.f32 %v1904_v46, %v5531_v30  ;;  %v5551_v2 = vsel %vm933_vm10, %v5483_v36, %v1870_v19 }
 0x331   : > { %v1881_v10 = vsel %vm933_vm10, 0.0, %v1880_v62  ;;  %v1930_v23 = vmul.f32 %v1928_v45, %v5535_v13  ;;  %v1940_v42 = vmul.f32 %v1938_v12, %v5535_v13  ;;  %v2048_v60 = vmul.f32 %v2046_v55, %v5535_v13 }
 0x332   : > { %v1929_v32 = vmul.f32 %v1928_v45, %v1881_v10  ;;  %v1939_v18 = vmul.f32 %v1938_v12, %v1881_v10  ;;  %v2047_v43 = vmul.f32 %v2046_v55, %v1881_v10  ;;  %v5554_v62 = vadd.f32 %v5400_v7, %v2121_v52 }
 0x333   : > { %v2057_v21 = vmul.f32 %v2056_v25, %v1881_v10  ;;  %v1936_v49 = vadd.f32 %v5406_v24, %v1930_v23  ;;  %v1946_v45 = vadd.f32 %v5409_v47, %v1940_v42  ;;  %v2054_v57 = vadd.f32 %v5414_v6, %v2048_v60 }
 0x334   : > { %v2058_v7 = vmul.f32 %v2056_v25, %v5535_v13  ;;  %v1906_v19 = vmul.f32 %v1904_v46, %v5551_v2  ;;  %v1911_v0 = vadd.f32 %v5448_v31, %v1905_v44  ;;  %v1915_v27 = vmul.f32 %v1914_v1, %v5531_v30 }
 0x335   : > { %v1935_v36 = vadd.f32 %v5428_v40, %v1929_v32  ;;  %v1945_v17 = vadd.f32 %v5431_v50, %v1939_v18  ;;  %v2053_v24 = vadd.f32 %v5434_v3, %v2047_v43  ;;  %v1916_v47 = vmul.f32 %v1914_v1, %v5551_v2 }
 0x336   : > { %v2063_v6 = vadd.f32 %v5437_v38, %v2057_v21  ;;  %v1912_v12 = vadd.f32 %v5451_v20, %v1906_v19  ;;  %v1921_v55 = vadd.f32 %v5456_v5, %v1915_v27  ;;  %v1923_v25 = vadd.f32 %v1911_v0, %v1891_v54  ;;  %v6051_v0 = vld [vmem:[#allocation49_spill] sm:$0xff] }
 0x337   : > { %v1922_v31 = vadd.f32 %v5459_v33, %v1916_v47  ;;  %v2023_v46 = vmul.f32 %v2022_v9, %v5531_v30  ;;  %v2024_v40 = vmul.f32 %v2022_v9, %v5551_v2  ;;  %v2033_v50 = vmul.f32 %v2032_v61, %v5531_v30 }
 0x338   : > { %v1924_v3 = vadd.f32 %v1912_v12, %v1892_v14  ;;  %v1925_v52 = vadd.f32 %v1921_v55, %v1901_v48  ;;  %v1947_v1 = vadd.f32 %v1935_v36, %v1923_v25  ;;  %v2034_v38 = vmul.f32 %v2032_v61, %v5551_v2  ;;  %v6055_v55 = vld [vmem:[#allocation34_spill] sm:$0xff] }
 0x339   : > { %v1926_v20 = vadd.f32 %v1922_v31, %v1902_v26  ;;  %v2029_v5 = vadd.f32 %v5462_v41, %v2023_v46  ;;  %v2030_v33 = vadd.f32 %v5465_v53, %v2024_v40  ;;  %v2039_v11 = vadd.f32 %v5470_v22, %v2033_v50  ;;  %v6056_v46 = vld [vmem:[#allocation41_spill] sm:$0xff]  ;;  %v6057_v50 = vld [vmem:[#allocation48_spill] sm:$0xff] }
 0x33a   : > { %v6043_v9 = vstv %s5347_s8  ;;  %v1948_v58 = vadd.f32 %v1936_v49, %v1924_v3  ;;  %v1949_v14 = vadd.f32 %v1945_v17, %v1925_v52  ;;  %v2040_v48 = vadd.f32 %v5473_v34, %v2034_v38  ;;  %v6058_v52 = vld [vmem:[#allocation36_spill] sm:$0xff]  ;;  %s3103_s8 = scalar_lea.hbm %s3102_s28, 16 }
 0x33b   : > { %v2165_v54 = vmul.f32 %v6043_v9, %v1881_v10  ;;  %v1950_v56 = vadd.f32 %v1946_v45, %v1926_v20  ;;  %v2041_v63 = vadd.f32 %v2029_v5, %v2009_v28  ;;  %v2042_v61 = vadd.f32 %v2030_v33, %v5523_v8  ;;  %v6059_v20 = vld [vmem:[#allocation47_spill] sm:$0xff]  ;;  %p3104_p1 = scmp.ne.s32.totalorder %s3102_s28, %s3103_s8  ;;  %p3109_p8 = scmp.lt.s32.totalorder %s3107_s1, %s3103_s8 }
 0x33c   : > { %v2043_v26 = vadd.f32 %v2039_v11, %v2019_v16  ;;  %v2064_v41 = vadd.f32 %v5417_v59, %v2058_v7  ;;  %v6044_v53 = vmov %v6043_v9  ;;  %v1957_v37 = vadd.f32 %v1956_v29, %v1949_v14  ;;  %v6061_v11 = vld [vmem:[#allocation35_spill] sm:$0xff] }
 0x33d   : > { %v2166_v22 = vmul.f32 %v6044_v53, %v5535_v13  ;;  %v2044_v23 = vadd.f32 %v2040_v48, %v2020_v4  ;;  %v1958_v34 = vadd.f32 %v1956_v29, %v1950_v56  ;;  %v2065_v42 = vadd.f32 %v2053_v24, %v2041_v63  ;;  %p3105_p3 = pnand %p3104_p1, %p3333_p13  ;;  %p3110_p7 = por %p3109_p8, %p3108_p12 }
 0x33e   : > { %v2066_v60 = vadd.f32 %v2054_v57, %v2042_v61  ;;  %v2067_v28 = vadd.f32 %v2063_v6, %v2043_v26  ;;  %v6045_v44 = vstv %s5352_s22  ;;  %v2645_v59 = vmul.f32 -1.442695, %v1957_v37 }
 0x33f   : > { %v2175_v8 = vmul.f32 %v6045_v44, %v1881_v10  ;;  %v2068_v16 = vadd.f32 %v2064_v41, %v2044_v23  ;;  %v6046_v32 = vstv %s5467_s13  ;;  %v2171_v4 = vadd.f32 %v5442_v35, %v2165_v54  ;;  %p3106_p4 = pneg %p3105_p3 }
 0x340   : > { %v2141_v18 = vmul.f32 %v6046_v32, %v5531_v30  ;;  %v6047_v43 = vmov %v6045_v44  ;;  %v2646_v21 = vmul.f32 -1.442695, %v1958_v34  ;;  %v6048_v49 = vstv %s5453_s7 }
 0x341   : > { %v2176_v29 = vmul.f32 %v6047_v43, %v5535_v13  ;;  %v2075_v45 = vadd.f32 %v6048_v49, %v2067_v28  ;;  %2916 = vpow2.f32 %v2645_v59  ;;  %v6049_v57 = vmov %v6048_v49  ;;  %p3111_p9 = pnand %p3110_p7, %p3106_p4 }
 0x342   : > { %v2076_v10 = vadd.f32 %v6049_v57, %v2068_v16  ;;  %v6050_v7 = vmov %v6046_v32  ;;  %v2147_v27 = vadd.f32 %v6051_v0, %v2141_v18  ;;  %2918 = vpow2.f32 %v2646_v21 }
 0x343   : > { %v2142_v19 = vmul.f32 %v6050_v7, %v5551_v2  ;;  %v2661_v36 = vmul.f32 -1.442695, %v2075_v45  ;;  %v6052_v17 = vstv %s5481_s10  ;;  %v6054_v47 = vstv %s5383_s18 }
 0x344   : > { %v2151_v35 = vmul.f32 %v6052_v17, %v5531_v30  ;;  %v6053_v24 = vmov %v6052_v17  ;;  %v1953_v6 = vadd.f32 %v6054_v47, %v1947_v1  ;;  %v2662_v12 = vmul.f32 -1.442695, %v2076_v10 }
 0x345   : > { %v2152_v13 = vmul.f32 %v6053_v24, %v5551_v2  ;;  %v2148_v25 = vadd.f32 %v6055_v55, %v2142_v19  ;;  %v2159_v31 = vadd.f32 %v2147_v27, %v5554_v62  ;;  %v2172_v40 = vadd.f32 %v6056_v46, %v2166_v22 }
 0x346   : > { %v2181_v3 = vadd.f32 %v6057_v50, %v2175_v8  ;;  %v2157_v38 = vadd.f32 %v6058_v52, %v2151_v35  ;;  %v6060_v30 = vmov %v6054_v47  ;;  %2920 = vpow2.f32 %v2661_v36 }
 0x347   : > { %v2158_v5 = vadd.f32 %v6059_v20, %v2152_v13  ;;  %v1954_v33 = vadd.f32 %v6060_v30, %v1948_v58  ;;  %v2160_v2 = vadd.f32 %v2148_v25, %v5557_v15  ;;  %v2183_v1 = vadd.f32 %v2171_v4, %v2159_v31  ;;  %v2917_v14 = vpop.eup %2916 }
 0x348   : > { %v2182_v9 = vadd.f32 %v6061_v11, %v2176_v29  ;;  %2922 = vpow2.f32 %v2662_v12  ;;  %v2161_v62 = vadd.f32 %v2157_v38, %v5560_v39  ;;  %v2192_v48 = vstv %s5605_s21  ;;  %v2919_v63 = vpop.eup %2918 }
 0x349   : > { %v2162_v54 = vadd.f32 %v2158_v5, %v5563_v51  ;;  %2924 = vtanh.f32 %v1953_v6  ;;  %v2184_v56 = vadd.f32 %v2172_v40, %v2160_v2  ;;  %v5645_v58 = vadd.f32 1.0, %v2917_v14 }
 0x34a   : > { %v6062_v61 = vstv %s5439_s5  ;;  %v2185_v26 = vadd.f32 %v2181_v3, %v2161_v62  ;;  %2926 = vtanh.f32 %v1954_v33  ;;  %v5649_v53 = vadd.f32 1.0, %v2919_v63 }
 0x34b   : > { %v2071_v15 = vadd.f32 %v6062_v61, %v2065_v42  ;;  %v2186_v41 = vadd.f32 %v2182_v9, %v2162_v54  ;;  %v6063_v22 = vmov %v6062_v61  ;;  %2928 = vrcp.f32 %v5645_v58 }
 0x34c   : > { %v2072_v37 = vadd.f32 %v6063_v22, %v2066_v60  ;;  %v2193_v39 = vadd.f32 %v2192_v48, %v2185_v26  ;;  %v2921_v23 = vpop.eup %2920  ;;  %2930 = vrcp.f32 %v5649_v53  ;;  %v2188_v16 = vstv %s5640_s0 }
 0x34d   : > { %v2194_v51 = vadd.f32 %v2192_v48, %v2186_v41  ;;  %2932 = vtanh.f32 %v2071_v15  ;;  %v5655_v28 = vadd.f32 1.0, %v2921_v23  ;;  %v1978_v32 = vand.u32 2147483647, %v5645_v58 }
 0x34e   : > { %v2923_v34 = vpop.eup %2922  ;;  %v2677_v42 = vmul.f32 -1.442695, %v2193_v39  ;;  %2934 = vtanh.f32 %v2072_v37  ;;  %v1980_v18 = vand.u32 2147483648, %v5645_v58  ;;  %v1993_v43 = vand.u32 2147483647, %v5649_v53 }
 0x34f   : > { %v5657_v44 = vpop.eup %2924  ;;  %v5659_v8 = vadd.f32 1.0, %v2923_v34  ;;  %v2678_v59 = vmul.f32 -1.442695, %v2194_v51  ;;  %2936 = vrcp.f32 %v5655_v28  ;;  %v5667_v21 = vadd.f32 %v2188_v16, %v2183_v1 }
 0x350   : > { %v2927_v60 = vpop.eup %2926  ;;  %v1995_v45 = vand.u32 2147483648, %v5649_v53  ;;  %v5673_v10 = vadd.f32 %v2188_v16, %v2184_v56  ;;  %vm1974_vm10 = vweird.f32 %v5645_v58  ;;  %vm1989_vm15 = vweird.f32 %v5649_v53  ;;  %v6068_v16 = vld [vmem:[#allocation42_spill] sm:$0xff] }
 0x351   : > { %2938 = vrcp.f32 %v5659_v8  ;;  %v2929_v4 = vpop.eup %2928  ;;  %vm5680_vm1 = vcmp.eq.f32.partialorder %v1978_v32, 8.507059e+37  ;;  %v1981_v36 = vor.u32 1.1754944e-38, %v1980_v18  ;;  %vm2092_vm2 = vweird.f32 %v5655_v28 }
 0x352   : > { %2940 = vpow2.f32 %v2677_v42  ;;  %v2931_v29 = vpop.eup %2930  ;;  %v1970_v49 = vmul.f32 %v2929_v4, %v5645_v58  ;;  %vm5687_vm3 = vcmp.eq.f32.partialorder %v1993_v43, 8.507059e+37  ;;  %v2096_v13 = vand.u32 2147483647, %v5655_v28 }
 0x353   : > { %2942 = vpow2.f32 %v2678_v59  ;;  %v5671_v57 = vpop.eup %2932  ;;  %v1985_v7 = vmul.f32 %v2931_v29, %v5649_v53  ;;  %v2098_v47 = vand.u32 2147483648, %v5655_v28  ;;  %vm1975_vm4 = vweird.f32 %v2929_v4 }
 0x354   : > { %v5678_v19 = vpop.eup %2934  ;;  %v1971_v0 = vsub.f32 1.0, %v1970_v49  ;;  %v1996_v55 = vor.u32 1.1754944e-38, %v1995_v45  ;;  %vm1990_vm5 = vweird.f32 %v2931_v29  ;;  %v2111_v50 = vand.u32 2147483647, %v5659_v8  ;;  %vm1976_vm0 = vmor %vm1974_vm10, %vm1975_vm4 }
 0x355   : > { %v2937_v17 = vpop.eup %2936  ;;  %v1986_v35 = vsub.f32 1.0, %v1985_v7  ;;  %v2113_v5 = vand.u32 2147483648, %v5659_v8  ;;  %vm1991_vm7 = vmor %vm1989_vm15, %vm1990_vm5  ;;  %v2238_v63 = vstv %s5685_s2  ;;  %v2099_v61 = vor.u32 1.1754944e-38, %v2098_v47 }
 0x356   : > { %v1972_v12 = vmul.f32 %v2929_v4, %v1971_v0  ;;  %v2088_v25 = vmul.f32 %v2937_v17, %v5655_v28  ;;  %vm2093_vm6 = vweird.f32 %v2937_v17  ;;  %vm2107_vm11 = vweird.f32 %v5659_v8 }
 0x357   : > { %v2939_v6 = vpop.eup %2938  ;;  %v1987_v46 = vmul.f32 %v2931_v29, %v1986_v35  ;;  %vm2094_vm9 = vmor %vm2092_vm2, %vm2093_vm6  ;;  %vm2097_vm12 = vcmp.eq.f32.partialorder %v2096_v13, 8.507059e+37  ;;  %vm2112_vm14 = vcmp.eq.f32.partialorder %v2111_v50, 8.507059e+37  ;;  %v2114_v41 = vor.u32 1.1754944e-38, %v2113_v5 }
 0x358   : > { %v2941_v31 = vpop.eup %2940  ;;  %v2103_v40 = vmul.f32 %v2939_v6, %v5659_v8  ;;  %v1973_v38 = vadd.f32 %v2929_v4, %v1972_v12  ;;  %v2089_v20 = vsub.f32 1.0, %v2088_v25  ;;  %vm2108_vm8 = vweird.f32 %v2939_v6 }
 0x359   : > { %v2943_v3 = vpop.eup %2942  ;;  %v5698_v52 = vadd.f32 1.0, %v2941_v31  ;;  %v1988_v33 = vadd.f32 %v2931_v29, %v1987_v46  ;;  %vm2109_vm13 = vmor %vm2107_vm11, %vm2108_vm8  ;;  %v2244_v39 = vstv %s5696_s4  ;;  %v2250_v25 = vstv %s5729_s6 }
 0x35a   : > { %v5701_v30 = vadd.f32 1.0, %v2943_v3  ;;  %v2104_v2 = vsub.f32 1.0, %v2103_v40  ;;  %v1977_v1 = vsel %vm1976_vm0, %v2929_v4, %v1973_v38  ;;  %v2090_v11 = vmul.f32 %v2937_v17, %v2089_v20  ;;  %v6069_v4 = vld [vmem:[#allocation37_spill] sm:$0xff] }
 0x35b   : > { %2944 = vrcp.f32 %v5698_v52  ;;  %v1982_v9 = vsel %vm5680_vm1, %v1981_v36, %v1977_v1  ;;  %v1992_v62 = vsel %vm1991_vm7, %v2931_v29, %v1988_v33  ;;  %v2214_v49 = vand.u32 2147483647, %v5698_v52 }
 0x35c   : > { %2946 = vrcp.f32 %v5701_v30  ;;  %v2105_v54 = vmul.f32 %v2939_v6, %v2104_v2  ;;  %v1997_v14 = vsel %vm5687_vm3, %v1996_v55, %v1992_v62  ;;  %v1999_v48 = vmul.f32 %v5657_v44, %v1982_v9 }
 0x35d   : > { %v2091_v56 = vadd.f32 %v2937_v17, %v2090_v11  ;;  %v2000_v58 = vmul.f32 %v2927_v60, %v1997_v14  ;;  %2948 = vtanh.f32 %v5667_v21  ;;  %v2216_v45 = vand.u32 2147483648, %v5698_v52 }
 0x35e   : > { %v2106_v15 = vadd.f32 %v2939_v6, %v2105_v54  ;;  %v2239_v37 = vmul.f32 %v2238_v63, %v1999_v48  ;;  %2950 = vtanh.f32 %v5673_v10  ;;  %v2229_v10 = vand.u32 2147483647, %v5701_v30 }
 0x35f   : > { %v2095_v26 = vsel %vm2094_vm9, %v2937_v17, %v2091_v56  ;;  %v2240_v8 = vmul.f32 %v2238_v63, %v2000_v58  ;;  %vm2210_vm1 = vweird.f32 %v5698_v52  ;;  %v2217_v35 = vor.u32 1.1754944e-38, %v2216_v45 }
 0x360   : > { %v2100_v53 = vsel %vm2097_vm12, %v2099_v61, %v2095_v26  ;;  %v2110_v22 = vsel %vm2109_vm13, %v2939_v6, %v2106_v15  ;;  %v2241_v60 = vadd.f32 %v2239_v37, %v6068_v16  ;;  %vm2225_vm3 = vweird.f32 %v5701_v30 }
 0x361   : > { %v2945_v51 = vpop.eup %2944  ;;  %v2115_v23 = vsel %vm2112_vm14, %v2114_v41, %v2110_v22  ;;  %v2117_v34 = vmul.f32 %v5671_v57, %v2100_v53  ;;  %v2242_v43 = vadd.f32 %v2240_v8, %v6069_v4  ;;  %vm2215_vm4 = vcmp.eq.f32.partialorder %v2214_v49, 8.507059e+37 }
 0x362   : > { %v2947_v28 = vpop.eup %2946  ;;  %v2118_v42 = vmul.f32 %v5678_v19, %v2115_v23  ;;  %v2206_v44 = vmul.f32 %v2945_v51, %v5698_v52  ;;  %vm2211_vm10 = vweird.f32 %v2945_v51  ;;  %v2231_v19 = vand.u32 2147483648, %v5701_v30 }
 0x363   : > { %v2221_v59 = vmul.f32 %v2947_v28, %v5701_v30  ;;  %v2245_v32 = vmul.f32 %v2244_v39, %v2117_v34  ;;  %vm2226_vm15 = vweird.f32 %v2947_v28  ;;  %v2949_v17 = vpop.eup %2948  ;;  %vm2212_vm2 = vmor %vm2210_vm1, %vm2211_vm10  ;;  %vm2230_vm0 = vcmp.eq.f32.partialorder %v2229_v10, 8.507059e+37 }
 0x364   : > { %v2207_v18 = vsub.f32 1.0, %v2206_v44  ;;  %v2246_v29 = vmul.f32 %v2244_v39, %v2118_v42  ;;  %v2951_v13 = vpop.eup %2950  ;;  %vm2227_vm5 = vmor %vm2225_vm3, %vm2226_vm15  ;;  %v2232_v6 = vor.u32 1.1754944e-38, %v2231_v19  ;;  %v2256_v52 = vstv %s5737_s9 }
 0x365   : > { %v2222_v57 = vsub.f32 1.0, %v2221_v59  ;;  %v2247_v7 = vadd.f32 %v2245_v32, %v2241_v60 }
 0x366   : > { %v2208_v21 = vmul.f32 %v2945_v51, %v2207_v18  ;;  %v2248_v0 = vadd.f32 %v2246_v29, %v2242_v43 }
 0x367   : > { %v2223_v27 = vmul.f32 %v2947_v28, %v2222_v57 }
 0x368   : > { %v2209_v36 = vadd.f32 %v2945_v51, %v2208_v21 }
 0x369   : > { %v2224_v24 = vadd.f32 %v2947_v28, %v2223_v27 }
 0x36a   : > { %v2213_v47 = vsel %vm2212_vm2, %v2945_v51, %v2209_v36 }
 0x36b   : > { %v2218_v12 = vsel %vm2215_vm4, %v2217_v35, %v2213_v47  ;;  %v2228_v55 = vsel %vm2227_vm5, %v2947_v28, %v2224_v24 }
 0x36c   : > { %v2233_v31 = vsel %vm2230_vm0, %v2232_v6, %v2228_v55  ;;  %v2235_v46 = vmul.f32 %v2949_v17, %v2218_v12 }
 0x36d   : > { %v2236_v40 = vmul.f32 %v2951_v13, %v2233_v31 }
 0x36e   : > { %v2251_v50 = vmul.f32 %v2250_v25, %v2235_v46 }
 0x36f   : > { %v2252_v3 = vmul.f32 %v2250_v25, %v2236_v40 }
 0x370   : > { %v2253_v38 = vadd.f32 %v2251_v50, %v2247_v7 }
 0x371   : > { %v2254_v20 = vadd.f32 %v2252_v3, %v2248_v0 }
 0x372   : > { %v2257_v5 = vadd.f32 %v2256_v52, %v2253_v38 }
 0x373   : > { %v2258_v30 = vadd.f32 %v2256_v52, %v2254_v20 }
 0x374   : > { %2259 = vst [vmem:[%s441_s20] sm:$0xff] %v2257_v5 }
 0x375   : > { %2260 = vst [vmem:[%s441_s20 + $0x8] sm:$0xff] %v2258_v30 }
 0x376   : > { %3114 = shalt.err (!%p3111_p9)
}
 0x377   : > { %2719 = dma.vmem_to_hbm [thread:$0]  (%p3333_p13), %s2276_s17, 256, %s2278_s23, %s2262_s25  }
 0x378 PF: > { %s6073_s16 = sld [smem:[#allocation26_spill]] }
 0x379   : > { %s6075_s3 = sld [smem:[#allocation29_spill]] }
 0x37e   : > { %s2289_s5 = sand.u32 1, %s6073_s16  }
 0x37f   : > { %p6076_p10 = scmp.ge.s32.totalorder %s6075_s3, 2  ;;  %s2290_s7 = scalar_lea.sflag [#allocation5], %s2289_s5 }
 0x381   : > { %p2748_p11 = pnand %p6076_p10, %p3338_p5 }
 0x383   : > { %p2749_p0 = pneg %p2748_p11 }
 0x385   : > { %3156 = dma.done.wait (%p2749_p0), %s2290_s7, 256  }
 0x386   : > { %3158 = vsyncadd (%p2749_p0), %s2290_s7, 4294967040  ;;  %s6077_s14 = sld [smem:[#allocation30_spill]] }
 0x387   : > { %s6078_s11 = sld [smem:[#allocation27_spill]] }
 0x388   : > { %s6079_s12 = sld [smem:[#allocation28_spill]] }
 0x389   : > { %s6080_s13 = sld [smem:[#allocation31_spill]] }
 0x38c   : > { %p28_p2 = scmp.ge.s32.totalorder %s6077_s14, 4  }
 0x38e   :  { %30 = sbr.rel (!%p28_p2) target bundleno = 21 (0x15), region = 131 }
 0x393   :  { %2296 = vsyncpa [#allocation4], 1 }
 0x394   :  { %2298 = vsyncpa [#allocation4 + $0x1], 1 }
 0x395   :  { %2299 = vsyncpa [#allocation5], 1 }
 0x396   :  { %2301 = vsyncpa [#allocation5 + $0x1], 1 }
 0x397   :  { %2302 = vsyncpa [#allocation6], 1 }
 0x398   :  { %2304 = vsyncpa [#allocation6 + $0x1], 1 }
 0x399   :  { %2305 = vsyncpa [#allocation7], 1 }
 0x39a   :  { %2307 = vsyncpa [#allocation7 + $0x1], 1 }
 0x39b   :  { %2308 = vsyncpa [#allocation11], 1 }
 0x39c   :  { %2309 = vsyncpa [#allocation14], 1 }
 0x39d   :  { %2310 = vsyncpa [#allocation17], 1 }

</bundles_post_ra>
